<compile_context>
chip_gen: v7x
topology: tpu7x:2x2x1
jax: 0.10.0
libtpu: 0.0.40
codegen_flags: <defaults>
</compile_context>

<pallas_src>
import functools

import jax
import jax.numpy as jnp
from jax.experimental import pallas as pl
from jax.experimental.pallas import tpu as pltpu


def _round_up(x, m):
    return ((x + m - 1) // m) * m


# ----------------------------------------------------------------------------
# Pallas kernel: fused matmul + folded-BatchNorm affine + SiLU
# ----------------------------------------------------------------------------
def _fused_matmul_bn_silu_kernel(x_ref, w_ref, s_ref, b_ref, o_ref, acc_ref):
    # K is the last ("arbitrary") grid axis; accumulate across it in f32 scratch.
    @pl.when(pl.program_id(2) == 0)
    def _():
        acc_ref[...] = jnp.zeros_like(acc_ref)

    acc_ref[...] += jnp.dot(x_ref[...], w_ref[...],
                            preferred_element_type=jnp.float32)

    @pl.when(pl.program_id(2) == pl.num_programs(2) - 1)
    def _():
        y = acc_ref[...] * s_ref[...] + b_ref[...]          # folded-BN affine (f32)
        # Numerically-stable SiLU: exp -> EUP, reciprocal -> EUP, select/mul -> VPU.
        z = jnp.exp(-jnp.abs(y))
        r = pl.reciprocal(1.0 + z, approx=True)
        sig = jnp.where(y >= 0, r, z * r)
        o_ref[...] = (y * sig).astype(o_ref.dtype)


def fused_matmul_bn_silu(x2d, w, scale, bias, out_dtype=jnp.bfloat16):
    """x2d: [M, K], w: [K, N], scale/bias: [N] -> [M, N] in `out_dtype`."""
    M, K = x2d.shape
    Kw, N = w.shape
    assert K == Kw

    # ---- tile selection (never fall back to tile_m == full large M) ----
    if M % 256 == 0:
        tile_m = 256
    elif M % 128 == 0:
        tile_m = 128
    else:
        tile_m = min(256, _round_up(M, 8))
    M_pad = _round_up(M, tile_m)

    # Lane-dense output: pad Cout to a multiple of 128.
    N_pad = _round_up(N, 128)
    tile_n = 256 if N_pad % 256 == 0 else 128

    # K tiling only when K is large; otherwise use the full (un-padded) K block.
    if K <= 512:
        K_pad, tile_k = K, K
    else:
        K_pad = _round_up(K, 128)
        if K_pad % 512 == 0:
            tile_k = 512
        elif K_pad % 256 == 0:
            tile_k = 256
        else:
            tile_k = 128

    grid = (M_pad // tile_m, N_pad // tile_n, K_pad // tile_k)

    # ---- pad / cast operands (bf16 matmul operands, f32 scale/bias) ----
    x_p = x2d.astype(jnp.bfloat16)
    if (M_pad, K_pad) != (M, K):
        x_p = jnp.pad(x_p, ((0, M_pad - M), (0, K_pad - K)))
    w_p = w.astype(jnp.bfloat16)
    if (K_pad, N_pad) != (K, N):
        w_p = jnp.pad(w_p, ((0, K_pad - K), (0, N_pad - N)))
    s_p = scale.astype(jnp.float32)
    b_p = bias.astype(jnp.float32)
    if N_pad != N:
        s_p = jnp.pad(s_p, (0, N_pad - N))
        b_p = jnp.pad(b_p, (0, N_pad - N))
    s_p = s_p.reshape(1, N_pad)
    b_p = b_p.reshape(1, N_pad)

    out = pl.pallas_call(
        _fused_matmul_bn_silu_kernel,
        out_shape=jax.ShapeDtypeStruct((M_pad, N_pad), out_dtype),
        grid_spec=pltpu.PrefetchScalarGridSpec(
            num_scalar_prefetch=0,
            grid=grid,
            in_specs=[
                pl.BlockSpec((tile_m, tile_k), lambda i, j, k: (i, k)),
                pl.BlockSpec((tile_k, tile_n), lambda i, j, k: (k, j)),
                pl.BlockSpec((1, tile_n), lambda i, j, k: (0, j)),
                pl.BlockSpec((1, tile_n), lambda i, j, k: (0, j)),
            ],
            out_specs=pl.BlockSpec((tile_m, tile_n), lambda i, j, k: (i, j)),
            scratch_shapes=[pltpu.VMEM((tile_m, tile_n), jnp.float32)],
        ),
        compiler_params=pltpu.CompilerParams(
            dimension_semantics=("parallel", "parallel", "arbitrary"),
            vmem_limit_bytes=32 * 1024 * 1024,  # blocks need only a few MiB; safe on v7x
        ),
    )(x_p, w_p, s_p, b_p)

    if (M_pad, N_pad) != (M, N):
        out = out[:M, :N]
    return out


# ----------------------------------------------------------------------------
# Conv / Bottleneck / C2f building blocks (glue: im2col in bf16; hot path: Pallas)
# ----------------------------------------------------------------------------
def conv_bn_silu(x, p, stride=1, out_dtype=jnp.bfloat16):
    """x: [N, H, W, Cin] -> [N, Ho, Wo, Cout].  Matches yolov8 Conv (k, s, autopad)."""
    k = p["k"]
    pad = k // 2
    Nb, H, W, C = x.shape
    xb = x.astype(jnp.bfloat16)
    if k == 1 and stride == 1:
        Ho, Wo = H, W
        x2d = xb.reshape(Nb * H * W, C)
    else:
        xp = jnp.pad(xb, ((0, 0), (pad, pad), (pad, pad), (0, 0)))
        Ho = (H + 2 * pad - k) // stride + 1
        Wo = (W + 2 * pad - k) // stride + 1
        cols = []
        for di in range(k):
            for dj in range(k):
                cols.append(
                    xp[:,
                       di:di + (Ho - 1) * stride + 1:stride,
                       dj:dj + (Wo - 1) * stride + 1:stride,
                       :])
        # TODO(synk): fuse the k*k taps into the Pallas kernel (extra grid axis over
        # taps accumulating shifted matmuls) to avoid materializing the 9x im2col
        # tensor in HBM; bf16 halves its cost in the meantime.
        x2d = jnp.concatenate(cols, axis=-1).reshape(Nb * Ho * Wo, k * k * C)
    out = fused_matmul_bn_silu(x2d, p["w"], p["scale"], p["bias"], out_dtype=out_dtype)
    return out.reshape(Nb, Ho, Wo, -1)


def bottleneck(x, p):
    # shortcut=False in this FPN, so no residual add
    return conv_bn_silu(conv_bn_silu(x, p["cv1"]), p["cv2"])


def c2f(x, p):
    c = p["c"]
    y = conv_bn_silu(x, p["cv1"])                 # 1x1: c1 -> 2c
    ys = [y[..., :c], y[..., c:]]
    cur = ys[-1]
    for bp in p["m"]:
        cur = bottleneck(cur, bp)
        ys.append(cur)
    # TODO(synk): fuse this channel concat into cv2's 1x1 matmul (split weight rows,
    # one dot per piece accumulated in-kernel) to avoid the HBM concat round trip.
    cat = jnp.concatenate(ys, axis=-1)            # (2+n)*c
    return conv_bn_silu(cat, p["cv2"])            # 1x1 -> c2


def upsample2x_nearest(x):
    # TODO(synk): fuse nearest-upsample into the consuming 1x1 conv via its index_map
    # (read the same source block for each 2x2 output block) instead of materializing.
    return jnp.repeat(jnp.repeat(x, 2, axis=1), 2, axis=2)


# ----------------------------------------------------------------------------
# Deterministic parameter initialization (synthetic, BN folded to scale/bias)
# ----------------------------------------------------------------------------
def init_conv(key, cin, cout, k):
    k1, k2, k3 = jax.random.split(key, 3)
    fan_in = k * k * cin
    w = jax.random.normal(k1, (k, k, cin, cout), jnp.float32) / jnp.sqrt(
        jnp.float32(fan_in))
    gamma = 1.0 + 0.1 * jax.random.normal(k2, (cout,), jnp.float32)
    beta = 0.1 * jax.random.normal(k3, (cout,), jnp.float32)
    running_mean = jnp.zeros((cout,), jnp.float32)
    running_var = jnp.ones((cout,), jnp.float32)
    eps = 1e-3  # BatchNorm2d eps in yolov8 Conv
    scale = gamma / jnp.sqrt(running_var + eps)
    bias = beta - running_mean * scale
    # im2col orders the patch axis as (kh, kw, cin); reshape the weight the same way.
    return {"w": w.reshape(k * k * cin, cout).astype(jnp.bfloat16),
            "scale": scale, "bias": bias, "k": k}


def init_c2f(key, c1, c2, n):
    c = int(c2 * 0.5)
    keys = jax.random.split(key, 2 + 2 * n)
    m = []
    for i in range(n):
        m.append({
            "cv1": init_conv(keys[2 + 2 * i], c, c, 3),     # Bottleneck e=1.0
            "cv2": init_conv(keys[3 + 2 * i], c, c, 3),
        })
    return {
        "c": c,
        "cv1": init_conv(keys[0], c1, 2 * c, 1),
        "cv2": init_conv(keys[1], (2 + n) * c, c2, 1),
        "m": m,
    }


def init_fpn(key, base_channels, base_depth, deep_mul):
    ks = jax.random.split(key, 6)
    c_deep = int(base_channels * 16 * deep_mul)
    return {
        "conv3_for_upsample1": init_c2f(ks[0], c_deep + base_channels * 8,
                                        base_channels * 8, base_depth),
        "conv3_for_upsample2": init_c2f(ks[1], base_channels * 8 + base_channels * 4,
                                        base_channels * 4, base_depth),
        "down_sample1": init_conv(ks[2], base_channels * 4, base_channels * 4, 3),
        "conv3_for_downsample1": init_c2f(ks[3], base_channels * 8 + base_channels * 4,
                                          base_channels * 8, base_depth),
        "down_sample2": init_conv(ks[4], base_channels * 8, base_channels * 8, 3),
        "conv3_for_downsample2": init_c2f(ks[5], c_deep + base_channels * 8,
                                          c_deep, base_depth),
    }


# ----------------------------------------------------------------------------
# FPN forward (mirrors the PyTorch forward exactly; channel cat on axis=-1)
# ----------------------------------------------------------------------------
def fpn_forward(params, feat1, feat2, feat3):
    P5_upsample = upsample2x_nearest(feat3.astype(jnp.bfloat16))
    P4 = jnp.concatenate([P5_upsample, feat2.astype(jnp.bfloat16)], axis=-1)
    P4 = c2f(P4, params["conv3_for_upsample1"])

    P4_upsample = upsample2x_nearest(P4)
    P3 = jnp.concatenate([P4_upsample, feat1.astype(jnp.bfloat16)], axis=-1)
    P3 = c2f(P3, params["conv3_for_upsample2"])

    P3_downsample = conv_bn_silu(P3, params["down_sample1"], stride=2)
    P4 = jnp.concatenate([P3_downsample, P4], axis=-1)
    P4 = c2f(P4, params["conv3_for_downsample1"])

    P4_downsample = conv_bn_silu(P4, params["down_sample2"], stride=2)
    P5 = jnp.concatenate([P4_downsample, feat3.astype(jnp.bfloat16)], axis=-1)
    P5 = c2f(P5, params["conv3_for_downsample2"])
    return (P3.astype(jnp.float32),
            P4.astype(jnp.float32),
            P5.astype(jnp.float32))


if __name__ == "__main__":
    # Small synthetic config: base_channels=4, base_depth=1, deep_mul=1.0
    base_channels, base_depth, deep_mul = 4, 1, 1.0
    batch = 2
    key = jax.random.PRNGKey(0)
    kp, k1, k2, k3 = jax.random.split(key, 4)

    params = init_fpn(kp, base_channels, base_depth, deep_mul)

    # feat1: (N, 16, 16, 16), feat2: (N, 8, 8, 32), feat3: (N, 4, 4, 64)  (NHWC)
    feat1 = jax.random.normal(k1, (batch, 16, 16, base_channels * 4), jnp.float32)
    feat2 = jax.random.normal(k2, (batch, 8, 8, base_channels * 8), jnp.float32)
    feat3 = jax.random.normal(
        k3, (batch, 4, 4, int(base_channels * 16 * deep_mul)), jnp.float32)

    fwd = jax.jit(functools.partial(fpn_forward, params))
    P3, P4, P5 = fwd(feat1, feat2, feat3)
    jax.block_until_ready((P3, P4, P5))

    assert P3.shape == (batch, 16, 16, base_channels * 4), P3.shape
    assert P4.shape == (batch, 8, 8, base_channels * 8), P4.shape
    assert P5.shape == (batch, 4, 4, int(base_channels * 16 * deep_mul)), P5.shape
    assert jnp.all(jnp.isfinite(P3)) and jnp.all(jnp.isfinite(P4)) and jnp.all(jnp.isfinite(P5))
    print("KERNEL_OK")
</pallas_src>

<mosaic_0001>
module attributes {stable_mosaic.version = 11 : i64} {
  func.func @_fused_matmul_bn_silu_kernel(%arg0: i32, %arg1: i32, %arg2: i32, %arg3: memref<128x96xbf16, #tpu.memory_space<vmem>>, %arg4: memref<96x128xbf16, #tpu.memory_space<vmem>>, %arg5: memref<1x128xf32, #tpu.memory_space<vmem>>, %arg6: memref<1x128xf32, #tpu.memory_space<vmem>>, %arg7: memref<128x128xbf16, #tpu.memory_space<vmem>>, %arg8: memref<128x128xf32, #tpu.memory_space<vmem>>) attributes {dimension_semantics = [#tpu.dimension_semantics<parallel>, #tpu.dimension_semantics<parallel>, #tpu.dimension_semantics<arbitrary>], iteration_bounds = array<i64: 1, 1, 1>, scalar_prefetch = 0 : i64, scratch_operands = 1 : i64, tpu.core_type = #tpu.core_type<tc>, window_params = [{transform_indices = @transform_0, window_bounds = array<i64: 128, 96>}, {transform_indices = @transform_1, window_bounds = array<i64: 96, 128>}, {transform_indices = @transform_2, window_bounds = array<i64: 1, 128>}, {transform_indices = @transform_3, window_bounds = array<i64: 1, 128>}, {transform_indices = @transform_4, window_bounds = array<i64: 128, 128>}]} {
    %c0_i32 = arith.constant 0 : i32
    %0 = arith.cmpi eq, %arg2, %c0_i32 : i32
    %1 = arith.extui %0 : i1 to i32
    %c0_i32_0 = arith.constant 0 : i32
    %2 = arith.cmpi ne, %1, %c0_i32_0 : i32
    scf.if %2 {
      %cst_10 = arith.constant 0.000000e+00 : f32
      %12 = vector.broadcast %cst_10 : f32 to vector<128x128xf32>
      %c0_11 = arith.constant 0 : index
      %c0_12 = arith.constant 0 : index
      %13 = vector.load %arg8[%c0_11, %c0_12] : memref<128x128xf32, #tpu.memory_space<vmem>>, vector<128x128xf32>
      tpu.vector_store %arg8[%c0_11, %c0_12], %12 {strides = array<i32>} : memref<128x128xf32, #tpu.memory_space<vmem>>, vector<128x128xf32>,
    } else {
    }
    %c0 = arith.constant 0 : index
    %c0_1 = arith.constant 0 : index
    %3 = vector.load %arg8[%c0, %c0_1] : memref<128x128xf32, #tpu.memory_space<vmem>>, vector<128x128xf32>
    %c0_2 = arith.constant 0 : index
    %c0_3 = arith.constant 0 : index
    %4 = vector.load %arg3[%c0_2, %c0_3] : memref<128x96xbf16, #tpu.memory_space<vmem>>, vector<128x96xbf16>
    %c0_4 = arith.constant 0 : index
    %c0_5 = arith.constant 0 : index
    %5 = vector.load %arg4[%c0_4, %c0_5] : memref<96x128xbf16, #tpu.memory_space<vmem>>, vector<96x128xbf16>
    %cst = arith.constant dense<0.000000e+00> : vector<128x128xf32>
    %6 = tpu.matmul %4, %5, %cst {dimension_numbers = #tpu.dot_dimension_numbers<[1], [0], [0], [1], [0, 0, 1, 1], [], []>} : vector<128x96xbf16>, vector<96x128xbf16>, vector<128x128xf32> -> vector<128x128xf32>
    %7 = arith.addf %3, %6 : vector<128x128xf32>
    %c0_6 = arith.constant 0 : index
    %c0_7 = arith.constant 0 : index
    %8 = vector.load %arg8[%c0_6, %c0_7] : memref<128x128xf32, #tpu.memory_space<vmem>>, vector<128x128xf32>
    tpu.vector_store %arg8[%c0_6, %c0_7], %7 {strides = array<i32>} : memref<128x128xf32, #tpu.memory_space<vmem>>, vector<128x128xf32>,
    %c0_i32_8 = arith.constant 0 : i32
    %9 = arith.cmpi eq, %arg2, %c0_i32_8 : i32
    %10 = arith.extui %9 : i1 to i32
    %c0_i32_9 = arith.constant 0 : i32
    %11 = arith.cmpi ne, %10, %c0_i32_9 : i32
    scf.if %11 {
      %c0_10 = arith.constant 0 : index
      %c0_11 = arith.constant 0 : index
      %12 = vector.load %arg8[%c0_10, %c0_11] : memref<128x128xf32, #tpu.memory_space<vmem>>, vector<128x128xf32>
      %c0_12 = arith.constant 0 : index
      %c0_13 = arith.constant 0 : index
      %13 = vector.load %arg5[%c0_12, %c0_13] : memref<1x128xf32, #tpu.memory_space<vmem>>, vector<1x128xf32>
      %14 = vector.broadcast %13 : vector<1x128xf32> to vector<128x128xf32>
      %15 = arith.mulf %12, %14 : vector<128x128xf32>
      %c0_14 = arith.constant 0 : index
      %c0_15 = arith.constant 0 : index
      %16 = vector.load %arg6[%c0_14, %c0_15] : memref<1x128xf32, #tpu.memory_space<vmem>>, vector<1x128xf32>
      %17 = vector.broadcast %16 : vector<1x128xf32> to vector<128x128xf32>
      %18 = arith.addf %15, %17 : vector<128x128xf32>
      %19 = math.absf %18 : vector<128x128xf32>
      %cst_16 = arith.constant 0.000000e+00 : f32
      %20 = vector.broadcast %cst_16 : f32 to vector<128x128xf32>
      %21 = arith.subf %20, %19 : vector<128x128xf32>
      %22 = math.exp %21 : vector<128x128xf32>
      %cst_17 = arith.constant 1.000000e+00 : f32
      %23 = vector.broadcast %cst_17 : f32 to vector<128x128xf32>
      %24 = arith.addf %23, %22 : vector<128x128xf32>
      %25 = tpu.reciprocal %24 {approx = true} : vector<128x128xf32> -> vector<128x128xf32>
      %cst_18 = arith.constant 0.000000e+00 : f32
      %26 = vector.broadcast %cst_18 : f32 to vector<128x128xf32>
      %27 = arith.cmpf oge, %18, %26 : vector<128x128xf32>
      %28 = arith.mulf %22, %25 : vector<128x128xf32>
      %29 = arith.select %27, %25, %28 : vector<128x128xi1>, vector<128x128xf32>
      %30 = arith.mulf %18, %29 : vector<128x128xf32>
      %31 = arith.truncf %30 : vector<128x128xf32> to vector<128x128xbf16>
      %c0_19 = arith.constant 0 : index
      %c0_20 = arith.constant 0 : index
      %32 = vector.load %arg7[%c0_19, %c0_20] : memref<128x128xbf16, #tpu.memory_space<vmem>>, vector<128x128xbf16>
      tpu.vector_store %arg7[%c0_19, %c0_20], %31 {strides = array<i32>} : memref<128x128xbf16, #tpu.memory_space<vmem>>, vector<128x128xbf16>,
    } else {
    }
    return
  }
  func.func @transform_0(%arg0: i32, %arg1: i32, %arg2: i32) -> (i32, i32) {
    %c0_i32 = arith.constant 0 : i32
    return %arg0, %arg2 : i32, i32
  }
  func.func @transform_1(%arg0: i32, %arg1: i32, %arg2: i32) -> (i32, i32) {
    %c0_i32 = arith.constant 0 : i32
    return %arg2, %arg1 : i32, i32
  }
  func.func @transform_2(%arg0: i32, %arg1: i32, %arg2: i32) -> (i32, i32) {
    %c0_i32 = arith.constant 0 : i32
    %c0_i32_0 = arith.constant 0 : i32
    return %c0_i32, %arg1 : i32, i32
  }
  func.func @transform_3(%arg0: i32, %arg1: i32, %arg2: i32) -> (i32, i32) {
    %c0_i32 = arith.constant 0 : i32
    %c0_i32_0 = arith.constant 0 : i32
    return %c0_i32, %arg1 : i32, i32
  }
  func.func @transform_4(%arg0: i32, %arg1: i32, %arg2: i32) -> (i32, i32) {
    %c0_i32 = arith.constant 0 : i32
    return %arg0, %arg1 : i32, i32
  }
}

module attributes {stable_mosaic.version = 11 : i64} {
  func.func @_fused_matmul_bn_silu_kernel(%arg0: i32, %arg1: i32, %arg2: i32, %arg3: memref<128x144xbf16, #tpu.memory_space<vmem>>, %arg4: memref<144x128xbf16, #tpu.memory_space<vmem>>, %arg5: memref<1x128xf32, #tpu.memory_space<vmem>>, %arg6: memref<1x128xf32, #tpu.memory_space<vmem>>, %arg7: memref<128x128xbf16, #tpu.memory_space<vmem>>, %arg8: memref<128x128xf32, #tpu.memory_space<vmem>>) attributes {dimension_semantics = [#tpu.dimension_semantics<parallel>, #tpu.dimension_semantics<parallel>, #tpu.dimension_semantics<arbitrary>], iteration_bounds = array<i64: 1, 1, 1>, scalar_prefetch = 0 : i64, scratch_operands = 1 : i64, tpu.core_type = #tpu.core_type<tc>, window_params = [{transform_indices = @transform_0, window_bounds = array<i64: 128, 144>}, {transform_indices = @transform_1, window_bounds = array<i64: 144, 128>}, {transform_indices = @transform_2, window_bounds = array<i64: 1, 128>}, {transform_indices = @transform_3, window_bounds = array<i64: 1, 128>}, {transform_indices = @transform_4, window_bounds = array<i64: 128, 128>}]} {
    %c0_i32 = arith.constant 0 : i32
    %0 = arith.cmpi eq, %arg2, %c0_i32 : i32
    %1 = arith.extui %0 : i1 to i32
    %c0_i32_0 = arith.constant 0 : i32
    %2 = arith.cmpi ne, %1, %c0_i32_0 : i32
    scf.if %2 {
      %cst_10 = arith.constant 0.000000e+00 : f32
      %12 = vector.broadcast %cst_10 : f32 to vector<128x128xf32>
      %c0_11 = arith.constant 0 : index
      %c0_12 = arith.constant 0 : index
      %13 = vector.load %arg8[%c0_11, %c0_12] : memref<128x128xf32, #tpu.memory_space<vmem>>, vector<128x128xf32>
      tpu.vector_store %arg8[%c0_11, %c0_12], %12 {strides = array<i32>} : memref<128x128xf32, #tpu.memory_space<vmem>>, vector<128x128xf32>,
    } else {
    }
    %c0 = arith.constant 0 : index
    %c0_1 = arith.constant 0 : index
    %3 = vector.load %arg8[%c0, %c0_1] : memref<128x128xf32, #tpu.memory_space<vmem>>, vector<128x128xf32>
    %c0_2 = arith.constant 0 : index
    %c0_3 = arith.constant 0 : index
    %4 = vector.load %arg3[%c0_2, %c0_3] : memref<128x144xbf16, #tpu.memory_space<vmem>>, vector<128x144xbf16>
    %c0_4 = arith.constant 0 : index
    %c0_5 = arith.constant 0 : index
    %5 = vector.load %arg4[%c0_4, %c0_5] : memref<144x128xbf16, #tpu.memory_space<vmem>>, vector<144x128xbf16>
    %cst = arith.constant dense<0.000000e+00> : vector<128x128xf32>
    %6 = tpu.matmul %4, %5, %cst {dimension_numbers = #tpu.dot_dimension_numbers<[1], [0], [0], [1], [0, 0, 1, 1], [], []>} : vector<128x144xbf16>, vector<144x128xbf16>, vector<128x128xf32> -> vector<128x128xf32>
    %7 = arith.addf %3, %6 : vector<128x128xf32>
    %c0_6 = arith.constant 0 : index
    %c0_7 = arith.constant 0 : index
    %8 = vector.load %arg8[%c0_6, %c0_7] : memref<128x128xf32, #tpu.memory_space<vmem>>, vector<128x128xf32>
    tpu.vector_store %arg8[%c0_6, %c0_7], %7 {strides = array<i32>} : memref<128x128xf32, #tpu.memory_space<vmem>>, vector<128x128xf32>,
    %c0_i32_8 = arith.constant 0 : i32
    %9 = arith.cmpi eq, %arg2, %c0_i32_8 : i32
    %10 = arith.extui %9 : i1 to i32
    %c0_i32_9 = arith.constant 0 : i32
    %11 = arith.cmpi ne, %10, %c0_i32_9 : i32
    scf.if %11 {
      %c0_10 = arith.constant 0 : index
      %c0_11 = arith.constant 0 : index
      %12 = vector.load %arg8[%c0_10, %c0_11] : memref<128x128xf32, #tpu.memory_space<vmem>>, vector<128x128xf32>
      %c0_12 = arith.constant 0 : index
      %c0_13 = arith.constant 0 : index
      %13 = vector.load %arg5[%c0_12, %c0_13] : memref<1x128xf32, #tpu.memory_space<vmem>>, vector<1x128xf32>
      %14 = vector.broadcast %13 : vector<1x128xf32> to vector<128x128xf32>
      %15 = arith.mulf %12, %14 : vector<128x128xf32>
      %c0_14 = arith.constant 0 : index
      %c0_15 = arith.constant 0 : index
      %16 = vector.load %arg6[%c0_14, %c0_15] : memref<1x128xf32, #tpu.memory_space<vmem>>, vector<1x128xf32>
      %17 = vector.broadcast %16 : vector<1x128xf32> to vector<128x128xf32>
      %18 = arith.addf %15, %17 : vector<128x128xf32>
      %19 = math.absf %18 : vector<128x128xf32>
      %cst_16 = arith.constant 0.000000e+00 : f32
      %20 = vector.broadcast %cst_16 : f32 to vector<128x128xf32>
      %21 = arith.subf %20, %19 : vector<128x128xf32>
      %22 = math.exp %21 : vector<128x128xf32>
      %cst_17 = arith.constant 1.000000e+00 : f32
      %23 = vector.broadcast %cst_17 : f32 to vector<128x128xf32>
      %24 = arith.addf %23, %22 : vector<128x128xf32>
      %25 = tpu.reciprocal %24 {approx = true} : vector<128x128xf32> -> vector<128x128xf32>
      %cst_18 = arith.constant 0.000000e+00 : f32
      %26 = vector.broadcast %cst_18 : f32 to vector<128x128xf32>
      %27 = arith.cmpf oge, %18, %26 : vector<128x128xf32>
      %28 = arith.mulf %22, %25 : vector<128x128xf32>
      %29 = arith.select %27, %25, %28 : vector<128x128xi1>, vector<128x128xf32>
      %30 = arith.mulf %18, %29 : vector<128x128xf32>
      %31 = arith.truncf %30 : vector<128x128xf32> to vector<128x128xbf16>
      %c0_19 = arith.constant 0 : index
      %c0_20 = arith.constant 0 : index
      %32 = vector.load %arg7[%c0_19, %c0_20] : memref<128x128xbf16, #tpu.memory_space<vmem>>, vector<128x128xbf16>
      tpu.vector_store %arg7[%c0_19, %c0_20], %31 {strides = array<i32>} : memref<128x128xbf16, #tpu.memory_space<vmem>>, vector<128x128xbf16>,
    } else {
    }
    return
  }
  func.func @transform_0(%arg0: i32, %arg1: i32, %arg2: i32) -> (i32, i32) {
    %c0_i32 = arith.constant 0 : i32
    return %arg0, %arg2 : i32, i32
  }
  func.func @transform_1(%arg0: i32, %arg1: i32, %arg2: i32) -> (i32, i32) {
    %c0_i32 = arith.constant 0 : i32
    return %arg2, %arg1 : i32, i32
  }
  func.func @transform_2(%arg0: i32, %arg1: i32, %arg2: i32) -> (i32, i32) {
    %c0_i32 = arith.constant 0 : i32
    %c0_i32_0 = arith.constant 0 : i32
    return %c0_i32, %arg1 : i32, i32
  }
  func.func @transform_3(%arg0: i32, %arg1: i32, %arg2: i32) -> (i32, i32) {
    %c0_i32 = arith.constant 0 : i32
    %c0_i32_0 = arith.constant 0 : i32
    return %c0_i32, %arg1 : i32, i32
  }
  func.func @transform_4(%arg0: i32, %arg1: i32, %arg2: i32) -> (i32, i32) {
    %c0_i32 = arith.constant 0 : i32
    return %arg0, %arg1 : i32, i32
  }
}

module attributes {stable_mosaic.version = 11 : i64} {
  func.func @_fused_matmul_bn_silu_kernel(%arg0: i32, %arg1: i32, %arg2: i32, %arg3: memref<128x48xbf16, #tpu.memory_space<vmem>>, %arg4: memref<48x128xbf16, #tpu.memory_space<vmem>>, %arg5: memref<1x128xf32, #tpu.memory_space<vmem>>, %arg6: memref<1x128xf32, #tpu.memory_space<vmem>>, %arg7: memref<128x128xbf16, #tpu.memory_space<vmem>>, %arg8: memref<128x128xf32, #tpu.memory_space<vmem>>) attributes {dimension_semantics = [#tpu.dimension_semantics<parallel>, #tpu.dimension_semantics<parallel>, #tpu.dimension_semantics<arbitrary>], iteration_bounds = array<i64: 1, 1, 1>, scalar_prefetch = 0 : i64, scratch_operands = 1 : i64, tpu.core_type = #tpu.core_type<tc>, window_params = [{transform_indices = @transform_0, window_bounds = array<i64: 128, 48>}, {transform_indices = @transform_1, window_bounds = array<i64: 48, 128>}, {transform_indices = @transform_2, window_bounds = array<i64: 1, 128>}, {transform_indices = @transform_3, window_bounds = array<i64: 1, 128>}, {transform_indices = @transform_4, window_bounds = array<i64: 128, 128>}]} {
    %c0_i32 = arith.constant 0 : i32
    %0 = arith.cmpi eq, %arg2, %c0_i32 : i32
    %1 = arith.extui %0 : i1 to i32
    %c0_i32_0 = arith.constant 0 : i32
    %2 = arith.cmpi ne, %1, %c0_i32_0 : i32
    scf.if %2 {
      %cst_10 = arith.constant 0.000000e+00 : f32
      %12 = vector.broadcast %cst_10 : f32 to vector<128x128xf32>
      %c0_11 = arith.constant 0 : index
      %c0_12 = arith.constant 0 : index
      %13 = vector.load %arg8[%c0_11, %c0_12] : memref<128x128xf32, #tpu.memory_space<vmem>>, vector<128x128xf32>
      tpu.vector_store %arg8[%c0_11, %c0_12], %12 {strides = array<i32>} : memref<128x128xf32, #tpu.memory_space<vmem>>, vector<128x128xf32>,
    } else {
    }
    %c0 = arith.constant 0 : index
    %c0_1 = arith.constant 0 : index
    %3 = vector.load %arg8[%c0, %c0_1] : memref<128x128xf32, #tpu.memory_space<vmem>>, vector<128x128xf32>
    %c0_2 = arith.constant 0 : index
    %c0_3 = arith.constant 0 : index
    %4 = vector.load %arg3[%c0_2, %c0_3] : memref<128x48xbf16, #tpu.memory_space<vmem>>, vector<128x48xbf16>
    %c0_4 = arith.constant 0 : index
    %c0_5 = arith.constant 0 : index
    %5 = vector.load %arg4[%c0_4, %c0_5] : memref<48x128xbf16, #tpu.memory_space<vmem>>, vector<48x128xbf16>
    %cst = arith.constant dense<0.000000e+00> : vector<128x128xf32>
    %6 = tpu.matmul %4, %5, %cst {dimension_numbers = #tpu.dot_dimension_numbers<[1], [0], [0], [1], [0, 0, 1, 1], [], []>} : vector<128x48xbf16>, vector<48x128xbf16>, vector<128x128xf32> -> vector<128x128xf32>
    %7 = arith.addf %3, %6 : vector<128x128xf32>
    %c0_6 = arith.constant 0 : index
    %c0_7 = arith.constant 0 : index
    %8 = vector.load %arg8[%c0_6, %c0_7] : memref<128x128xf32, #tpu.memory_space<vmem>>, vector<128x128xf32>
    tpu.vector_store %arg8[%c0_6, %c0_7], %7 {strides = array<i32>} : memref<128x128xf32, #tpu.memory_space<vmem>>, vector<128x128xf32>,
    %c0_i32_8 = arith.constant 0 : i32
    %9 = arith.cmpi eq, %arg2, %c0_i32_8 : i32
    %10 = arith.extui %9 : i1 to i32
    %c0_i32_9 = arith.constant 0 : i32
    %11 = arith.cmpi ne, %10, %c0_i32_9 : i32
    scf.if %11 {
      %c0_10 = arith.constant 0 : index
      %c0_11 = arith.constant 0 : index
      %12 = vector.load %arg8[%c0_10, %c0_11] : memref<128x128xf32, #tpu.memory_space<vmem>>, vector<128x128xf32>
      %c0_12 = arith.constant 0 : index
      %c0_13 = arith.constant 0 : index
      %13 = vector.load %arg5[%c0_12, %c0_13] : memref<1x128xf32, #tpu.memory_space<vmem>>, vector<1x128xf32>
      %14 = vector.broadcast %13 : vector<1x128xf32> to vector<128x128xf32>
      %15 = arith.mulf %12, %14 : vector<128x128xf32>
      %c0_14 = arith.constant 0 : index
      %c0_15 = arith.constant 0 : index
      %16 = vector.load %arg6[%c0_14, %c0_15] : memref<1x128xf32, #tpu.memory_space<vmem>>, vector<1x128xf32>
      %17 = vector.broadcast %16 : vector<1x128xf32> to vector<128x128xf32>
      %18 = arith.addf %15, %17 : vector<128x128xf32>
      %19 = math.absf %18 : vector<128x128xf32>
      %cst_16 = arith.constant 0.000000e+00 : f32
      %20 = vector.broadcast %cst_16 : f32 to vector<128x128xf32>
      %21 = arith.subf %20, %19 : vector<128x128xf32>
      %22 = math.exp %21 : vector<128x128xf32>
      %cst_17 = arith.constant 1.000000e+00 : f32
      %23 = vector.broadcast %cst_17 : f32 to vector<128x128xf32>
      %24 = arith.addf %23, %22 : vector<128x128xf32>
      %25 = tpu.reciprocal %24 {approx = true} : vector<128x128xf32> -> vector<128x128xf32>
      %cst_18 = arith.constant 0.000000e+00 : f32
      %26 = vector.broadcast %cst_18 : f32 to vector<128x128xf32>
      %27 = arith.cmpf oge, %18, %26 : vector<128x128xf32>
      %28 = arith.mulf %22, %25 : vector<128x128xf32>
      %29 = arith.select %27, %25, %28 : vector<128x128xi1>, vector<128x128xf32>
      %30 = arith.mulf %18, %29 : vector<128x128xf32>
      %31 = arith.truncf %30 : vector<128x128xf32> to vector<128x128xbf16>
      %c0_19 = arith.constant 0 : index
      %c0_20 = arith.constant 0 : index
      %32 = vector.load %arg7[%c0_19, %c0_20] : memref<128x128xbf16, #tpu.memory_space<vmem>>, vector<128x128xbf16>
      tpu.vector_store %arg7[%c0_19, %c0_20], %31 {strides = array<i32>} : memref<128x128xbf16, #tpu.memory_space<vmem>>, vector<128x128xbf16>,
    } else {
    }
    return
  }
  func.func @transform_0(%arg0: i32, %arg1: i32, %arg2: i32) -> (i32, i32) {
    %c0_i32 = arith.constant 0 : i32
    return %arg0, %arg2 : i32, i32
  }
  func.func @transform_1(%arg0: i32, %arg1: i32, %arg2: i32) -> (i32, i32) {
    %c0_i32 = arith.constant 0 : i32
    return %arg2, %arg1 : i32, i32
  }
  func.func @transform_2(%arg0: i32, %arg1: i32, %arg2: i32) -> (i32, i32) {
    %c0_i32 = arith.constant 0 : i32
    %c0_i32_0 = arith.constant 0 : i32
    return %c0_i32, %arg1 : i32, i32
  }
  func.func @transform_3(%arg0: i32, %arg1: i32, %arg2: i32) -> (i32, i32) {
    %c0_i32 = arith.constant 0 : i32
    %c0_i32_0 = arith.constant 0 : i32
    return %c0_i32, %arg1 : i32, i32
  }
  func.func @transform_4(%arg0: i32, %arg1: i32, %arg2: i32) -> (i32, i32) {
    %c0_i32 = arith.constant 0 : i32
    return %arg0, %arg1 : i32, i32
  }
}

module attributes {stable_mosaic.version = 11 : i64} {
  func.func @_fused_matmul_bn_silu_kernel(%arg0: i32, %arg1: i32, %arg2: i32, %arg3: memref<256x48xbf16, #tpu.memory_space<vmem>>, %arg4: memref<48x128xbf16, #tpu.memory_space<vmem>>, %arg5: memref<1x128xf32, #tpu.memory_space<vmem>>, %arg6: memref<1x128xf32, #tpu.memory_space<vmem>>, %arg7: memref<256x128xbf16, #tpu.memory_space<vmem>>, %arg8: memref<256x128xf32, #tpu.memory_space<vmem>>) attributes {dimension_semantics = [#tpu.dimension_semantics<parallel>, #tpu.dimension_semantics<parallel>, #tpu.dimension_semantics<arbitrary>], iteration_bounds = array<i64: 2, 1, 1>, scalar_prefetch = 0 : i64, scratch_operands = 1 : i64, tpu.core_type = #tpu.core_type<tc>, window_params = [{transform_indices = @transform_0, window_bounds = array<i64: 256, 48>}, {transform_indices = @transform_1, window_bounds = array<i64: 48, 128>}, {transform_indices = @transform_2, window_bounds = array<i64: 1, 128>}, {transform_indices = @transform_3, window_bounds = array<i64: 1, 128>}, {transform_indices = @transform_4, window_bounds = array<i64: 256, 128>}]} {
    %c0_i32 = arith.constant 0 : i32
    %0 = arith.cmpi eq, %arg2, %c0_i32 : i32
    %1 = arith.extui %0 : i1 to i32
    %c0_i32_0 = arith.constant 0 : i32
    %2 = arith.cmpi ne, %1, %c0_i32_0 : i32
    scf.if %2 {
      %cst_10 = arith.constant 0.000000e+00 : f32
      %12 = vector.broadcast %cst_10 : f32 to vector<256x128xf32>
      %c0_11 = arith.constant 0 : index
      %c0_12 = arith.constant 0 : index
      %13 = vector.load %arg8[%c0_11, %c0_12] : memref<256x128xf32, #tpu.memory_space<vmem>>, vector<256x128xf32>
      tpu.vector_store %arg8[%c0_11, %c0_12], %12 {strides = array<i32>} : memref<256x128xf32, #tpu.memory_space<vmem>>, vector<256x128xf32>,
    } else {
    }
    %c0 = arith.constant 0 : index
    %c0_1 = arith.constant 0 : index
    %3 = vector.load %arg8[%c0, %c0_1] : memref<256x128xf32, #tpu.memory_space<vmem>>, vector<256x128xf32>
    %c0_2 = arith.constant 0 : index
    %c0_3 = arith.constant 0 : index
    %4 = vector.load %arg3[%c0_2, %c0_3] : memref<256x48xbf16, #tpu.memory_space<vmem>>, vector<256x48xbf16>
    %c0_4 = arith.constant 0 : index
    %c0_5 = arith.constant 0 : index
    %5 = vector.load %arg4[%c0_4, %c0_5] : memref<48x128xbf16, #tpu.memory_space<vmem>>, vector<48x128xbf16>
    %cst = arith.constant dense<0.000000e+00> : vector<256x128xf32>
    %6 = tpu.matmul %4, %5, %cst {dimension_numbers = #tpu.dot_dimension_numbers<[1], [0], [0], [1], [0, 0, 1, 1], [], []>} : vector<256x48xbf16>, vector<48x128xbf16>, vector<256x128xf32> -> vector<256x128xf32>
    %7 = arith.addf %3, %6 : vector<256x128xf32>
    %c0_6 = arith.constant 0 : index
    %c0_7 = arith.constant 0 : index
    %8 = vector.load %arg8[%c0_6, %c0_7] : memref<256x128xf32, #tpu.memory_space<vmem>>, vector<256x128xf32>
    tpu.vector_store %arg8[%c0_6, %c0_7], %7 {strides = array<i32>} : memref<256x128xf32, #tpu.memory_space<vmem>>, vector<256x128xf32>,
    %c0_i32_8 = arith.constant 0 : i32
    %9 = arith.cmpi eq, %arg2, %c0_i32_8 : i32
    %10 = arith.extui %9 : i1 to i32
    %c0_i32_9 = arith.constant 0 : i32
    %11 = arith.cmpi ne, %10, %c0_i32_9 : i32
    scf.if %11 {
      %c0_10 = arith.constant 0 : index
      %c0_11 = arith.constant 0 : index
      %12 = vector.load %arg8[%c0_10, %c0_11] : memref<256x128xf32, #tpu.memory_space<vmem>>, vector<256x128xf32>
      %c0_12 = arith.constant 0 : index
      %c0_13 = arith.constant 0 : index
      %13 = vector.load %arg5[%c0_12, %c0_13] : memref<1x128xf32, #tpu.memory_space<vmem>>, vector<1x128xf32>
      %14 = vector.broadcast %13 : vector<1x128xf32> to vector<256x128xf32>
      %15 = arith.mulf %12, %14 : vector<256x128xf32>
      %c0_14 = arith.constant 0 : index
      %c0_15 = arith.constant 0 : index
      %16 = vector.load %arg6[%c0_14, %c0_15] : memref<1x128xf32, #tpu.memory_space<vmem>>, vector<1x128xf32>
      %17 = vector.broadcast %16 : vector<1x128xf32> to vector<256x128xf32>
      %18 = arith.addf %15, %17 : vector<256x128xf32>
      %19 = math.absf %18 : vector<256x128xf32>
      %cst_16 = arith.constant 0.000000e+00 : f32
      %20 = vector.broadcast %cst_16 : f32 to vector<256x128xf32>
      %21 = arith.subf %20, %19 : vector<256x128xf32>
      %22 = math.exp %21 : vector<256x128xf32>
      %cst_17 = arith.constant 1.000000e+00 : f32
      %23 = vector.broadcast %cst_17 : f32 to vector<256x128xf32>
      %24 = arith.addf %23, %22 : vector<256x128xf32>
      %25 = tpu.reciprocal %24 {approx = true} : vector<256x128xf32> -> vector<256x128xf32>
      %cst_18 = arith.constant 0.000000e+00 : f32
      %26 = vector.broadcast %cst_18 : f32 to vector<256x128xf32>
      %27 = arith.cmpf oge, %18, %26 : vector<256x128xf32>
      %28 = arith.mulf %22, %25 : vector<256x128xf32>
      %29 = arith.select %27, %25, %28 : vector<256x128xi1>, vector<256x128xf32>
      %30 = arith.mulf %18, %29 : vector<256x128xf32>
      %31 = arith.truncf %30 : vector<256x128xf32> to vector<256x128xbf16>
      %c0_19 = arith.constant 0 : index
      %c0_20 = arith.constant 0 : index
      %32 = vector.load %arg7[%c0_19, %c0_20] : memref<256x128xbf16, #tpu.memory_space<vmem>>, vector<256x128xbf16>
      tpu.vector_store %arg7[%c0_19, %c0_20], %31 {strides = array<i32>} : memref<256x128xbf16, #tpu.memory_space<vmem>>, vector<256x128xbf16>,
    } else {
    }
    return
  }
  func.func @transform_0(%arg0: i32, %arg1: i32, %arg2: i32) -> (i32, i32) {
    %c0_i32 = arith.constant 0 : i32
    return %arg0, %arg2 : i32, i32
  }
  func.func @transform_1(%arg0: i32, %arg1: i32, %arg2: i32) -> (i32, i32) {
    %c0_i32 = arith.constant 0 : i32
    return %arg2, %arg1 : i32, i32
  }
  func.func @transform_2(%arg0: i32, %arg1: i32, %arg2: i32) -> (i32, i32) {
    %c0_i32 = arith.constant 0 : i32
    %c0_i32_0 = arith.constant 0 : i32
    return %c0_i32, %arg1 : i32, i32
  }
  func.func @transform_3(%arg0: i32, %arg1: i32, %arg2: i32) -> (i32, i32) {
    %c0_i32 = arith.constant 0 : i32
    %c0_i32_0 = arith.constant 0 : i32
    return %c0_i32, %arg1 : i32, i32
  }
  func.func @transform_4(%arg0: i32, %arg1: i32, %arg2: i32) -> (i32, i32) {
    %c0_i32 = arith.constant 0 : i32
    return %arg0, %arg1 : i32, i32
  }
}

module attributes {stable_mosaic.version = 11 : i64} {
  func.func @_fused_matmul_bn_silu_kernel(%arg0: i32, %arg1: i32, %arg2: i32, %arg3: memref<256x72xbf16, #tpu.memory_space<vmem>>, %arg4: memref<72x128xbf16, #tpu.memory_space<vmem>>, %arg5: memref<1x128xf32, #tpu.memory_space<vmem>>, %arg6: memref<1x128xf32, #tpu.memory_space<vmem>>, %arg7: memref<256x128xbf16, #tpu.memory_space<vmem>>, %arg8: memref<256x128xf32, #tpu.memory_space<vmem>>) attributes {dimension_semantics = [#tpu.dimension_semantics<parallel>, #tpu.dimension_semantics<parallel>, #tpu.dimension_semantics<arbitrary>], iteration_bounds = array<i64: 2, 1, 1>, scalar_prefetch = 0 : i64, scratch_operands = 1 : i64, tpu.core_type = #tpu.core_type<tc>, window_params = [{transform_indices = @transform_0, window_bounds = array<i64: 256, 72>}, {transform_indices = @transform_1, window_bounds = array<i64: 72, 128>}, {transform_indices = @transform_2, window_bounds = array<i64: 1, 128>}, {transform_indices = @transform_3, window_bounds = array<i64: 1, 128>}, {transform_indices = @transform_4, window_bounds = array<i64: 256, 128>}]} {
    %c0_i32 = arith.constant 0 : i32
    %0 = arith.cmpi eq, %arg2, %c0_i32 : i32
    %1 = arith.extui %0 : i1 to i32
    %c0_i32_0 = arith.constant 0 : i32
    %2 = arith.cmpi ne, %1, %c0_i32_0 : i32
    scf.if %2 {
      %cst_10 = arith.constant 0.000000e+00 : f32
      %12 = vector.broadcast %cst_10 : f32 to vector<256x128xf32>
      %c0_11 = arith.constant 0 : index
      %c0_12 = arith.constant 0 : index
      %13 = vector.load %arg8[%c0_11, %c0_12] : memref<256x128xf32, #tpu.memory_space<vmem>>, vector<256x128xf32>
      tpu.vector_store %arg8[%c0_11, %c0_12], %12 {strides = array<i32>} : memref<256x128xf32, #tpu.memory_space<vmem>>, vector<256x128xf32>,
    } else {
    }
    %c0 = arith.constant 0 : index
    %c0_1 = arith.constant 0 : index
    %3 = vector.load %arg8[%c0, %c0_1] : memref<256x128xf32, #tpu.memory_space<vmem>>, vector<256x128xf32>
    %c0_2 = arith.constant 0 : index
    %c0_3 = arith.constant 0 : index
    %4 = vector.load %arg3[%c0_2, %c0_3] : memref<256x72xbf16, #tpu.memory_space<vmem>>, vector<256x72xbf16>
    %c0_4 = arith.constant 0 : index
    %c0_5 = arith.constant 0 : index
    %5 = vector.load %arg4[%c0_4, %c0_5] : memref<72x128xbf16, #tpu.memory_space<vmem>>, vector<72x128xbf16>
    %cst = arith.constant dense<0.000000e+00> : vector<256x128xf32>
    %6 = tpu.matmul %4, %5, %cst {dimension_numbers = #tpu.dot_dimension_numbers<[1], [0], [0], [1], [0, 0, 1, 1], [], []>} : vector<256x72xbf16>, vector<72x128xbf16>, vector<256x128xf32> -> vector<256x128xf32>
    %7 = arith.addf %3, %6 : vector<256x128xf32>
    %c0_6 = arith.constant 0 : index
    %c0_7 = arith.constant 0 : index
    %8 = vector.load %arg8[%c0_6, %c0_7] : memref<256x128xf32, #tpu.memory_space<vmem>>, vector<256x128xf32>
    tpu.vector_store %arg8[%c0_6, %c0_7], %7 {strides = array<i32>} : memref<256x128xf32, #tpu.memory_space<vmem>>, vector<256x128xf32>,
    %c0_i32_8 = arith.constant 0 : i32
    %9 = arith.cmpi eq, %arg2, %c0_i32_8 : i32
    %10 = arith.extui %9 : i1 to i32
    %c0_i32_9 = arith.constant 0 : i32
    %11 = arith.cmpi ne, %10, %c0_i32_9 : i32
    scf.if %11 {
      %c0_10 = arith.constant 0 : index
      %c0_11 = arith.constant 0 : index
      %12 = vector.load %arg8[%c0_10, %c0_11] : memref<256x128xf32, #tpu.memory_space<vmem>>, vector<256x128xf32>
      %c0_12 = arith.constant 0 : index
      %c0_13 = arith.constant 0 : index
      %13 = vector.load %arg5[%c0_12, %c0_13] : memref<1x128xf32, #tpu.memory_space<vmem>>, vector<1x128xf32>
      %14 = vector.broadcast %13 : vector<1x128xf32> to vector<256x128xf32>
      %15 = arith.mulf %12, %14 : vector<256x128xf32>
      %c0_14 = arith.constant 0 : index
      %c0_15 = arith.constant 0 : index
      %16 = vector.load %arg6[%c0_14, %c0_15] : memref<1x128xf32, #tpu.memory_space<vmem>>, vector<1x128xf32>
      %17 = vector.broadcast %16 : vector<1x128xf32> to vector<256x128xf32>
      %18 = arith.addf %15, %17 : vector<256x128xf32>
      %19 = math.absf %18 : vector<256x128xf32>
      %cst_16 = arith.constant 0.000000e+00 : f32
      %20 = vector.broadcast %cst_16 : f32 to vector<256x128xf32>
      %21 = arith.subf %20, %19 : vector<256x128xf32>
      %22 = math.exp %21 : vector<256x128xf32>
      %cst_17 = arith.constant 1.000000e+00 : f32
      %23 = vector.broadcast %cst_17 : f32 to vector<256x128xf32>
      %24 = arith.addf %23, %22 : vector<256x128xf32>
      %25 = tpu.reciprocal %24 {approx = true} : vector<256x128xf32> -> vector<256x128xf32>
      %cst_18 = arith.constant 0.000000e+00 : f32
      %26 = vector.broadcast %cst_18 : f32 to vector<256x128xf32>
      %27 = arith.cmpf oge, %18, %26 : vector<256x128xf32>
      %28 = arith.mulf %22, %25 : vector<256x128xf32>
      %29 = arith.select %27, %25, %28 : vector<256x128xi1>, vector<256x128xf32>
      %30 = arith.mulf %18, %29 : vector<256x128xf32>
      %31 = arith.truncf %30 : vector<256x128xf32> to vector<256x128xbf16>
      %c0_19 = arith.constant 0 : index
      %c0_20 = arith.constant 0 : index
      %32 = vector.load %arg7[%c0_19, %c0_20] : memref<256x128xbf16, #tpu.memory_space<vmem>>, vector<256x128xbf16>
      tpu.vector_store %arg7[%c0_19, %c0_20], %31 {strides = array<i32>} : memref<256x128xbf16, #tpu.memory_space<vmem>>, vector<256x128xbf16>,
    } else {
    }
    return
  }
  func.func @transform_0(%arg0: i32, %arg1: i32, %arg2: i32) -> (i32, i32) {
    %c0_i32 = arith.constant 0 : i32
    return %arg0, %arg2 : i32, i32
  }
  func.func @transform_1(%arg0: i32, %arg1: i32, %arg2: i32) -> (i32, i32) {
    %c0_i32 = arith.constant 0 : i32
    return %arg2, %arg1 : i32, i32
  }
  func.func @transform_2(%arg0: i32, %arg1: i32, %arg2: i32) -> (i32, i32) {
    %c0_i32 = arith.constant 0 : i32
    %c0_i32_0 = arith.constant 0 : i32
    return %c0_i32, %arg1 : i32, i32
  }
  func.func @transform_3(%arg0: i32, %arg1: i32, %arg2: i32) -> (i32, i32) {
    %c0_i32 = arith.constant 0 : i32
    %c0_i32_0 = arith.constant 0 : i32
    return %c0_i32, %arg1 : i32, i32
  }
  func.func @transform_4(%arg0: i32, %arg1: i32, %arg2: i32) -> (i32, i32) {
    %c0_i32 = arith.constant 0 : i32
    return %arg0, %arg1 : i32, i32
  }
}

module attributes {stable_mosaic.version = 11 : i64} {
  func.func @_fused_matmul_bn_silu_kernel(%arg0: i32, %arg1: i32, %arg2: i32, %arg3: memref<256x24xbf16, #tpu.memory_space<vmem>>, %arg4: memref<24x128xbf16, #tpu.memory_space<vmem>>, %arg5: memref<1x128xf32, #tpu.memory_space<vmem>>, %arg6: memref<1x128xf32, #tpu.memory_space<vmem>>, %arg7: memref<256x128xbf16, #tpu.memory_space<vmem>>, %arg8: memref<256x128xf32, #tpu.memory_space<vmem>>) attributes {dimension_semantics = [#tpu.dimension_semantics<parallel>, #tpu.dimension_semantics<parallel>, #tpu.dimension_semantics<arbitrary>], iteration_bounds = array<i64: 2, 1, 1>, scalar_prefetch = 0 : i64, scratch_operands = 1 : i64, tpu.core_type = #tpu.core_type<tc>, window_params = [{transform_indices = @transform_0, window_bounds = array<i64: 256, 24>}, {transform_indices = @transform_1, window_bounds = array<i64: 24, 128>}, {transform_indices = @transform_2, window_bounds = array<i64: 1, 128>}, {transform_indices = @transform_3, window_bounds = array<i64: 1, 128>}, {transform_indices = @transform_4, window_bounds = array<i64: 256, 128>}]} {
    %c0_i32 = arith.constant 0 : i32
    %0 = arith.cmpi eq, %arg2, %c0_i32 : i32
    %1 = arith.extui %0 : i1 to i32
    %c0_i32_0 = arith.constant 0 : i32
    %2 = arith.cmpi ne, %1, %c0_i32_0 : i32
    scf.if %2 {
      %cst_10 = arith.constant 0.000000e+00 : f32
      %12 = vector.broadcast %cst_10 : f32 to vector<256x128xf32>
      %c0_11 = arith.constant 0 : index
      %c0_12 = arith.constant 0 : index
      %13 = vector.load %arg8[%c0_11, %c0_12] : memref<256x128xf32, #tpu.memory_space<vmem>>, vector<256x128xf32>
      tpu.vector_store %arg8[%c0_11, %c0_12], %12 {strides = array<i32>} : memref<256x128xf32, #tpu.memory_space<vmem>>, vector<256x128xf32>,
    } else {
    }
    %c0 = arith.constant 0 : index
    %c0_1 = arith.constant 0 : index
    %3 = vector.load %arg8[%c0, %c0_1] : memref<256x128xf32, #tpu.memory_space<vmem>>, vector<256x128xf32>
    %c0_2 = arith.constant 0 : index
    %c0_3 = arith.constant 0 : index
    %4 = vector.load %arg3[%c0_2, %c0_3] : memref<256x24xbf16, #tpu.memory_space<vmem>>, vector<256x24xbf16>
    %c0_4 = arith.constant 0 : index
    %c0_5 = arith.constant 0 : index
    %5 = vector.load %arg4[%c0_4, %c0_5] : memref<24x128xbf16, #tpu.memory_space<vmem>>, vector<24x128xbf16>
    %cst = arith.constant dense<0.000000e+00> : vector<256x128xf32>
    %6 = tpu.matmul %4, %5, %cst {dimension_numbers = #tpu.dot_dimension_numbers<[1], [0], [0], [1], [0, 0, 1, 1], [], []>} : vector<256x24xbf16>, vector<24x128xbf16>, vector<256x128xf32> -> vector<256x128xf32>
    %7 = arith.addf %3, %6 : vector<256x128xf32>
    %c0_6 = arith.constant 0 : index
    %c0_7 = arith.constant 0 : index
    %8 = vector.load %arg8[%c0_6, %c0_7] : memref<256x128xf32, #tpu.memory_space<vmem>>, vector<256x128xf32>
    tpu.vector_store %arg8[%c0_6, %c0_7], %7 {strides = array<i32>} : memref<256x128xf32, #tpu.memory_space<vmem>>, vector<256x128xf32>,
    %c0_i32_8 = arith.constant 0 : i32
    %9 = arith.cmpi eq, %arg2, %c0_i32_8 : i32
    %10 = arith.extui %9 : i1 to i32
    %c0_i32_9 = arith.constant 0 : i32
    %11 = arith.cmpi ne, %10, %c0_i32_9 : i32
    scf.if %11 {
      %c0_10 = arith.constant 0 : index
      %c0_11 = arith.constant 0 : index
      %12 = vector.load %arg8[%c0_10, %c0_11] : memref<256x128xf32, #tpu.memory_space<vmem>>, vector<256x128xf32>
      %c0_12 = arith.constant 0 : index
      %c0_13 = arith.constant 0 : index
      %13 = vector.load %arg5[%c0_12, %c0_13] : memref<1x128xf32, #tpu.memory_space<vmem>>, vector<1x128xf32>
      %14 = vector.broadcast %13 : vector<1x128xf32> to vector<256x128xf32>
      %15 = arith.mulf %12, %14 : vector<256x128xf32>
      %c0_14 = arith.constant 0 : index
      %c0_15 = arith.constant 0 : index
      %16 = vector.load %arg6[%c0_14, %c0_15] : memref<1x128xf32, #tpu.memory_space<vmem>>, vector<1x128xf32>
      %17 = vector.broadcast %16 : vector<1x128xf32> to vector<256x128xf32>
      %18 = arith.addf %15, %17 : vector<256x128xf32>
      %19 = math.absf %18 : vector<256x128xf32>
      %cst_16 = arith.constant 0.000000e+00 : f32
      %20 = vector.broadcast %cst_16 : f32 to vector<256x128xf32>
      %21 = arith.subf %20, %19 : vector<256x128xf32>
      %22 = math.exp %21 : vector<256x128xf32>
      %cst_17 = arith.constant 1.000000e+00 : f32
      %23 = vector.broadcast %cst_17 : f32 to vector<256x128xf32>
      %24 = arith.addf %23, %22 : vector<256x128xf32>
      %25 = tpu.reciprocal %24 {approx = true} : vector<256x128xf32> -> vector<256x128xf32>
      %cst_18 = arith.constant 0.000000e+00 : f32
      %26 = vector.broadcast %cst_18 : f32 to vector<256x128xf32>
      %27 = arith.cmpf oge, %18, %26 : vector<256x128xf32>
      %28 = arith.mulf %22, %25 : vector<256x128xf32>
      %29 = arith.select %27, %25, %28 : vector<256x128xi1>, vector<256x128xf32>
      %30 = arith.mulf %18, %29 : vector<256x128xf32>
      %31 = arith.truncf %30 : vector<256x128xf32> to vector<256x128xbf16>
      %c0_19 = arith.constant 0 : index
      %c0_20 = arith.constant 0 : index
      %32 = vector.load %arg7[%c0_19, %c0_20] : memref<256x128xbf16, #tpu.memory_space<vmem>>, vector<256x128xbf16>
      tpu.vector_store %arg7[%c0_19, %c0_20], %31 {strides = array<i32>} : memref<256x128xbf16, #tpu.memory_space<vmem>>, vector<256x128xbf16>,
    } else {
    }
    return
  }
  func.func @transform_0(%arg0: i32, %arg1: i32, %arg2: i32) -> (i32, i32) {
    %c0_i32 = arith.constant 0 : i32
    return %arg0, %arg2 : i32, i32
  }
  func.func @transform_1(%arg0: i32, %arg1: i32, %arg2: i32) -> (i32, i32) {
    %c0_i32 = arith.constant 0 : i32
    return %arg2, %arg1 : i32, i32
  }
  func.func @transform_2(%arg0: i32, %arg1: i32, %arg2: i32) -> (i32, i32) {
    %c0_i32 = arith.constant 0 : i32
    %c0_i32_0 = arith.constant 0 : i32
    return %c0_i32, %arg1 : i32, i32
  }
  func.func @transform_3(%arg0: i32, %arg1: i32, %arg2: i32) -> (i32, i32) {
    %c0_i32 = arith.constant 0 : i32
    %c0_i32_0 = arith.constant 0 : i32
    return %c0_i32, %arg1 : i32, i32
  }
  func.func @transform_4(%arg0: i32, %arg1: i32, %arg2: i32) -> (i32, i32) {
    %c0_i32 = arith.constant 0 : i32
    return %arg0, %arg1 : i32, i32
  }
}

module attributes {stable_mosaic.version = 11 : i64} {
  func.func @_fused_matmul_bn_silu_kernel(%arg0: i32, %arg1: i32, %arg2: i32, %arg3: memref<32x96xbf16, #tpu.memory_space<vmem>>, %arg4: memref<96x128xbf16, #tpu.memory_space<vmem>>, %arg5: memref<1x128xf32, #tpu.memory_space<vmem>>, %arg6: memref<1x128xf32, #tpu.memory_space<vmem>>, %arg7: memref<32x128xbf16, #tpu.memory_space<vmem>>, %arg8: memref<32x128xf32, #tpu.memory_space<vmem>>) attributes {dimension_semantics = [#tpu.dimension_semantics<parallel>, #tpu.dimension_semantics<parallel>, #tpu.dimension_semantics<arbitrary>], iteration_bounds = array<i64: 1, 1, 1>, scalar_prefetch = 0 : i64, scratch_operands = 1 : i64, tpu.core_type = #tpu.core_type<tc>, window_params = [{transform_indices = @transform_0, window_bounds = array<i64: 32, 96>}, {transform_indices = @transform_1, window_bounds = array<i64: 96, 128>}, {transform_indices = @transform_2, window_bounds = array<i64: 1, 128>}, {transform_indices = @transform_3, window_bounds = array<i64: 1, 128>}, {transform_indices = @transform_4, window_bounds = array<i64: 32, 128>}]} {
    %c0_i32 = arith.constant 0 : i32
    %0 = arith.cmpi eq, %arg2, %c0_i32 : i32
    %1 = arith.extui %0 : i1 to i32
    %c0_i32_0 = arith.constant 0 : i32
    %2 = arith.cmpi ne, %1, %c0_i32_0 : i32
    scf.if %2 {
      %cst_10 = arith.constant 0.000000e+00 : f32
      %12 = vector.broadcast %cst_10 : f32 to vector<32x128xf32>
      %c0_11 = arith.constant 0 : index
      %c0_12 = arith.constant 0 : index
      %13 = vector.load %arg8[%c0_11, %c0_12] : memref<32x128xf32, #tpu.memory_space<vmem>>, vector<32x128xf32>
      tpu.vector_store %arg8[%c0_11, %c0_12], %12 {strides = array<i32>} : memref<32x128xf32, #tpu.memory_space<vmem>>, vector<32x128xf32>,
    } else {
    }
    %c0 = arith.constant 0 : index
    %c0_1 = arith.constant 0 : index
    %3 = vector.load %arg8[%c0, %c0_1] : memref<32x128xf32, #tpu.memory_space<vmem>>, vector<32x128xf32>
    %c0_2 = arith.constant 0 : index
    %c0_3 = arith.constant 0 : index
    %4 = vector.load %arg3[%c0_2, %c0_3] : memref<32x96xbf16, #tpu.memory_space<vmem>>, vector<32x96xbf16>
    %c0_4 = arith.constant 0 : index
    %c0_5 = arith.constant 0 : index
    %5 = vector.load %arg4[%c0_4, %c0_5] : memref<96x128xbf16, #tpu.memory_space<vmem>>, vector<96x128xbf16>
    %cst = arith.constant dense<0.000000e+00> : vector<32x128xf32>
    %6 = tpu.matmul %4, %5, %cst {dimension_numbers = #tpu.dot_dimension_numbers<[1], [0], [0], [1], [0, 0, 1, 1], [], []>} : vector<32x96xbf16>, vector<96x128xbf16>, vector<32x128xf32> -> vector<32x128xf32>
    %7 = arith.addf %3, %6 : vector<32x128xf32>
    %c0_6 = arith.constant 0 : index
    %c0_7 = arith.constant 0 : index
    %8 = vector.load %arg8[%c0_6, %c0_7] : memref<32x128xf32, #tpu.memory_space<vmem>>, vector<32x128xf32>
    tpu.vector_store %arg8[%c0_6, %c0_7], %7 {strides = array<i32>} : memref<32x128xf32, #tpu.memory_space<vmem>>, vector<32x128xf32>,
    %c0_i32_8 = arith.constant 0 : i32
    %9 = arith.cmpi eq, %arg2, %c0_i32_8 : i32
    %10 = arith.extui %9 : i1 to i32
    %c0_i32_9 = arith.constant 0 : i32
    %11 = arith.cmpi ne, %10, %c0_i32_9 : i32
    scf.if %11 {
      %c0_10 = arith.constant 0 : index
      %c0_11 = arith.constant 0 : index
      %12 = vector.load %arg8[%c0_10, %c0_11] : memref<32x128xf32, #tpu.memory_space<vmem>>, vector<32x128xf32>
      %c0_12 = arith.constant 0 : index
      %c0_13 = arith.constant 0 : index
      %13 = vector.load %arg5[%c0_12, %c0_13] : memref<1x128xf32, #tpu.memory_space<vmem>>, vector<1x128xf32>
      %14 = vector.broadcast %13 : vector<1x128xf32> to vector<32x128xf32>
      %15 = arith.mulf %12, %14 : vector<32x128xf32>
      %c0_14 = arith.constant 0 : index
      %c0_15 = arith.constant 0 : index
      %16 = vector.load %arg6[%c0_14, %c0_15] : memref<1x128xf32, #tpu.memory_space<vmem>>, vector<1x128xf32>
      %17 = vector.broadcast %16 : vector<1x128xf32> to vector<32x128xf32>
      %18 = arith.addf %15, %17 : vector<32x128xf32>
      %19 = math.absf %18 : vector<32x128xf32>
      %cst_16 = arith.constant 0.000000e+00 : f32
      %20 = vector.broadcast %cst_16 : f32 to vector<32x128xf32>
      %21 = arith.subf %20, %19 : vector<32x128xf32>
      %22 = math.exp %21 : vector<32x128xf32>
      %cst_17 = arith.constant 1.000000e+00 : f32
      %23 = vector.broadcast %cst_17 : f32 to vector<32x128xf32>
      %24 = arith.addf %23, %22 : vector<32x128xf32>
      %25 = tpu.reciprocal %24 {approx = true} : vector<32x128xf32> -> vector<32x128xf32>
      %cst_18 = arith.constant 0.000000e+00 : f32
      %26 = vector.broadcast %cst_18 : f32 to vector<32x128xf32>
      %27 = arith.cmpf oge, %18, %26 : vector<32x128xf32>
      %28 = arith.mulf %22, %25 : vector<32x128xf32>
      %29 = arith.select %27, %25, %28 : vector<32x128xi1>, vector<32x128xf32>
      %30 = arith.mulf %18, %29 : vector<32x128xf32>
      %31 = arith.truncf %30 : vector<32x128xf32> to vector<32x128xbf16>
      %c0_19 = arith.constant 0 : index
      %c0_20 = arith.constant 0 : index
      %32 = vector.load %arg7[%c0_19, %c0_20] : memref<32x128xbf16, #tpu.memory_space<vmem>>, vector<32x128xbf16>
      tpu.vector_store %arg7[%c0_19, %c0_20], %31 {strides = array<i32>} : memref<32x128xbf16, #tpu.memory_space<vmem>>, vector<32x128xbf16>,
    } else {
    }
    return
  }
  func.func @transform_0(%arg0: i32, %arg1: i32, %arg2: i32) -> (i32, i32) {
    %c0_i32 = arith.constant 0 : i32
    return %arg0, %arg2 : i32, i32
  }
  func.func @transform_1(%arg0: i32, %arg1: i32, %arg2: i32) -> (i32, i32) {
    %c0_i32 = arith.constant 0 : i32
    return %arg2, %arg1 : i32, i32
  }
  func.func @transform_2(%arg0: i32, %arg1: i32, %arg2: i32) -> (i32, i32) {
    %c0_i32 = arith.constant 0 : i32
    %c0_i32_0 = arith.constant 0 : i32
    return %c0_i32, %arg1 : i32, i32
  }
  func.func @transform_3(%arg0: i32, %arg1: i32, %arg2: i32) -> (i32, i32) {
    %c0_i32 = arith.constant 0 : i32
    %c0_i32_0 = arith.constant 0 : i32
    return %c0_i32, %arg1 : i32, i32
  }
  func.func @transform_4(%arg0: i32, %arg1: i32, %arg2: i32) -> (i32, i32) {
    %c0_i32 = arith.constant 0 : i32
    return %arg0, %arg1 : i32, i32
  }
}

module attributes {stable_mosaic.version = 11 : i64} {
  func.func @_fused_matmul_bn_silu_kernel(%arg0: i32, %arg1: i32, %arg2: i32, %arg3: memref<32x288xbf16, #tpu.memory_space<vmem>>, %arg4: memref<288x128xbf16, #tpu.memory_space<vmem>>, %arg5: memref<1x128xf32, #tpu.memory_space<vmem>>, %arg6: memref<1x128xf32, #tpu.memory_space<vmem>>, %arg7: memref<32x128xbf16, #tpu.memory_space<vmem>>, %arg8: memref<32x128xf32, #tpu.memory_space<vmem>>) attributes {dimension_semantics = [#tpu.dimension_semantics<parallel>, #tpu.dimension_semantics<parallel>, #tpu.dimension_semantics<arbitrary>], iteration_bounds = array<i64: 1, 1, 1>, scalar_prefetch = 0 : i64, scratch_operands = 1 : i64, tpu.core_type = #tpu.core_type<tc>, window_params = [{transform_indices = @transform_0, window_bounds = array<i64: 32, 288>}, {transform_indices = @transform_1, window_bounds = array<i64: 288, 128>}, {transform_indices = @transform_2, window_bounds = array<i64: 1, 128>}, {transform_indices = @transform_3, window_bounds = array<i64: 1, 128>}, {transform_indices = @transform_4, window_bounds = array<i64: 32, 128>}]} {
    %c0_i32 = arith.constant 0 : i32
    %0 = arith.cmpi eq, %arg2, %c0_i32 : i32
    %1 = arith.extui %0 : i1 to i32
    %c0_i32_0 = arith.constant 0 : i32
    %2 = arith.cmpi ne, %1, %c0_i32_0 : i32
    scf.if %2 {
      %cst_10 = arith.constant 0.000000e+00 : f32
      %12 = vector.broadcast %cst_10 : f32 to vector<32x128xf32>
      %c0_11 = arith.constant 0 : index
      %c0_12 = arith.constant 0 : index
      %13 = vector.load %arg8[%c0_11, %c0_12] : memref<32x128xf32, #tpu.memory_space<vmem>>, vector<32x128xf32>
      tpu.vector_store %arg8[%c0_11, %c0_12], %12 {strides = array<i32>} : memref<32x128xf32, #tpu.memory_space<vmem>>, vector<32x128xf32>,
    } else {
    }
    %c0 = arith.constant 0 : index
    %c0_1 = arith.constant 0 : index
    %3 = vector.load %arg8[%c0, %c0_1] : memref<32x128xf32, #tpu.memory_space<vmem>>, vector<32x128xf32>
    %c0_2 = arith.constant 0 : index
    %c0_3 = arith.constant 0 : index
    %4 = vector.load %arg3[%c0_2, %c0_3] : memref<32x288xbf16, #tpu.memory_space<vmem>>, vector<32x288xbf16>
    %c0_4 = arith.constant 0 : index
    %c0_5 = arith.constant 0 : index
    %5 = vector.load %arg4[%c0_4, %c0_5] : memref<288x128xbf16, #tpu.memory_space<vmem>>, vector<288x128xbf16>
    %cst = arith.constant dense<0.000000e+00> : vector<32x128xf32>
    %6 = tpu.matmul %4, %5, %cst {dimension_numbers = #tpu.dot_dimension_numbers<[1], [0], [0], [1], [0, 0, 1, 1], [], []>} : vector<32x288xbf16>, vector<288x128xbf16>, vector<32x128xf32> -> vector<32x128xf32>
    %7 = arith.addf %3, %6 : vector<32x128xf32>
    %c0_6 = arith.constant 0 : index
    %c0_7 = arith.constant 0 : index
    %8 = vector.load %arg8[%c0_6, %c0_7] : memref<32x128xf32, #tpu.memory_space<vmem>>, vector<32x128xf32>
    tpu.vector_store %arg8[%c0_6, %c0_7], %7 {strides = array<i32>} : memref<32x128xf32, #tpu.memory_space<vmem>>, vector<32x128xf32>,
    %c0_i32_8 = arith.constant 0 : i32
    %9 = arith.cmpi eq, %arg2, %c0_i32_8 : i32
    %10 = arith.extui %9 : i1 to i32
    %c0_i32_9 = arith.constant 0 : i32
    %11 = arith.cmpi ne, %10, %c0_i32_9 : i32
    scf.if %11 {
      %c0_10 = arith.constant 0 : index
      %c0_11 = arith.constant 0 : index
      %12 = vector.load %arg8[%c0_10, %c0_11] : memref<32x128xf32, #tpu.memory_space<vmem>>, vector<32x128xf32>
      %c0_12 = arith.constant 0 : index
      %c0_13 = arith.constant 0 : index
      %13 = vector.load %arg5[%c0_12, %c0_13] : memref<1x128xf32, #tpu.memory_space<vmem>>, vector<1x128xf32>
      %14 = vector.broadcast %13 : vector<1x128xf32> to vector<32x128xf32>
      %15 = arith.mulf %12, %14 : vector<32x128xf32>
      %c0_14 = arith.constant 0 : index
      %c0_15 = arith.constant 0 : index
      %16 = vector.load %arg6[%c0_14, %c0_15] : memref<1x128xf32, #tpu.memory_space<vmem>>, vector<1x128xf32>
      %17 = vector.broadcast %16 : vector<1x128xf32> to vector<32x128xf32>
      %18 = arith.addf %15, %17 : vector<32x128xf32>
      %19 = math.absf %18 : vector<32x128xf32>
      %cst_16 = arith.constant 0.000000e+00 : f32
      %20 = vector.broadcast %cst_16 : f32 to vector<32x128xf32>
      %21 = arith.subf %20, %19 : vector<32x128xf32>
      %22 = math.exp %21 : vector<32x128xf32>
      %cst_17 = arith.constant 1.000000e+00 : f32
      %23 = vector.broadcast %cst_17 : f32 to vector<32x128xf32>
      %24 = arith.addf %23, %22 : vector<32x128xf32>
      %25 = tpu.reciprocal %24 {approx = true} : vector<32x128xf32> -> vector<32x128xf32>
      %cst_18 = arith.constant 0.000000e+00 : f32
      %26 = vector.broadcast %cst_18 : f32 to vector<32x128xf32>
      %27 = arith.cmpf oge, %18, %26 : vector<32x128xf32>
      %28 = arith.mulf %22, %25 : vector<32x128xf32>
      %29 = arith.select %27, %25, %28 : vector<32x128xi1>, vector<32x128xf32>
      %30 = arith.mulf %18, %29 : vector<32x128xf32>
      %31 = arith.truncf %30 : vector<32x128xf32> to vector<32x128xbf16>
      %c0_19 = arith.constant 0 : index
      %c0_20 = arith.constant 0 : index
      %32 = vector.load %arg7[%c0_19, %c0_20] : memref<32x128xbf16, #tpu.memory_space<vmem>>, vector<32x128xbf16>
      tpu.vector_store %arg7[%c0_19, %c0_20], %31 {strides = array<i32>} : memref<32x128xbf16, #tpu.memory_space<vmem>>, vector<32x128xbf16>,
    } else {
    }
    return
  }
  func.func @transform_0(%arg0: i32, %arg1: i32, %arg2: i32) -> (i32, i32) {
    %c0_i32 = arith.constant 0 : i32
    return %arg0, %arg2 : i32, i32
  }
  func.func @transform_1(%arg0: i32, %arg1: i32, %arg2: i32) -> (i32, i32) {
    %c0_i32 = arith.constant 0 : i32
    return %arg2, %arg1 : i32, i32
  }
  func.func @transform_2(%arg0: i32, %arg1: i32, %arg2: i32) -> (i32, i32) {
    %c0_i32 = arith.constant 0 : i32
    %c0_i32_0 = arith.constant 0 : i32
    return %c0_i32, %arg1 : i32, i32
  }
  func.func @transform_3(%arg0: i32, %arg1: i32, %arg2: i32) -> (i32, i32) {
    %c0_i32 = arith.constant 0 : i32
    %c0_i32_0 = arith.constant 0 : i32
    return %c0_i32, %arg1 : i32, i32
  }
  func.func @transform_4(%arg0: i32, %arg1: i32, %arg2: i32) -> (i32, i32) {
    %c0_i32 = arith.constant 0 : i32
    return %arg0, %arg1 : i32, i32
  }
}

</mosaic_0001>

<bundles_post_ra>
// kernel: fpn_forward.18
= control target key start
LH: loop header
LB: loop body
LE: loop exit
PB: predicated region body
PF: predicated region fallthrough
CT: control target
= control target key end

     0   :  { %vm158_vm0 = vcmask 785408   ;;  %s1107_s1 = inlined_call_operand.vmem [shape: bf16[96,128], index: 1, kind: input, shape index: {}]   ;;  %s1108_s0 = inlined_call_operand.vmem [shape: bf16[128,96], index: 0, kind: input, shape index: {}]   ;;  %s1109_s2 = inlined_call_operand.vmem [shape: f32[1,128], index: 2, kind: input, shape index: {}]   ;;  %s1110_s3 = inlined_call_operand.vmem [shape: f32[1,128], index: 3, kind: input, shape index: {}]   ;;  %s1111_s4 = inlined_call_operand.vmem [shape: bf16[128,128], index: 4, kind: output, shape index: {}]  }
   0x1   :  { %v778_v0 = vld [vmem:[%s1107_s1] sm:$0xff]   ;;  %v779_v1 = vld [vmem:[%s1107_s1 + $0x8] sm:$0xff]   ;;  %v780_v2 = vld [vmem:[%s1107_s1 + $0x10] sm:$0xff]  }
   0x2   :  { %738 = vmatprep.subr.bf16.mxu0 %v778_v0  ;;  %766 = vmatprep.subr.bf16.mxu1 %v778_v0  ;;  %v784_v3 = vld [vmem:[%s1108_s0] sm:$0xff]   ;;  %v781_v5 = vld [vmem:[%s1107_s1 + $0x18] sm:$0xff]   ;;  %v783_v7 = vld [vmem:[%s1107_s1 + $0x28] sm:$0xff]  }
   0x3   :  { %739 = vmatpush3.bf16.msra.mxu0 %v778_v0  ;;  %772 = vmatpush3.bf16.msra.mxu1 %v778_v0  ;;  %v785_v4 = vld [vmem:[%s1108_s0 + $0x20] sm:$0xff]   ;;  %v786_v8 = vld [vmem:[%s1108_s0 + $0x8] sm:$0xff]   ;;  %v788_v10 = vld [vmem:[%s1108_s0 + $0x10] sm:$0xff]  }
   0x4   :  { %740 = vmatprep.subr.bf16.mxu0 %v779_v1  ;;  %767 = vmatprep.subr.bf16.mxu1 %v779_v1  ;;  %v782_v6 = vld [vmem:[%s1107_s1 + $0x20] sm:$0xff]   ;;  %v787_v9 = vld [vmem:[%s1108_s0 + $0x28] sm:$0xff]   ;;  %v789_v11 = vld [vmem:[%s1108_s0 + $0x30] sm:$0xff]  }
   0x5   :  { %750 = vmatprep.mubr.msk.bf16.mxu0 %vm158_vm0, %v784_v3  ;;  %758 = vmatprep.mubr.msk.bf16.mxu1 %vm158_vm0, %v785_v4  ;;  %v790_v12 = vld [vmem:[%s1108_s0 + $0x18] sm:$0xff]   ;;  %v934_v14 = vld [vmem:[%s1109_s2] ss:$0 sm:$0xff] }
   0x6   :  { %v791_v13 = vld [vmem:[%s1108_s0 + $0x38] sm:$0xff]   ;;  %v939_v16 = vld [vmem:[%s1110_s3] ss:$0 sm:$0xff] }
   0x7   :  { %741 = vmatpush3.bf16.msra.mxu0 %v779_v1  ;;  %773 = vmatpush3.bf16.msra.mxu1 %v779_v1 }
   0x8   :  { %742 = vmatprep.subr.bf16.mxu0 %v780_v2  ;;  %768 = vmatprep.subr.bf16.mxu1 %v780_v2 }
   0xb   :  { %743 = vmatpush3.bf16.msra.mxu0 %v780_v2  ;;  %774 = vmatpush3.bf16.msra.mxu1 %v780_v2 }
   0xc   :  { %744 = vmatprep.subr.bf16.mxu0 %v781_v5  ;;  %769 = vmatprep.subr.bf16.mxu1 %v781_v5 }
   0xf   :  { %745 = vmatpush3.bf16.msra.mxu0 %v781_v5  ;;  %775 = vmatpush3.bf16.msra.mxu1 %v781_v5 }
  0x10   :  { %746 = vmatprep.subr.bf16.mxu0 %v782_v6  ;;  %770 = vmatprep.subr.bf16.mxu1 %v782_v6 }
  0x13   :  { %747 = vmatpush3.bf16.msra.mxu0 %v782_v6  ;;  %776 = vmatpush3.bf16.msra.mxu1 %v782_v6 }
  0x14   :  { %748 = vmatprep.subr.bf16.mxu0 %v783_v7  ;;  %771 = vmatprep.subr.bf16.mxu1 %v783_v7 }
  0x17   :  { %749 = vmatpush3.bf16.msra.mxu0 %v783_v7  ;;  %777 = vmatpush3.bf16.msra.mxu1 %v783_v7 }
  0x1a   :  { %751 = vmatmul.mubr.msk.bf16.vlgmr.msra.gmra.mrb[0].mxu0 %vm158_vm0, %v786_v8  ;;  %759 = vmatmul.mubr.msk.bf16.vlgmr.msra.gmra.mrb[0].mxu1 %vm158_vm0, %v787_v9 }
  0x1b   :  { %754 = vmatprep.mubr.msk.bf16.mxu0 %vm158_vm0, %v788_v10  ;;  %762 = vmatprep.mubr.msk.bf16.mxu1 %vm158_vm0, %v789_v11 }
  0x22   :  { %755 = vmatmul.mubr.msk.bf16.gmra.mrb[4].mxu0 %vm158_vm0, %v790_v12  ;;  %763 = vmatmul.mubr.msk.bf16.gmra.mrb[4].mxu1 %vm158_vm0, %v791_v13 }
  0xed   :  { %v752_v15 = vpop.f32.mrb[0].mxu0  ;;  %v760_v17 = vpop.f32.mrb[0].mxu1 }
  0xee   :  { %v340_v18 = vmul.f32 %v752_v15, %v934_v14  ;;  %v348_v19 = vmul.f32 %v760_v17, %v934_v14  ;;  %v217_v20 = vpop.f32.mrb[1].mxu0  ;;  %v249_v21 = vpop.f32.mrb[1].mxu1 }
  0xef   :  { %v338_v22 = vmul.f32 %v934_v14, %v217_v20  ;;  %v346_v23 = vmul.f32 %v934_v14, %v249_v21  ;;  %v753_v24 = vpop.f32.mrb[2].mxu0  ;;  %v761_v25 = vpop.f32.mrb[2].mxu1 }
  0xf0   :  { %v946_v26 = vadd.f32 %v939_v16, %v340_v18  ;;  %v949_v27 = vadd.f32 %v939_v16, %v348_v19  ;;  %v341_v28 = vmul.f32 %v753_v24, %v934_v14  ;;  %v349_v29 = vmul.f32 %v761_v25, %v934_v14  ;;  %v220_v30 = vpop.f32.mrb[3].mxu0  ;;  %v252_v31 = vpop.f32.mrb[3].mxu1 }
  0xf1   :  { %v954_v32 = vadd.f32 %v939_v16, %v338_v22  ;;  %v957_v33 = vadd.f32 %v939_v16, %v346_v23  ;;  %v339_v34 = vmul.f32 %v934_v14, %v220_v30  ;;  %v347_v35 = vmul.f32 %v934_v14, %v252_v31 }
  0xf2   :  { %v379_v36 = vand.u32 2147483647, %v946_v26  ;;  %v387_v37 = vand.u32 2147483647, %v949_v27  ;;  %v966_v42 = vadd.f32 %v939_v16, %v341_v28  ;;  %v969_v43 = vadd.f32 %v939_v16, %v349_v29 }
  0xf3   :  { %v377_v38 = vand.u32 2147483647, %v954_v32  ;;  %v385_v39 = vand.u32 2147483647, %v957_v33  ;;  %v972_v46 = vadd.f32 %v939_v16, %v339_v34  ;;  %v975_v47 = vadd.f32 %v939_v16, %v347_v35 }
  0xf4   :  { %v395_v40 = vsub.f32 0.0, %v379_v36  ;;  %v403_v41 = vsub.f32 0.0, %v387_v37  ;;  %v380_v52 = vand.u32 2147483647, %v966_v42  ;;  %v388_v57 = vand.u32 2147483647, %v969_v43 }
  0xf5   :  { %v393_v44 = vsub.f32 0.0, %v377_v38  ;;  %v401_v45 = vsub.f32 0.0, %v385_v39  ;;  %v756_v48 = vpop.f32.mrb[4].mxu0  ;;  %v764_v49 = vpop.f32.mrb[4].mxu1  ;;  %v378_v58 = vand.u32 2147483647, %v972_v46 }
  0xf6   :  { %v413_v50 = vmul.f32 1.442695, %v395_v40  ;;  %v429_v51 = vmul.f32 1.442695, %v403_v41  ;;  %v344_v55 = vmul.f32 %v756_v48, %v934_v14  ;;  %v396_v56 = vsub.f32 0.0, %v380_v52  ;;  %v233_v59 = vpop.f32.mrb[5].mxu0 }
  0xf7   :  { %v409_v53 = vmul.f32 1.442695, %v393_v44  ;;  %v425_v54 = vmul.f32 1.442695, %v401_v45  ;;  %v386_v60 = vand.u32 2147483647, %v975_v47  ;;  %v352_v6 = vmul.f32 %v764_v49, %v934_v14 }
  0xf8   :  { %792 = vpow2.f32 %v413_v50  ;;  %v265_v61 = vpop.f32.mrb[5].mxu1  ;;  %v757_v62 = vpop.f32.mrb[6].mxu0  ;;  %v415_v63 = vmul.f32 1.442695, %v396_v56  ;;  %v404_v0 = vsub.f32 0.0, %v388_v57  ;;  %v394_v1 = vsub.f32 0.0, %v378_v58 }
  0xf9   :  { %794 = vpow2.f32 %v429_v51  ;;  %v765_v2 = vpop.f32.mrb[6].mxu1  ;;  %v236_v3 = vpop.f32.mrb[7].mxu0  ;;  %v402_v4 = vsub.f32 0.0, %v386_v60  ;;  %v983_v5 = vadd.f32 %v939_v16, %v344_v55  ;;  %v342_v10 = vmul.f32 %v934_v14, %v233_v59 }
  0xfa   :  { %796 = vpow2.f32 %v409_v53  ;;  %v268_v7 = vpop.f32.mrb[7].mxu1  ;;  %v431_v8 = vmul.f32 1.442695, %v404_v0  ;;  %v411_v9 = vmul.f32 1.442695, %v394_v1  ;;  %v989_v13 = vadd.f32 %v939_v16, %v352_v6 }
  0xfb   :  { %798 = vpow2.f32 %v425_v54  ;;  %v427_v11 = vmul.f32 1.442695, %v402_v4  ;;  %v383_v12 = vand.u32 2147483647, %v983_v5  ;;  %v992_v15 = vadd.f32 %v939_v16, %v342_v10 }
  0xfc   :  { %800 = vpow2.f32 %v415_v63  ;;  %v350_v17 = vmul.f32 %v934_v14, %v265_v61  ;;  %v345_v18 = vmul.f32 %v757_v62, %v934_v14  ;;  %v391_v20 = vand.u32 2147483647, %v989_v13 }
  0xfd   :  { %802 = vpow2.f32 %v431_v8  ;;  %v399_v19 = vsub.f32 0.0, %v383_v12  ;;  %v381_v21 = vand.u32 2147483647, %v992_v15  ;;  %v353_v28 = vmul.f32 %v765_v2, %v934_v14 }
  0xfe   :  { %804 = vpow2.f32 %v411_v9  ;;  %v999_v22 = vadd.f32 %v939_v16, %v350_v17  ;;  %v407_v24 = vsub.f32 0.0, %v391_v20  ;;  %v1002_v25 = vadd.f32 %v939_v16, %v345_v18 }
  0xff   :  { %806 = vpow2.f32 %v427_v11  ;;  %v421_v23 = vmul.f32 1.442695, %v399_v19  ;;  %v343_v31 = vmul.f32 %v934_v14, %v236_v3  ;;  %v397_v39 = vsub.f32 0.0, %v381_v21 }
 0x100   :  { %v389_v30 = vand.u32 2147483647, %v999_v22  ;;  %v437_v38 = vmul.f32 1.442695, %v407_v24  ;;  %v384_v44 = vand.u32 2147483647, %v1002_v25  ;;  %v1014_v45 = vadd.f32 %v939_v16, %v353_v28 }
 0x101   :  { %808 = vpow2.f32 %v421_v23  ;;  %v1018_v51 = vadd.f32 %v939_v16, %v343_v31  ;;  %v417_v55 = vmul.f32 1.442695, %v397_v39  ;;  %v351_v60 = vmul.f32 %v934_v14, %v268_v7 }
 0x102   :  { %v793_v29 = vpop.eup %792  ;;  %v405_v50 = vsub.f32 0.0, %v389_v30  ;;  %v392_v53 = vand.u32 2147483647, %v1014_v45  ;;  %v400_v59 = vsub.f32 0.0, %v384_v44  ;;  %vm475_vm1 = vcmp.ge.f32.partialorder %v946_v26, 0.0 }
 0x103   :  { %v795_v34 = vpop.eup %794  ;;  %v443_v35 = vadd.f32 1.0, %v793_v29  ;;  %v382_v56 = vand.u32 2147483647, %v1018_v51  ;;  %v1027_v3 = vadd.f32 %v939_v16, %v351_v60  ;;  %vm483_vm2 = vcmp.ge.f32.partialorder %v949_v27, 0.0 }
 0x104   :  { %v1007_v36 = vpop.eup %796  ;;  %v451_v37 = vadd.f32 1.0, %v795_v34  ;;  %v433_v63 = vmul.f32 1.442695, %v405_v50  ;;  %v408_v0 = vsub.f32 0.0, %v392_v53  ;;  %v423_v4 = vmul.f32 1.442695, %v400_v59 }
 0x105   :  { %v1009_v40 = vpop.eup %798  ;;  %810 = vrcp.f32 %v443_v35  ;;  %v441_v41 = vadd.f32 1.0, %v1007_v36  ;;  %v398_v2 = vsub.f32 0.0, %v382_v56  ;;  %v390_v6 = vand.u32 2147483647, %v1027_v3 }
 0x106   :  { %v801_v48 = vpop.eup %800  ;;  %812 = vrcp.f32 %v451_v37  ;;  %v449_v49 = vadd.f32 1.0, %v1009_v40  ;;  %v439_v14 = vmul.f32 1.442695, %v408_v0  ;;  %vm473_vm3 = vcmp.ge.f32.partialorder %v954_v32, 0.0 }
 0x107   :  { %814 = vrcp.f32 %v441_v41  ;;  %v444_v52 = vadd.f32 1.0, %v801_v48  ;;  %v803_v54 = vpop.eup %802  ;;  %v419_v9 = vmul.f32 1.442695, %v398_v2  ;;  %v406_v10 = vsub.f32 0.0, %v390_v6 }
 0x108   :  { %816 = vrcp.f32 %v449_v49  ;;  %v805_v57 = vpop.eup %804  ;;  %v452_v58 = vadd.f32 1.0, %v803_v54  ;;  %vm481_vm4 = vcmp.ge.f32.partialorder %v957_v33, 0.0  ;;  %vm476_vm5 = vcmp.ge.f32.partialorder %v966_v42, 0.0 }
 0x109   :  { %818 = vrcp.f32 %v444_v52  ;;  %v1023_v61 = vpop.eup %806  ;;  %v442_v62 = vadd.f32 1.0, %v805_v57  ;;  %v435_v18 = vmul.f32 1.442695, %v406_v10  ;;  %vm484_vm6 = vcmp.ge.f32.partialorder %v969_v43, 0.0 }
 0x10a   :  { %820 = vpow2.f32 %v437_v38  ;;  %v450_v1 = vadd.f32 1.0, %v1023_v61  ;;  %vm474_vm7 = vcmp.ge.f32.partialorder %v972_v46, 0.0  ;;  %vm482_vm8 = vcmp.ge.f32.partialorder %v975_v47, 0.0 }
 0x10b   :  { %822 = vrcp.f32 %v452_v58  ;;  %v1030_v8 = vpop.eup %808  ;;  %vm479_vm9 = vcmp.ge.f32.partialorder %v983_v5, 0.0  ;;  %vm487_vm10 = vcmp.ge.f32.partialorder %v989_v13, 0.0  ;;  %vm477_vm11 = vcmp.ge.f32.partialorder %v992_v15, 0.0 }
 0x10c   :  { %824 = vrcp.f32 %v442_v62  ;;  %v447_v20 = vadd.f32 1.0, %v1030_v8  ;;  %vm485_vm12 = vcmp.ge.f32.partialorder %v999_v22, 0.0  ;;  %vm480_vm13 = vcmp.ge.f32.partialorder %v1002_v25, 0.0 }
 0x10d   :  { %826 = vrcp.f32 %v450_v1  ;;  %vm488_vm14 = vcmp.ge.f32.partialorder %v1014_v45, 0.0  ;;  %vm478_vm15 = vcmp.ge.f32.partialorder %v1018_v51, 0.0  ;;  %vm486_vm0 = vcmp.ge.f32.partialorder %v1027_v3, 0.0 }
 0x10e   :  { %828 = vpow2.f32 %v417_v55 }
 0x10f   :  { %v811_v7 = vpop.eup %810  ;;  %830 = vpow2.f32 %v433_v63 }
 0x110   :  { %v813_v11 = vpop.eup %812  ;;  %v491_v12 = vmul.f32 %v811_v7, %v793_v29  ;;  %832 = vpow2.f32 %v423_v4 }
 0x111   :  { %v815_v17 = vpop.eup %814  ;;  %v499_v16 = vmul.f32 %v813_v11, %v795_v34  ;;  %834 = vpow2.f32 %v439_v14 }
 0x112   :  { %v817_v19 = vpop.eup %816  ;;  %v507_v23 = vsel %vm475_vm1, %v811_v7, %v491_v12  ;;  %v489_v24 = vmul.f32 %v815_v17, %v1007_v36  ;;  %836 = vpow2.f32 %v419_v9 }
 0x113   :  { %v819_v21 = vpop.eup %818  ;;  %v515_v29 = vsel %vm483_vm2, %v813_v11, %v499_v16  ;;  %v497_v30 = vmul.f32 %v817_v19, %v1009_v40  ;;  %838 = vpow2.f32 %v435_v18  ;;  %v523_v37 = vmul.f32 %v507_v23, %v946_v26 }
 0x114   :  { %v1039_v28 = vpop.eup %820  ;;  %v492_v31 = vmul.f32 %v819_v21, %v801_v48  ;;  %840 = vrcp.f32 %v447_v20  ;;  %v531_v40 = vmul.f32 %v515_v29, %v949_v27  ;;  %v505_v44 = vsel %vm473_vm3, %v815_v17, %v489_v24 }
 0x115   :  { %v823_v34 = vpop.eup %822  ;;  %v455_v35 = vadd.f32 1.0, %v1039_v28  ;;  %v513_v52 = vsel %vm481_vm4, %v817_v19, %v497_v30 }
 0x116   :  { %v825_v36 = vpop.eup %824  ;;  %v508_v38 = vsel %vm476_vm5, %v819_v21, %v492_v31  ;;  %v500_v39 = vmul.f32 %v823_v34, %v803_v54 }
 0x117   :  { %v827_v41 = vpop.eup %826  ;;  %v524_v48 = vmul.f32 %v508_v38, %v966_v42  ;;  %v490_v49 = vmul.f32 %v825_v36, %v805_v57  ;;  %842 = vrcp.f32 %v455_v35  ;;  %v521_v42 = vmul.f32 %v505_v44, %v954_v32 }
 0x118   :  { %v829_v50 = vpop.eup %828  ;;  %v516_v53 = vsel %vm484_vm6, %v823_v34, %v500_v39  ;;  %v498_v26 = vmul.f32 %v827_v41, %v1023_v61  ;;  %v529_v61 = vmul.f32 %v513_v52, %v957_v33 }
 0x119   :  { %v831_v54 = vpop.eup %830  ;;  %v685_v55 = vpack.c.bf16 %v524_v48, %v523_v37  ;;  %v532_v27 = vmul.f32 %v516_v53, %v969_v43  ;;  %v506_v56 = vsel %vm474_vm7, %v825_v36, %v490_v49  ;;  %v445_v58 = vadd.f32 1.0, %v829_v50 }
 0x11a   :  { %v522_v57 = vmul.f32 %v506_v56, %v972_v46  ;;  %v514_v59 = vsel %vm482_vm8, %v827_v41, %v498_v26  ;;  %v453_v60 = vadd.f32 1.0, %v831_v54  ;;  %v833_v62 = vpop.eup %832 }
 0x11b   :  { %717 = vst [vmem:[%s1111_s4 + $0x8] sm:$0xff] %v685_v55   ;;  %v705_v43 = vpack.c.bf16 %v532_v27, %v531_v40  ;;  %v530_v63 = vmul.f32 %v514_v59, %v975_v47  ;;  %844 = vrcp.f32 %v445_v58  ;;  %v835_v0 = vpop.eup %834  ;;  %v448_v32 = vadd.f32 1.0, %v833_v62 }
 0x11c   :  { %v680_v1 = vpack.c.bf16 %v522_v57, %v521_v42  ;;  %846 = vrcp.f32 %v453_v60  ;;  %v837_v46 = vpop.eup %836  ;;  %v456_v4 = vadd.f32 1.0, %v835_v0 }
 0x11d   :  { %721 = vst [vmem:[%s1111_s4 + $0x28] sm:$0xff] %v705_v43   ;;  %v700_v2 = vpack.c.bf16 %v530_v63, %v529_v61  ;;  %v839_v33 = vpop.eup %838  ;;  %848 = vrcp.f32 %v448_v32  ;;  %v446_v6 = vadd.f32 1.0, %v837_v46 }
 0x11e   :  { %681 = vst [vmem:[%s1111_s4] sm:$0xff] %v680_v1   ;;  %850 = vrcp.f32 %v456_v4  ;;  %v454_v47 = vadd.f32 1.0, %v839_v33  ;;  %v841_v14 = vpop.eup %840 }
 0x11f   :  { %720 = vst [vmem:[%s1111_s4 + $0x20] sm:$0xff] %v700_v2   ;;  %852 = vrcp.f32 %v446_v6  ;;  %v495_v9 = vmul.f32 %v841_v14, %v1030_v8 }
 0x120   :  { %854 = vrcp.f32 %v454_v47 }
 0x121   :  { %v843_v7 = vpop.eup %842  ;;  %v511_v18 = vsel %vm479_vm9, %v841_v14, %v495_v9 }
 0x122   :  { %v503_v12 = vmul.f32 %v843_v7, %v1039_v28  ;;  %v527_v29 = vmul.f32 %v511_v18, %v983_v5 }
 0x124   :  { %v519_v23 = vsel %vm487_vm10, %v843_v7, %v503_v12 }
 0x125   :  { %v845_v10 = vpop.eup %844  ;;  %v535_v39 = vmul.f32 %v519_v23, %v989_v13 }
 0x126   :  { %v847_v11 = vpop.eup %846  ;;  %v493_v17 = vmul.f32 %v845_v10, %v829_v50 }
 0x127   :  { %v849_v16 = vpop.eup %848  ;;  %v501_v19 = vmul.f32 %v847_v11, %v831_v54 }
 0x128   :  { %v851_v20 = vpop.eup %850  ;;  %v496_v8 = vmul.f32 %v849_v16, %v833_v62  ;;  %v509_v30 = vsel %vm477_vm11, %v845_v10, %v493_v17 }
 0x129   :  { %v853_v21 = vpop.eup %852  ;;  %v504_v24 = vmul.f32 %v851_v20, %v835_v0  ;;  %v517_v35 = vsel %vm485_vm12, %v847_v11, %v501_v19  ;;  %v525_v44 = vmul.f32 %v509_v30, %v992_v15 }
 0x12a   :  { %v855_v28 = vpop.eup %854  ;;  %v512_v31 = vsel %vm480_vm13, %v849_v16, %v496_v8  ;;  %v494_v34 = vmul.f32 %v853_v21, %v837_v46  ;;  %v533_v50 = vmul.f32 %v517_v35, %v999_v22 }
 0x12b   :  { %v528_v36 = vmul.f32 %v512_v31, %v1002_v25  ;;  %v520_v37 = vsel %vm488_vm14, %v851_v20, %v504_v24  ;;  %v502_v38 = vmul.f32 %v855_v28, %v839_v33 }
 0x12c   :  { %v536_v41 = vmul.f32 %v520_v37, %v1014_v45  ;;  %v510_v40 = vsel %vm478_vm15, %v853_v21, %v494_v34 }
 0x12d   :  { %v695_v48 = vpack.c.bf16 %v528_v36, %v527_v29  ;;  %v526_v5 = vmul.f32 %v510_v40, %v1018_v51  ;;  %v518_v49 = vsel %vm486_vm0, %v855_v28, %v502_v38 }
 0x12e   :  { %v715_v52 = vpack.c.bf16 %v536_v41, %v535_v39  ;;  %v534_v25 = vmul.f32 %v518_v49, %v1027_v3 }
 0x12f   :  { %719 = vst [vmem:[%s1111_s4 + $0x18] sm:$0xff] %v695_v48   ;;  %v690_v13 = vpack.c.bf16 %v526_v5, %v525_v44 }
 0x130   :  { %723 = vst [vmem:[%s1111_s4 + $0x38] sm:$0xff] %v715_v52   ;;  %v710_v45 = vpack.c.bf16 %v534_v25, %v533_v50 }
 0x131   :  { %718 = vst [vmem:[%s1111_s4 + $0x10] sm:$0xff] %v690_v13  }
 0x132   :  { %722 = vst [vmem:[%s1111_s4 + $0x30] sm:$0xff] %v710_v45  }

// kernel: fpn_forward.19
= control target key start
LH: loop header
LB: loop body
LE: loop exit
PB: predicated region body
PF: predicated region fallthrough
CT: control target
= control target key end

     0   :  { %v907_v0 = vmov 0   ;;  %vm214_vm0 = vcmask 130048   ;;  %s1202_s1 = inlined_call_operand.vmem [shape: bf16[144,128], index: 1, kind: input, shape index: {}]   ;;  %s1203_s0 = inlined_call_operand.vmem [shape: bf16[128,144], index: 0, kind: input, shape index: {}]   ;;  %s1204_s2 = inlined_call_operand.vmem [shape: f32[1,128], index: 2, kind: input, shape index: {}]   ;;  %s1205_s3 = inlined_call_operand.vmem [shape: f32[1,128], index: 3, kind: input, shape index: {}]   ;;  %s1206_s4 = inlined_call_operand.vmem [shape: bf16[128,128], index: 4, kind: output, shape index: {}]  }
   0x1   :  { %239 = vmatprep.subr.bf16.mxu0 %v907_v0  ;;  %791 = vmatprep.subr.bf16.mxu1 %v907_v0  ;;  %v810_v1 = vld [vmem:[%s1202_s1] sm:$0xff]   ;;  %v811_v2 = vld [vmem:[%s1202_s1 + $0x8] sm:$0xff]   ;;  %v812_v3 = vld [vmem:[%s1202_s1 + $0x10] sm:$0xff]  }
   0x2   :  { %240 = vmatpush1.bf16.msra.mxu0 %v810_v1  ;;  %800 = vmatpush1.bf16.msra.mxu1 %v810_v1  ;;  %v813_v4 = vld [vmem:[%s1202_s1 + $0x18] sm:$0xff]   ;;  %v821_v5 = vld [vmem:[%s1203_s0 + $0x4] ss:$8 sps:$4 sm:$0xff]   ;;  %v816_v9 = vld [vmem:[%s1202_s1 + $0x30] sm:$0xff]  }
   0x3   :  { %241 = vmatprep.subr.bf16.mxu0 %v907_v0  ;;  %792 = vmatprep.subr.bf16.mxu1 %v907_v0  ;;  %v824_v6 = vld [vmem:[%s1203_s0 + $0x44] ss:$8 sps:$4 sm:$0xff]   ;;  %v817_v10 = vld [vmem:[%s1202_s1 + $0x38] sm:$0xff]   ;;  %v819_v12 = vld [vmem:[%s1203_s0] ss:$8 sps:$4 sm:$0xff]  }
   0x4   :  { %702 = vmatprep.mubr.msk.bf16.mxu0 %vm214_vm0, %v821_v5  ;;  %706 = vmatprep.mubr.msk.bf16.mxu1 %vm214_vm0, %v824_v6  ;;  %v814_v7 = vld [vmem:[%s1202_s1 + $0x20] sm:$0xff]   ;;  %v815_v8 = vld [vmem:[%s1202_s1 + $0x28] sm:$0xff]   ;;  %v825_v14 = vld [vmem:[%s1203_s0 + $0x14] ss:$8 sps:$4 sm:$0xff]  }
   0x5   :  { %v818_v11 = vld [vmem:[%s1202_s1 + $0x40] sm:$0xff]   ;;  %v827_v15 = vld [vmem:[%s1203_s0 + $0x54] ss:$8 sps:$4 sm:$0xff]   ;;  %v829_v16 = vld [vmem:[%s1203_s0 + $0x10] ss:$8 sps:$4 sm:$0xff]  }
   0x6   :  { %242 = vmatpush1.bf16.msra.mxu0 %v811_v2  ;;  %801 = vmatpush1.bf16.msra.mxu1 %v811_v2  ;;  %v822_v13 = vld [vmem:[%s1203_s0 + $0x40] ss:$8 sps:$4 sm:$0xff]   ;;  %v830_v17 = vld [vmem:[%s1203_s0 + $0x50] ss:$8 sps:$4 sm:$0xff]   ;;  %v831_v18 = vld [vmem:[%s1203_s0 + $0x24] ss:$8 sps:$4 sm:$0xff]  }
   0x7   :  { %243 = vmatprep.subr.bf16.mxu0 %v907_v0  ;;  %793 = vmatprep.subr.bf16.mxu1 %v907_v0  ;;  %v833_v19 = vld [vmem:[%s1203_s0 + $0x64] ss:$8 sps:$4 sm:$0xff]   ;;  %v835_v20 = vld [vmem:[%s1203_s0 + $0x20] ss:$8 sps:$4 sm:$0xff]   ;;  %v837_v22 = vld [vmem:[%s1203_s0 + $0x34] ss:$8 sps:$4 sm:$0xff]  }
   0x8   :  { %v836_v21 = vld [vmem:[%s1203_s0 + $0x60] ss:$8 sps:$4 sm:$0xff]   ;;  %v839_v23 = vld [vmem:[%s1203_s0 + $0x74] ss:$8 sps:$4 sm:$0xff]   ;;  %v841_v24 = vld [vmem:[%s1203_s0 + $0x30] ss:$8 sps:$4 sm:$0xff]  }
   0x9   :  { %v842_v25 = vld [vmem:[%s1203_s0 + $0x70] ss:$8 sps:$4 sm:$0xff]   ;;  %v1019_v26 = vld [vmem:[%s1204_s2] ss:$0 sm:$0xff] }
   0xa   :  { %244 = vmatpush1.bf16.msra.mxu0 %v812_v3  ;;  %802 = vmatpush1.bf16.msra.mxu1 %v812_v3  ;;  %v1024_v28 = vld [vmem:[%s1205_s3] ss:$0 sm:$0xff] }
   0xb   :  { %245 = vmatprep.subr.bf16.mxu0 %v907_v0  ;;  %794 = vmatprep.subr.bf16.mxu1 %v907_v0 }
   0xe   :  { %246 = vmatpush1.bf16.msra.mxu0 %v813_v4  ;;  %803 = vmatpush1.bf16.msra.mxu1 %v813_v4 }
   0xf   :  { %247 = vmatprep.subr.bf16.mxu0 %v907_v0  ;;  %795 = vmatprep.subr.bf16.mxu1 %v907_v0 }
  0x12   :  { %248 = vmatpush1.bf16.msra.mxu0 %v814_v7  ;;  %804 = vmatpush1.bf16.msra.mxu1 %v814_v7 }
  0x13   :  { %249 = vmatprep.subr.bf16.mxu0 %v907_v0  ;;  %796 = vmatprep.subr.bf16.mxu1 %v907_v0 }
  0x16   :  { %250 = vmatpush1.bf16.msra.mxu0 %v815_v8  ;;  %805 = vmatpush1.bf16.msra.mxu1 %v815_v8 }
  0x17   :  { %251 = vmatprep.subr.bf16.mxu0 %v907_v0  ;;  %797 = vmatprep.subr.bf16.mxu1 %v907_v0 }
  0x1a   :  { %252 = vmatpush1.bf16.msra.mxu0 %v816_v9  ;;  %806 = vmatpush1.bf16.msra.mxu1 %v816_v9 }
  0x1b   :  { %253 = vmatprep.subr.bf16.mxu0 %v907_v0  ;;  %798 = vmatprep.subr.bf16.mxu1 %v907_v0 }
  0x1e   :  { %254 = vmatpush1.bf16.msra.mxu0 %v817_v10  ;;  %807 = vmatpush1.bf16.msra.mxu1 %v817_v10 }
  0x1f   :  { %255 = vmatprep.subr.bf16.mxu0 %v907_v0  ;;  %799 = vmatprep.subr.bf16.mxu1 %v907_v0 }
  0x22   :  { %256 = vmatpush1.bf16.msra.mxu0 %v818_v11  ;;  %808 = vmatpush1.bf16.msra.mxu1 %v818_v11 }
  0x25   :  { %272 = vmatmul.mubr.bf16.vlgmr.msra.gmra.mrb[0].mxu0 %v819_v12  ;;  %304 = vmatmul.mubr.bf16.vlgmr.msra.gmra.mrb[0].mxu1 %v822_v13 }
  0x26   :  { %703 = vmatprep.mubr.msk.bf16.mxu0 %vm214_vm0, %v825_v14  ;;  %707 = vmatprep.mubr.msk.bf16.mxu1 %vm214_vm0, %v827_v15 }
  0x2d   :  { %280 = vmatmul.mubr.bf16.gmra.mrb[4].mxu0 %v829_v16  ;;  %312 = vmatmul.mubr.bf16.gmra.mrb[4].mxu1 %v830_v17 }
  0x2e   :  { %704 = vmatprep.mubr.msk.bf16.mxu0 %vm214_vm0, %v831_v18  ;;  %708 = vmatprep.mubr.msk.bf16.mxu1 %vm214_vm0, %v833_v19 }
  0x35   :  { %288 = vmatmul.mubr.bf16.gmra.mrb[8].mxu0 %v835_v20  ;;  %320 = vmatmul.mubr.bf16.gmra.mrb[8].mxu1 %v836_v21 }
  0x36   :  { %705 = vmatprep.mubr.msk.bf16.mxu0 %vm214_vm0, %v837_v22  ;;  %709 = vmatprep.mubr.msk.bf16.mxu1 %vm214_vm0, %v839_v23 }
  0x3d   :  { %296 = vmatmul.mubr.bf16.gmra.mrb[12].mxu0 %v841_v24  ;;  %328 = vmatmul.mubr.bf16.gmra.mrb[12].mxu1 %v842_v25 }
  0xf8   :  { %v273_v27 = vpop.f32.mrb[0].mxu0  ;;  %v305_v29 = vpop.f32.mrb[0].mxu1 }
  0xf9   :  { %v394_v30 = vmul.f32 %v1019_v26, %v273_v27  ;;  %v402_v31 = vmul.f32 %v1019_v26, %v305_v29  ;;  %v275_v32 = vpop.f32.mrb[1].mxu0  ;;  %v307_v33 = vpop.f32.mrb[1].mxu1 }
  0xfa   :  { %v276_v34 = vpop.f32.mrb[2].mxu0  ;;  %v308_v35 = vpop.f32.mrb[2].mxu1 }
  0xfb   :  { %v1029_v36 = vadd.f32 %v1024_v28, %v394_v30  ;;  %v1032_v37 = vadd.f32 %v1024_v28, %v402_v31  ;;  %v395_v38 = vmul.f32 %v1019_v26, %v276_v34  ;;  %v403_v39 = vmul.f32 %v1019_v26, %v308_v35  ;;  %v278_v40 = vpop.f32.mrb[3].mxu0  ;;  %v310_v41 = vpop.f32.mrb[3].mxu1 }
  0xfd   :  { %v433_v42 = vand.u32 2147483647, %v1029_v36  ;;  %v441_v43 = vand.u32 2147483647, %v1032_v37  ;;  %v1039_v44 = vadd.f32 %v1024_v28, %v395_v38  ;;  %v1042_v45 = vadd.f32 %v1024_v28, %v403_v39 }
  0xfe   :  { %vm529_vm1 = vcmp.ge.f32.partialorder %v1029_v36, 0.0  ;;  %vm537_vm2 = vcmp.ge.f32.partialorder %v1032_v37, 0.0 }
  0xff   :  { %v449_v46 = vsub.f32 0.0, %v433_v42  ;;  %v457_v47 = vsub.f32 0.0, %v441_v43  ;;  %v434_v48 = vand.u32 2147483647, %v1039_v44  ;;  %v442_v49 = vand.u32 2147483647, %v1042_v45 }
 0x100   :  { %v281_v52 = vpop.f32.mrb[4].mxu0  ;;  %v313_v53 = vpop.f32.mrb[4].mxu1  ;;  %vm530_vm3 = vcmp.ge.f32.partialorder %v1039_v44, 0.0  ;;  %vm538_vm4 = vcmp.ge.f32.partialorder %v1042_v45, 0.0 }
 0x101   :  { %v465_v50 = vmul.f32 1.442695, %v449_v46  ;;  %v481_v51 = vmul.f32 1.442695, %v457_v47  ;;  %v450_v54 = vsub.f32 0.0, %v434_v48  ;;  %v458_v55 = vsub.f32 0.0, %v442_v49 }
 0x102   :  { %v396_v56 = vmul.f32 %v1019_v26, %v281_v52  ;;  %v404_v57 = vmul.f32 %v1019_v26, %v313_v53  ;;  %v283_v58 = vpop.f32.mrb[5].mxu0  ;;  %v315_v59 = vpop.f32.mrb[5].mxu1 }
 0x103   :  { %843 = vpow2.f32 %v465_v50  ;;  %v284_v60 = vpop.f32.mrb[6].mxu0  ;;  %v316_v61 = vpop.f32.mrb[6].mxu1  ;;  %v467_v62 = vmul.f32 1.442695, %v450_v54  ;;  %v483_v63 = vmul.f32 1.442695, %v458_v55 }
 0x104   :  { %845 = vpow2.f32 %v481_v51  ;;  %v1049_v0 = vadd.f32 %v1024_v28, %v396_v56  ;;  %v286_v1 = vpop.f32.mrb[7].mxu0  ;;  %v318_v2 = vpop.f32.mrb[7].mxu1  ;;  %v1052_v3 = vadd.f32 %v1024_v28, %v404_v57  ;;  %v397_v4 = vmul.f32 %v1019_v26, %v284_v60 }
 0x105   :  { %v405_v5 = vmul.f32 %v1019_v26, %v316_v61  ;;  %847 = vpow2.f32 %v467_v62 }
 0x106   :  { %v435_v6 = vand.u32 2147483647, %v1049_v0  ;;  %849 = vpow2.f32 %v483_v63  ;;  %v443_v7 = vand.u32 2147483647, %v1052_v3  ;;  %v1059_v8 = vadd.f32 %v1024_v28, %v397_v4 }
 0x107   :  { %v1062_v10 = vadd.f32 %v1024_v28, %v405_v5  ;;  %vm531_vm5 = vcmp.ge.f32.partialorder %v1049_v0, 0.0  ;;  %vm539_vm7 = vcmp.ge.f32.partialorder %v1052_v3, 0.0 }
 0x108   :  { %v451_v9 = vsub.f32 0.0, %v435_v6  ;;  %v289_v11 = vpop.f32.mrb[8].mxu0  ;;  %v321_v12 = vpop.f32.mrb[8].mxu1  ;;  %v459_v13 = vsub.f32 0.0, %v443_v7  ;;  %v436_v14 = vand.u32 2147483647, %v1059_v8 }
 0x109   :  { %v398_v15 = vmul.f32 %v1019_v26, %v289_v11  ;;  %v291_v16 = vpop.f32.mrb[9].mxu0  ;;  %v323_v17 = vpop.f32.mrb[9].mxu1  ;;  %v444_v19 = vand.u32 2147483647, %v1062_v10  ;;  %v406_v20 = vmul.f32 %v1019_v26, %v321_v12  ;;  %vm532_vm6 = vcmp.ge.f32.partialorder %v1059_v8, 0.0 }
 0x10a   :  { %v469_v18 = vmul.f32 1.442695, %v451_v9  ;;  %v292_v21 = vpop.f32.mrb[10].mxu0  ;;  %v485_v22 = vmul.f32 1.442695, %v459_v13  ;;  %v452_v23 = vsub.f32 0.0, %v436_v14 }
 0x10b   :  { %v1069_v24 = vadd.f32 %v1024_v28, %v398_v15  ;;  %v399_v25 = vmul.f32 %v1019_v26, %v292_v21  ;;  %v324_v27 = vpop.f32.mrb[10].mxu1  ;;  %v294_v29 = vpop.f32.mrb[11].mxu0  ;;  %v460_v30 = vsub.f32 0.0, %v444_v19  ;;  %v1073_v31 = vadd.f32 %v1024_v28, %v406_v20 }
 0x10c   :  { %851 = vpow2.f32 %v469_v18  ;;  %v407_v32 = vmul.f32 %v1019_v26, %v324_v27  ;;  %v326_v33 = vpop.f32.mrb[11].mxu1  ;;  %v471_v35 = vmul.f32 1.442695, %v452_v23  ;;  %vm540_vm8 = vcmp.ge.f32.partialorder %v1062_v10, 0.0 }
 0x10d   :  { %v1076_v34 = vpop.eup %843  ;;  %853 = vpow2.f32 %v485_v22  ;;  %v437_v38 = vand.u32 2147483647, %v1069_v24  ;;  %v487_v41 = vmul.f32 1.442695, %v460_v30  ;;  %v445_v42 = vand.u32 2147483647, %v1073_v31 }
 0x10e   :  { %v1079_v39 = vpop.eup %845  ;;  %v497_v40 = vadd.f32 1.0, %v1076_v34  ;;  %855 = vpow2.f32 %v471_v35  ;;  %v1085_v47 = vadd.f32 %v1024_v28, %v399_v25  ;;  %v1090_v50 = vadd.f32 %v1024_v28, %v407_v32 }
 0x10f   :  { %v505_v43 = vadd.f32 1.0, %v1079_v39  ;;  %v453_v46 = vsub.f32 0.0, %v437_v38  ;;  %v1087_v48 = vpop.eup %847  ;;  %v461_v49 = vsub.f32 0.0, %v445_v42  ;;  %vm533_vm9 = vcmp.ge.f32.partialorder %v1069_v24, 0.0 }
 0x110   :  { %857 = vrcp.f32 %v497_v40  ;;  %v297_v51 = vpop.f32.mrb[12].mxu0  ;;  %v329_v52 = vpop.f32.mrb[12].mxu1  ;;  %v498_v54 = vadd.f32 1.0, %v1087_v48  ;;  %v438_v56 = vand.u32 2147483647, %v1085_v47  ;;  %vm534_vm10 = vcmp.ge.f32.partialorder %v1085_v47, 0.0 }
 0x111   :  { %v1092_v53 = vpop.eup %849  ;;  %859 = vrcp.f32 %v505_v43  ;;  %v473_v55 = vmul.f32 1.442695, %v453_v46  ;;  %v299_v57 = vpop.f32.mrb[13].mxu0  ;;  %v489_v59 = vmul.f32 1.442695, %v461_v49  ;;  %v400_v4 = vmul.f32 %v1019_v26, %v297_v51 }
 0x112   :  { %v506_v58 = vadd.f32 1.0, %v1092_v53  ;;  %861 = vpow2.f32 %v487_v41  ;;  %v331_v60 = vpop.f32.mrb[13].mxu1  ;;  %v300_v61 = vpop.f32.mrb[14].mxu0  ;;  %v454_v62 = vsub.f32 0.0, %v438_v56  ;;  %v446_v63 = vand.u32 2147483647, %v1090_v50 }
 0x113   :  { %863 = vrcp.f32 %v498_v54  ;;  %v332_v1 = vpop.f32.mrb[14].mxu1  ;;  %v302_v2 = vpop.f32.mrb[15].mxu0  ;;  %v408_v5 = vmul.f32 %v1019_v26, %v329_v52  ;;  %v401_v6 = vmul.f32 %v1019_v26, %v300_v61  ;;  %v1105_v14 = vadd.f32 %v1024_v28, %v400_v4 }
 0x114   :  { %865 = vrcp.f32 %v506_v58  ;;  %v334_v7 = vpop.f32.mrb[15].mxu1  ;;  %v475_v9 = vmul.f32 1.442695, %v454_v62  ;;  %v462_v11 = vsub.f32 0.0, %v446_v63  ;;  %v409_v12 = vmul.f32 %v1019_v26, %v332_v1 }
 0x115   :  { %867 = vpow2.f32 %v473_v55  ;;  %v1108_v15 = vadd.f32 %v1024_v28, %v408_v5  ;;  %v1111_v16 = vadd.f32 %v1024_v28, %v401_v6  ;;  %v439_v21 = vand.u32 2147483647, %v1105_v14 }
 0x116   :  { %v1102_v13 = vpop.eup %851  ;;  %869 = vpow2.f32 %v489_v59  ;;  %v491_v19 = vmul.f32 1.442695, %v462_v11  ;;  %v1117_v26 = vadd.f32 %v1024_v28, %v409_v12  ;;  %vm541_vm11 = vcmp.ge.f32.partialorder %v1073_v31, 0.0 }
 0x117   :  { %v1113_v17 = vpop.eup %853  ;;  %v499_v18 = vadd.f32 1.0, %v1102_v13  ;;  %871 = vpow2.f32 %v475_v9  ;;  %v447_v22 = vand.u32 2147483647, %v1108_v15  ;;  %v440_v25 = vand.u32 2147483647, %v1111_v16 }
 0x118   :  { %v507_v20 = vadd.f32 1.0, %v1113_v17  ;;  %v1122_v23 = vpop.eup %855  ;;  %v455_v29 = vsub.f32 0.0, %v439_v21  ;;  %v448_v38 = vand.u32 2147483647, %v1117_v26  ;;  %vm542_vm12 = vcmp.ge.f32.partialorder %v1090_v50, 0.0 }
 0x119   :  { %873 = vrcp.f32 %v499_v18  ;;  %v500_v28 = vadd.f32 1.0, %v1122_v23  ;;  %v463_v30 = vsub.f32 0.0, %v447_v22  ;;  %v456_v35 = vsub.f32 0.0, %v440_v25 }
 0x11a   :  { %v858_v27 = vpop.eup %857  ;;  %875 = vrcp.f32 %v507_v20  ;;  %v477_v42 = vmul.f32 1.442695, %v455_v29  ;;  %v464_v54 = vsub.f32 0.0, %v448_v38  ;;  %vm535_vm13 = vcmp.ge.f32.partialorder %v1105_v14, 0.0 }
 0x11b   :  { %v860_v32 = vpop.eup %859  ;;  %v545_v33 = vmul.f32 %v858_v27, %v1076_v34  ;;  %877 = vpow2.f32 %v491_v19  ;;  %v493_v43 = vmul.f32 1.442695, %v463_v30  ;;  %v479_v52 = vmul.f32 1.442695, %v456_v35 }
 0x11c   :  { %v1130_v40 = vpop.eup %861  ;;  %v553_v41 = vmul.f32 %v860_v32, %v1079_v39  ;;  %879 = vrcp.f32 %v500_v28  ;;  %v495_v62 = vmul.f32 1.442695, %v464_v54  ;;  %vm536_vm14 = vcmp.ge.f32.partialorder %v1111_v16, 0.0 }
 0x11d   :  { %v864_v46 = vpop.eup %863  ;;  %v561_v49 = vsel %vm529_vm1, %v858_v27, %v545_v33  ;;  %v508_v51 = vadd.f32 1.0, %v1130_v40  ;;  %881 = vpow2.f32 %v477_v42  ;;  %vm543_vm15 = vcmp.ge.f32.partialorder %v1108_v15, 0.0 }
 0x11e   :  { %v866_v34 = vpop.eup %865  ;;  %v546_v55 = vmul.f32 %v864_v46, %v1087_v48  ;;  %v577_v56 = vmul.f32 %v561_v49, %v1029_v36  ;;  %v569_v57 = vsel %vm537_vm2, %v860_v32, %v553_v41  ;;  %vm544_vm0 = vcmp.ge.f32.partialorder %v1117_v26, 0.0 }
 0x11f   :  { %v868_v39 = vpop.eup %867  ;;  %v554_v58 = vmul.f32 %v866_v34, %v1092_v53  ;;  %883 = vrcp.f32 %v508_v51  ;;  %v585_v36 = vmul.f32 %v569_v57, %v1032_v37 }
 0x120   :  { %v1143_v59 = vpop.eup %869  ;;  %v562_v60 = vsel %vm530_vm3, %v864_v46, %v546_v55  ;;  %v501_v61 = vadd.f32 1.0, %v868_v39  ;;  %885 = vpow2.f32 %v493_v43 }
 0x121   :  { %v872_v63 = vpop.eup %871  ;;  %v578_v48 = vmul.f32 %v562_v60, %v1039_v44  ;;  %v570_v1 = vsel %vm538_vm4, %v866_v34, %v554_v58  ;;  %v509_v2 = vadd.f32 1.0, %v1143_v59  ;;  %887 = vpow2.f32 %v479_v52 }
 0x122   :  { %v586_v4 = vmul.f32 %v570_v1, %v1042_v45  ;;  %889 = vrcp.f32 %v501_v61  ;;  %v502_v53 = vadd.f32 1.0, %v872_v63 }
 0x123   :  { %v874_v5 = vpop.eup %873  ;;  %v747_v6 = vpack.c.bf16 %v578_v48, %v577_v56  ;;  %891 = vrcp.f32 %v509_v2 }
 0x124   :  { %v876_v7 = vpop.eup %875  ;;  %v767_v9 = vpack.c.bf16 %v586_v4, %v585_v36  ;;  %v547_v11 = vmul.f32 %v874_v5, %v1102_v13  ;;  %893 = vrcp.f32 %v502_v53 }
 0x125   :  { %v878_v12 = vpop.eup %877  ;;  %748 = vst [vmem:[%s1206_s4] sm:$0xff] %v747_v6   ;;  %895 = vpow2.f32 %v495_v62  ;;  %v555_v37 = vmul.f32 %v876_v7, %v1113_v17 }
 0x126   :  { %v880_v44 = vpop.eup %879  ;;  %787 = vst [vmem:[%s1206_s4 + $0x20] sm:$0xff] %v767_v9   ;;  %v510_v45 = vadd.f32 1.0, %v878_v12  ;;  %v563_v18 = vsel %vm531_vm5, %v874_v5, %v547_v11 }
 0x127   :  { %v548_v13 = vmul.f32 %v880_v44, %v1122_v23  ;;  %v882_v19 = vpop.eup %881  ;;  %v579_v27 = vmul.f32 %v563_v18, %v1049_v0  ;;  %v571_v28 = vsel %vm539_vm7, %v876_v7, %v555_v37 }
 0x128   :  { %897 = vrcp.f32 %v510_v45  ;;  %v503_v22 = vadd.f32 1.0, %v882_v19  ;;  %v587_v42 = vmul.f32 %v571_v28, %v1052_v3 }
 0x129   :  { %v884_v20 = vpop.eup %883  ;;  %v564_v21 = vsel %vm532_vm6, %v880_v44, %v548_v13 }
 0x12a   :  { %v886_v25 = vpop.eup %885  ;;  %v580_v29 = vmul.f32 %v564_v21, %v1059_v8  ;;  %v556_v17 = vmul.f32 %v884_v20, %v1130_v40  ;;  %899 = vrcp.f32 %v503_v22 }
 0x12b   :  { %v888_v30 = vpop.eup %887  ;;  %v511_v23 = vadd.f32 1.0, %v886_v25 }
 0x12c   :  { %v890_v32 = vpop.eup %889  ;;  %v752_v33 = vpack.c.bf16 %v580_v29, %v579_v27  ;;  %v572_v35 = vsel %vm540_vm8, %v884_v20, %v556_v17  ;;  %v504_v38 = vadd.f32 1.0, %v888_v30 }
 0x12d   :  { %v892_v41 = vpop.eup %891  ;;  %v588_v43 = vmul.f32 %v572_v35, %v1062_v10  ;;  %v549_v0 = vmul.f32 %v890_v32, %v868_v39  ;;  %901 = vrcp.f32 %v511_v23 }
 0x12e   :  { %v894_v46 = vpop.eup %893  ;;  %784 = vst [vmem:[%s1206_s4 + $0x8] sm:$0xff] %v752_v33   ;;  %903 = vrcp.f32 %v504_v38  ;;  %v557_v51 = vmul.f32 %v892_v41, %v1143_v59 }
 0x12f   :  { %v896_v8 = vpop.eup %895  ;;  %v772_v40 = vpack.c.bf16 %v588_v43, %v587_v42  ;;  %v565_v49 = vsel %vm533_vm9, %v890_v32, %v549_v0  ;;  %v550_v52 = vmul.f32 %v894_v46, %v872_v63 }
 0x130   :  { %v512_v3 = vadd.f32 1.0, %v896_v8  ;;  %v581_v34 = vmul.f32 %v565_v49, %v1069_v24  ;;  %v573_v39 = vsel %vm541_vm11, %v892_v41, %v557_v51 }
 0x131   :  { %788 = vst [vmem:[%s1206_s4 + $0x28] sm:$0xff] %v772_v40   ;;  %v566_v10 = vsel %vm534_vm10, %v894_v46, %v550_v52  ;;  %v589_v60 = vmul.f32 %v573_v39, %v1073_v31 }
 0x132   :  { %v898_v54 = vpop.eup %897  ;;  %v582_v55 = vmul.f32 %v566_v10, %v1085_v47  ;;  %905 = vrcp.f32 %v512_v3 }
 0x133   :  { %v558_v56 = vmul.f32 %v898_v54, %v878_v12 }
 0x134   :  { %v757_v57 = vpack.c.bf16 %v582_v55, %v581_v34  ;;  %v900_v58 = vpop.eup %899 }
 0x135   :  { %v574_v59 = vsel %vm542_vm12, %v898_v54, %v558_v56  ;;  %v551_v61 = vmul.f32 %v900_v58, %v882_v19 }
 0x136   :  { %785 = vst [vmem:[%s1206_s4 + $0x10] sm:$0xff] %v757_v57   ;;  %v590_v24 = vmul.f32 %v574_v59, %v1090_v50 }
 0x137   :  { %v902_v62 = vpop.eup %901  ;;  %v567_v48 = vsel %vm535_vm13, %v900_v58, %v551_v61 }
 0x138   :  { %v904_v63 = vpop.eup %903  ;;  %v777_v47 = vpack.c.bf16 %v590_v24, %v589_v60  ;;  %v559_v1 = vmul.f32 %v902_v62, %v886_v25  ;;  %v583_v4 = vmul.f32 %v567_v48, %v1105_v14 }
 0x139   :  { %v552_v2 = vmul.f32 %v904_v63, %v888_v30 }
 0x13a   :  { %789 = vst [vmem:[%s1206_s4 + $0x30] sm:$0xff] %v777_v47   ;;  %v575_v53 = vsel %vm543_vm15, %v902_v62, %v559_v1 }
 0x13b   :  { %v568_v31 = vsel %vm536_vm14, %v904_v63, %v552_v2  ;;  %v591_v9 = vmul.f32 %v575_v53, %v1108_v15 }
 0x13c   :  { %v906_v36 = vpop.eup %905  ;;  %v584_v50 = vmul.f32 %v568_v31, %v1111_v16 }
 0x13d   :  { %v560_v5 = vmul.f32 %v906_v36, %v896_v8 }
 0x13e   :  { %v762_v6 = vpack.c.bf16 %v584_v50, %v583_v4 }
 0x13f   :  { %v576_v7 = vsel %vm544_vm0, %v906_v36, %v560_v5 }
 0x140   :  { %786 = vst [vmem:[%s1206_s4 + $0x18] sm:$0xff] %v762_v6   ;;  %v592_v11 = vmul.f32 %v576_v7, %v1117_v26 }
 0x142   :  { %v782_v12 = vpack.c.bf16 %v592_v11, %v591_v9 }
 0x144   :  { %790 = vst [vmem:[%s1206_s4 + $0x38] sm:$0xff] %v782_v12  }

// kernel: fpn_forward.21
= control target key start
LH: loop header
LB: loop body
LE: loop exit
PB: predicated region body
PF: predicated region fallthrough
CT: control target
= control target key end

     0   :  { %vm134_vm0 = vcmask 392192   ;;  %s1053_s1 = inlined_call_operand.vmem [shape: bf16[48,128], index: 1, kind: input, shape index: {}]   ;;  %s1054_s0 = inlined_call_operand.vmem [shape: bf16[128,48], index: 0, kind: input, shape index: {}]   ;;  %s1055_s2 = inlined_call_operand.vmem [shape: f32[1,128], index: 2, kind: input, shape index: {}]   ;;  %s1056_s3 = inlined_call_operand.vmem [shape: f32[1,128], index: 3, kind: input, shape index: {}]   ;;  %s1057_s4 = inlined_call_operand.vmem [shape: bf16[128,128], index: 4, kind: output, shape index: {}]  }
   0x1   :  { %v736_v0 = vld [vmem:[%s1053_s1] sm:$0xff]   ;;  %v737_v1 = vld [vmem:[%s1053_s1 + $0x8] sm:$0xff]   ;;  %v738_v2 = vld [vmem:[%s1053_s1 + $0x10] sm:$0xff]  }
   0x2   :  { %708 = vmatprep.subr.bf16.mxu0 %v736_v0  ;;  %730 = vmatprep.subr.bf16.mxu1 %v736_v0  ;;  %v739_v3 = vld [vmem:[%s1054_s0] sm:$0xff]   ;;  %v741_v5 = vld [vmem:[%s1054_s0 + $0x8] sm:$0xff]   ;;  %v743_v7 = vld [vmem:[%s1054_s0 + $0x10] sm:$0xff]  }
   0x3   :  { %709 = vmatpush3.bf16.msra.mxu0 %v736_v0  ;;  %733 = vmatpush3.bf16.msra.mxu1 %v736_v0  ;;  %v740_v4 = vld [vmem:[%s1054_s0 + $0x20] sm:$0xff]   ;;  %v742_v6 = vld [vmem:[%s1054_s0 + $0x28] sm:$0xff]   ;;  %v744_v8 = vld [vmem:[%s1054_s0 + $0x30] sm:$0xff]  }
   0x4   :  { %710 = vmatprep.subr.bf16.mxu0 %v737_v1  ;;  %731 = vmatprep.subr.bf16.mxu1 %v737_v1  ;;  %v745_v9 = vld [vmem:[%s1054_s0 + $0x18] sm:$0xff]   ;;  %v880_v11 = vld [vmem:[%s1055_s2] ss:$0 sm:$0xff] }
   0x5   :  { %714 = vmatprep.mubr.msk.bf16.mxu0 %vm134_vm0, %v739_v3  ;;  %722 = vmatprep.mubr.msk.bf16.mxu1 %vm134_vm0, %v740_v4  ;;  %v746_v10 = vld [vmem:[%s1054_s0 + $0x38] sm:$0xff]   ;;  %v885_v13 = vld [vmem:[%s1056_s3] ss:$0 sm:$0xff] }
   0x7   :  { %711 = vmatpush3.bf16.msra.mxu0 %v737_v1  ;;  %734 = vmatpush3.bf16.msra.mxu1 %v737_v1 }
   0x8   :  { %712 = vmatprep.subr.bf16.mxu0 %v738_v2  ;;  %732 = vmatprep.subr.bf16.mxu1 %v738_v2 }
   0xb   :  { %713 = vmatpush3.bf16.msra.mxu0 %v738_v2  ;;  %735 = vmatpush3.bf16.msra.mxu1 %v738_v2 }
   0xe   :  { %715 = vmatmul.mubr.msk.bf16.vlgmr.msra.gmra.mrb[0].mxu0 %vm134_vm0, %v741_v5  ;;  %723 = vmatmul.mubr.msk.bf16.vlgmr.msra.gmra.mrb[0].mxu1 %vm134_vm0, %v742_v6 }
   0xf   :  { %718 = vmatprep.mubr.msk.bf16.mxu0 %vm134_vm0, %v743_v7  ;;  %726 = vmatprep.mubr.msk.bf16.mxu1 %vm134_vm0, %v744_v8 }
  0x16   :  { %719 = vmatmul.mubr.msk.bf16.gmra.mrb[4].mxu0 %vm134_vm0, %v745_v9  ;;  %727 = vmatmul.mubr.msk.bf16.gmra.mrb[4].mxu1 %vm134_vm0, %v746_v10 }
  0xe1   :  { %v716_v12 = vpop.f32.mrb[0].mxu0  ;;  %v724_v14 = vpop.f32.mrb[0].mxu1 }
  0xe2   :  { %v316_v15 = vmul.f32 %v716_v12, %v880_v11  ;;  %v324_v16 = vmul.f32 %v724_v14, %v880_v11  ;;  %v193_v17 = vpop.f32.mrb[1].mxu0  ;;  %v225_v18 = vpop.f32.mrb[1].mxu1 }
  0xe3   :  { %v314_v19 = vmul.f32 %v880_v11, %v193_v17  ;;  %v322_v20 = vmul.f32 %v880_v11, %v225_v18  ;;  %v717_v21 = vpop.f32.mrb[2].mxu0  ;;  %v725_v22 = vpop.f32.mrb[2].mxu1 }
  0xe4   :  { %v892_v23 = vadd.f32 %v885_v13, %v316_v15  ;;  %v895_v24 = vadd.f32 %v885_v13, %v324_v16  ;;  %v317_v25 = vmul.f32 %v717_v21, %v880_v11  ;;  %v325_v26 = vmul.f32 %v725_v22, %v880_v11  ;;  %v196_v27 = vpop.f32.mrb[3].mxu0  ;;  %v228_v28 = vpop.f32.mrb[3].mxu1 }
  0xe5   :  { %v900_v29 = vadd.f32 %v885_v13, %v314_v19  ;;  %v903_v30 = vadd.f32 %v885_v13, %v322_v20  ;;  %v315_v31 = vmul.f32 %v880_v11, %v196_v27  ;;  %v323_v32 = vmul.f32 %v880_v11, %v228_v28 }
  0xe6   :  { %v355_v33 = vand.u32 2147483647, %v892_v23  ;;  %v363_v34 = vand.u32 2147483647, %v895_v24  ;;  %v912_v39 = vadd.f32 %v885_v13, %v317_v25  ;;  %v915_v40 = vadd.f32 %v885_v13, %v325_v26 }
  0xe7   :  { %v353_v35 = vand.u32 2147483647, %v900_v29  ;;  %v361_v36 = vand.u32 2147483647, %v903_v30  ;;  %v918_v43 = vadd.f32 %v885_v13, %v315_v31  ;;  %v921_v44 = vadd.f32 %v885_v13, %v323_v32 }
  0xe8   :  { %v371_v37 = vsub.f32 0.0, %v355_v33  ;;  %v379_v38 = vsub.f32 0.0, %v363_v34  ;;  %v356_v49 = vand.u32 2147483647, %v912_v39  ;;  %v364_v54 = vand.u32 2147483647, %v915_v40 }
  0xe9   :  { %v369_v41 = vsub.f32 0.0, %v353_v35  ;;  %v377_v42 = vsub.f32 0.0, %v361_v36  ;;  %v720_v45 = vpop.f32.mrb[4].mxu0  ;;  %v728_v46 = vpop.f32.mrb[4].mxu1  ;;  %v354_v55 = vand.u32 2147483647, %v918_v43 }
  0xea   :  { %v389_v47 = vmul.f32 1.442695, %v371_v37  ;;  %v405_v48 = vmul.f32 1.442695, %v379_v38  ;;  %v320_v52 = vmul.f32 %v720_v45, %v880_v11  ;;  %v372_v53 = vsub.f32 0.0, %v356_v49  ;;  %v209_v56 = vpop.f32.mrb[5].mxu0 }
  0xeb   :  { %v385_v50 = vmul.f32 1.442695, %v369_v41  ;;  %v401_v51 = vmul.f32 1.442695, %v377_v42  ;;  %v362_v57 = vand.u32 2147483647, %v921_v44  ;;  %v328_v3 = vmul.f32 %v728_v46, %v880_v11 }
  0xec   :  { %747 = vpow2.f32 %v389_v47  ;;  %v241_v58 = vpop.f32.mrb[5].mxu1  ;;  %v721_v59 = vpop.f32.mrb[6].mxu0  ;;  %v391_v60 = vmul.f32 1.442695, %v372_v53  ;;  %v380_v61 = vsub.f32 0.0, %v364_v54  ;;  %v370_v62 = vsub.f32 0.0, %v354_v55 }
  0xed   :  { %749 = vpow2.f32 %v405_v48  ;;  %v729_v63 = vpop.f32.mrb[6].mxu1  ;;  %v212_v0 = vpop.f32.mrb[7].mxu0  ;;  %v378_v1 = vsub.f32 0.0, %v362_v57  ;;  %v929_v2 = vadd.f32 %v885_v13, %v320_v52  ;;  %v318_v7 = vmul.f32 %v880_v11, %v209_v56 }
  0xee   :  { %751 = vpow2.f32 %v385_v50  ;;  %v244_v4 = vpop.f32.mrb[7].mxu1  ;;  %v407_v5 = vmul.f32 1.442695, %v380_v61  ;;  %v387_v6 = vmul.f32 1.442695, %v370_v62  ;;  %v935_v10 = vadd.f32 %v885_v13, %v328_v3 }
  0xef   :  { %753 = vpow2.f32 %v401_v51  ;;  %v403_v8 = vmul.f32 1.442695, %v378_v1  ;;  %v359_v9 = vand.u32 2147483647, %v929_v2  ;;  %v938_v12 = vadd.f32 %v885_v13, %v318_v7 }
  0xf0   :  { %755 = vpow2.f32 %v391_v60  ;;  %v326_v14 = vmul.f32 %v880_v11, %v241_v58  ;;  %v321_v15 = vmul.f32 %v721_v59, %v880_v11  ;;  %v367_v17 = vand.u32 2147483647, %v935_v10 }
  0xf1   :  { %757 = vpow2.f32 %v407_v5  ;;  %v375_v16 = vsub.f32 0.0, %v359_v9  ;;  %v357_v18 = vand.u32 2147483647, %v938_v12  ;;  %v329_v25 = vmul.f32 %v729_v63, %v880_v11 }
  0xf2   :  { %759 = vpow2.f32 %v387_v6  ;;  %v945_v19 = vadd.f32 %v885_v13, %v326_v14  ;;  %v383_v21 = vsub.f32 0.0, %v367_v17  ;;  %v948_v22 = vadd.f32 %v885_v13, %v321_v15 }
  0xf3   :  { %761 = vpow2.f32 %v403_v8  ;;  %v397_v20 = vmul.f32 1.442695, %v375_v16  ;;  %v319_v28 = vmul.f32 %v880_v11, %v212_v0  ;;  %v373_v36 = vsub.f32 0.0, %v357_v18 }
  0xf4   :  { %v365_v27 = vand.u32 2147483647, %v945_v19  ;;  %v413_v35 = vmul.f32 1.442695, %v383_v21  ;;  %v360_v41 = vand.u32 2147483647, %v948_v22  ;;  %v960_v42 = vadd.f32 %v885_v13, %v329_v25 }
  0xf5   :  { %763 = vpow2.f32 %v397_v20  ;;  %v964_v48 = vadd.f32 %v885_v13, %v319_v28  ;;  %v393_v52 = vmul.f32 1.442695, %v373_v36  ;;  %v327_v57 = vmul.f32 %v880_v11, %v244_v4 }
  0xf6   :  { %v748_v26 = vpop.eup %747  ;;  %v381_v47 = vsub.f32 0.0, %v365_v27  ;;  %v368_v50 = vand.u32 2147483647, %v960_v42  ;;  %v376_v56 = vsub.f32 0.0, %v360_v41  ;;  %vm451_vm1 = vcmp.ge.f32.partialorder %v892_v23, 0.0 }
  0xf7   :  { %v750_v31 = vpop.eup %749  ;;  %v419_v32 = vadd.f32 1.0, %v748_v26  ;;  %v358_v53 = vand.u32 2147483647, %v964_v48  ;;  %v973_v0 = vadd.f32 %v885_v13, %v327_v57  ;;  %vm459_vm2 = vcmp.ge.f32.partialorder %v895_v24, 0.0 }
  0xf8   :  { %v953_v33 = vpop.eup %751  ;;  %v427_v34 = vadd.f32 1.0, %v750_v31  ;;  %v409_v60 = vmul.f32 1.442695, %v381_v47  ;;  %v384_v61 = vsub.f32 0.0, %v368_v50  ;;  %v399_v1 = vmul.f32 1.442695, %v376_v56 }
  0xf9   :  { %v955_v37 = vpop.eup %753  ;;  %765 = vrcp.f32 %v419_v32  ;;  %v417_v38 = vadd.f32 1.0, %v953_v33  ;;  %v374_v63 = vsub.f32 0.0, %v358_v53  ;;  %v366_v3 = vand.u32 2147483647, %v973_v0 }
  0xfa   :  { %v756_v45 = vpop.eup %755  ;;  %767 = vrcp.f32 %v427_v34  ;;  %v425_v46 = vadd.f32 1.0, %v955_v37  ;;  %v415_v11 = vmul.f32 1.442695, %v384_v61  ;;  %vm449_vm3 = vcmp.ge.f32.partialorder %v900_v29, 0.0 }
  0xfb   :  { %769 = vrcp.f32 %v417_v38  ;;  %v420_v49 = vadd.f32 1.0, %v756_v45  ;;  %v758_v51 = vpop.eup %757  ;;  %v395_v6 = vmul.f32 1.442695, %v374_v63  ;;  %v382_v7 = vsub.f32 0.0, %v366_v3 }
  0xfc   :  { %771 = vrcp.f32 %v425_v46  ;;  %v760_v54 = vpop.eup %759  ;;  %v428_v55 = vadd.f32 1.0, %v758_v51  ;;  %vm457_vm4 = vcmp.ge.f32.partialorder %v903_v30, 0.0  ;;  %vm452_vm5 = vcmp.ge.f32.partialorder %v912_v39, 0.0 }
  0xfd   :  { %773 = vrcp.f32 %v420_v49  ;;  %v969_v58 = vpop.eup %761  ;;  %v418_v59 = vadd.f32 1.0, %v760_v54  ;;  %v411_v15 = vmul.f32 1.442695, %v382_v7  ;;  %vm460_vm6 = vcmp.ge.f32.partialorder %v915_v40, 0.0 }
  0xfe   :  { %775 = vpow2.f32 %v413_v35  ;;  %v426_v62 = vadd.f32 1.0, %v969_v58  ;;  %vm450_vm7 = vcmp.ge.f32.partialorder %v918_v43, 0.0  ;;  %vm458_vm8 = vcmp.ge.f32.partialorder %v921_v44, 0.0 }
  0xff   :  { %777 = vrcp.f32 %v428_v55  ;;  %v976_v5 = vpop.eup %763  ;;  %vm455_vm9 = vcmp.ge.f32.partialorder %v929_v2, 0.0  ;;  %vm463_vm10 = vcmp.ge.f32.partialorder %v935_v10, 0.0  ;;  %vm453_vm11 = vcmp.ge.f32.partialorder %v938_v12, 0.0 }
 0x100   :  { %779 = vrcp.f32 %v418_v59  ;;  %v423_v17 = vadd.f32 1.0, %v976_v5  ;;  %vm461_vm12 = vcmp.ge.f32.partialorder %v945_v19, 0.0  ;;  %vm456_vm13 = vcmp.ge.f32.partialorder %v948_v22, 0.0 }
 0x101   :  { %781 = vrcp.f32 %v426_v62  ;;  %vm464_vm14 = vcmp.ge.f32.partialorder %v960_v42, 0.0  ;;  %vm454_vm15 = vcmp.ge.f32.partialorder %v964_v48, 0.0  ;;  %vm462_vm0 = vcmp.ge.f32.partialorder %v973_v0, 0.0 }
 0x102   :  { %783 = vpow2.f32 %v393_v52 }
 0x103   :  { %v766_v4 = vpop.eup %765  ;;  %785 = vpow2.f32 %v409_v60 }
 0x104   :  { %v768_v8 = vpop.eup %767  ;;  %v467_v9 = vmul.f32 %v766_v4, %v748_v26  ;;  %787 = vpow2.f32 %v399_v1 }
 0x105   :  { %v770_v14 = vpop.eup %769  ;;  %v475_v13 = vmul.f32 %v768_v8, %v750_v31  ;;  %789 = vpow2.f32 %v415_v11 }
 0x106   :  { %v772_v16 = vpop.eup %771  ;;  %v483_v20 = vsel %vm451_vm1, %v766_v4, %v467_v9  ;;  %v465_v21 = vmul.f32 %v770_v14, %v953_v33  ;;  %791 = vpow2.f32 %v395_v6 }
 0x107   :  { %v774_v18 = vpop.eup %773  ;;  %v491_v26 = vsel %vm459_vm2, %v768_v8, %v475_v13  ;;  %v473_v27 = vmul.f32 %v772_v16, %v955_v37  ;;  %793 = vpow2.f32 %v411_v15  ;;  %v499_v34 = vmul.f32 %v483_v20, %v892_v23 }
 0x108   :  { %v985_v25 = vpop.eup %775  ;;  %v468_v28 = vmul.f32 %v774_v18, %v756_v45  ;;  %795 = vrcp.f32 %v423_v17  ;;  %v507_v37 = vmul.f32 %v491_v26, %v895_v24  ;;  %v481_v41 = vsel %vm449_vm3, %v770_v14, %v465_v21 }
 0x109   :  { %v778_v31 = vpop.eup %777  ;;  %v431_v32 = vadd.f32 1.0, %v985_v25  ;;  %v489_v49 = vsel %vm457_vm4, %v772_v16, %v473_v27 }
 0x10a   :  { %v780_v33 = vpop.eup %779  ;;  %v484_v35 = vsel %vm452_vm5, %v774_v18, %v468_v28  ;;  %v476_v36 = vmul.f32 %v778_v31, %v758_v51 }
 0x10b   :  { %v782_v38 = vpop.eup %781  ;;  %v500_v45 = vmul.f32 %v484_v35, %v912_v39  ;;  %v466_v46 = vmul.f32 %v780_v33, %v760_v54  ;;  %797 = vrcp.f32 %v431_v32  ;;  %v497_v39 = vmul.f32 %v481_v41, %v900_v29 }
 0x10c   :  { %v784_v47 = vpop.eup %783  ;;  %v492_v50 = vsel %vm460_vm6, %v778_v31, %v476_v36  ;;  %v474_v23 = vmul.f32 %v782_v38, %v969_v58  ;;  %v505_v58 = vmul.f32 %v489_v49, %v903_v30 }
 0x10d   :  { %v786_v51 = vpop.eup %785  ;;  %v658_v52 = vpack.c.bf16 %v500_v45, %v499_v34  ;;  %v508_v24 = vmul.f32 %v492_v50, %v915_v40  ;;  %v482_v53 = vsel %vm450_vm7, %v780_v33, %v466_v46  ;;  %v421_v55 = vadd.f32 1.0, %v784_v47 }
 0x10e   :  { %v498_v54 = vmul.f32 %v482_v53, %v918_v43  ;;  %v490_v56 = vsel %vm458_vm8, %v782_v38, %v474_v23  ;;  %v429_v57 = vadd.f32 1.0, %v786_v51  ;;  %v788_v59 = vpop.eup %787 }
 0x10f   :  { %690 = vst [vmem:[%s1057_s4 + $0x8] sm:$0xff] %v658_v52   ;;  %v678_v40 = vpack.c.bf16 %v508_v24, %v507_v37  ;;  %v506_v60 = vmul.f32 %v490_v56, %v921_v44  ;;  %799 = vrcp.f32 %v421_v55  ;;  %v790_v61 = vpop.eup %789  ;;  %v424_v29 = vadd.f32 1.0, %v788_v59 }
 0x110   :  { %v653_v62 = vpack.c.bf16 %v498_v54, %v497_v39  ;;  %801 = vrcp.f32 %v429_v57  ;;  %v792_v43 = vpop.eup %791  ;;  %v432_v1 = vadd.f32 1.0, %v790_v61 }
 0x111   :  { %694 = vst [vmem:[%s1057_s4 + $0x28] sm:$0xff] %v678_v40   ;;  %v673_v63 = vpack.c.bf16 %v506_v60, %v505_v58  ;;  %v794_v30 = vpop.eup %793  ;;  %803 = vrcp.f32 %v424_v29  ;;  %v422_v3 = vadd.f32 1.0, %v792_v43 }
 0x112   :  { %654 = vst [vmem:[%s1057_s4] sm:$0xff] %v653_v62   ;;  %805 = vrcp.f32 %v432_v1  ;;  %v430_v44 = vadd.f32 1.0, %v794_v30  ;;  %v796_v11 = vpop.eup %795 }
 0x113   :  { %693 = vst [vmem:[%s1057_s4 + $0x20] sm:$0xff] %v673_v63   ;;  %807 = vrcp.f32 %v422_v3  ;;  %v471_v6 = vmul.f32 %v796_v11, %v976_v5 }
 0x114   :  { %809 = vrcp.f32 %v430_v44 }
 0x115   :  { %v798_v4 = vpop.eup %797  ;;  %v487_v15 = vsel %vm455_vm9, %v796_v11, %v471_v6 }
 0x116   :  { %v479_v9 = vmul.f32 %v798_v4, %v985_v25  ;;  %v503_v26 = vmul.f32 %v487_v15, %v929_v2 }
 0x118   :  { %v495_v20 = vsel %vm463_vm10, %v798_v4, %v479_v9 }
 0x119   :  { %v800_v7 = vpop.eup %799  ;;  %v511_v36 = vmul.f32 %v495_v20, %v935_v10 }
 0x11a   :  { %v802_v8 = vpop.eup %801  ;;  %v469_v14 = vmul.f32 %v800_v7, %v784_v47 }
 0x11b   :  { %v804_v13 = vpop.eup %803  ;;  %v477_v16 = vmul.f32 %v802_v8, %v786_v51 }
 0x11c   :  { %v806_v17 = vpop.eup %805  ;;  %v472_v5 = vmul.f32 %v804_v13, %v788_v59  ;;  %v485_v27 = vsel %vm453_vm11, %v800_v7, %v469_v14 }
 0x11d   :  { %v808_v18 = vpop.eup %807  ;;  %v480_v21 = vmul.f32 %v806_v17, %v790_v61  ;;  %v493_v32 = vsel %vm461_vm12, %v802_v8, %v477_v16  ;;  %v501_v41 = vmul.f32 %v485_v27, %v938_v12 }
 0x11e   :  { %v810_v25 = vpop.eup %809  ;;  %v488_v28 = vsel %vm456_vm13, %v804_v13, %v472_v5  ;;  %v470_v31 = vmul.f32 %v808_v18, %v792_v43  ;;  %v509_v47 = vmul.f32 %v493_v32, %v945_v19 }
 0x11f   :  { %v504_v33 = vmul.f32 %v488_v28, %v948_v22  ;;  %v496_v34 = vsel %vm464_vm14, %v806_v17, %v480_v21  ;;  %v478_v35 = vmul.f32 %v810_v25, %v794_v30 }
 0x120   :  { %v512_v38 = vmul.f32 %v496_v34, %v960_v42  ;;  %v486_v37 = vsel %vm454_vm15, %v808_v18, %v470_v31 }
 0x121   :  { %v668_v45 = vpack.c.bf16 %v504_v33, %v503_v26  ;;  %v502_v2 = vmul.f32 %v486_v37, %v964_v48  ;;  %v494_v46 = vsel %vm462_vm0, %v810_v25, %v478_v35 }
 0x122   :  { %v688_v49 = vpack.c.bf16 %v512_v38, %v511_v36  ;;  %v510_v22 = vmul.f32 %v494_v46, %v973_v0 }
 0x123   :  { %692 = vst [vmem:[%s1057_s4 + $0x18] sm:$0xff] %v668_v45   ;;  %v663_v10 = vpack.c.bf16 %v502_v2, %v501_v41 }
 0x124   :  { %696 = vst [vmem:[%s1057_s4 + $0x38] sm:$0xff] %v688_v49   ;;  %v683_v42 = vpack.c.bf16 %v510_v22, %v509_v47 }
 0x125   :  { %691 = vst [vmem:[%s1057_s4 + $0x10] sm:$0xff] %v663_v10  }
 0x126   :  { %695 = vst [vmem:[%s1057_s4 + $0x30] sm:$0xff] %v683_v42  }

// kernel: fpn_forward.22
= control target key start
LH: loop header
LB: loop body
LE: loop exit
PB: predicated region body
PF: predicated region fallthrough
CT: control target
= control target key end

     0   :  { %s1988_s15 = smov 0   ;;  %s1990_s16 = smov 0   ;;  %s2510_s0 = inlined_call_operand.vmem [shape: bf16[512,48], index: 0, kind: input, shape index: {}]   ;;  %s2511_s1 = inlined_call_operand.vmem [shape: bf16[48,128], index: 1, kind: input, shape index: {}]   ;;  %s2512_s2 = inlined_call_operand.vmem [shape: f32[1,128], index: 2, kind: input, shape index: {}]   ;;  %s2513_s3 = inlined_call_operand.vmem [shape: f32[1,128], index: 3, kind: input, shape index: {}]   ;;  %s2514_s4 = inlined_call_operand.vmem [shape: bf16[512,128], index: 4, kind: output, shape index: {}]  }
   0x1   :  { %s1992_s17 = smov 0  }
   0x2 LB: > { %s33_s18 = sadd.s32 1, %s1957_s16  ;;  %p1502_p0 = scmp.ge.s32.totalorder %s1961_s17, 1  ;;  %s1961_s17 = sphi %s1992_s17, %s14_s17   ;;  %s1957_s16 = sphi %s1990_s16, %s2516_s16   ;;  %s1953_s15 = sphi %s1988_s15, %s2515_s15  }
   0x3   : > { %p35_p1 = scmp.ge.s32.totalorder %s33_s18, 2  ;;  %p221_p2 = scmp.lt.s32.totalorder %s1961_s17, 3 }
   0x5   : > { %s2518_s18 = smov (%p35_p1, %s33_s18), 0  ;;  %p222_p3 = pnand %p1502_p0, %p221_p2 }
   0x6   : > { %v1792_v0 = vld [vmem:[%s2511_s1] sm:$0xff] (!%p222_p3)   ;;  %s1503_s21 = sshll.u32 (!%p222_p3), %s1953_s15, 5  ;;  %v1793_v1 = vld [vmem:[%s2511_s1 + $0x8] sm:$0xff] (!%p222_p3)   ;;  %v1794_v2 = vld [vmem:[%s2511_s1 + $0x10] sm:$0xff] (!%p222_p3)   ;;  %vm505_vm0 = vcmask (!%p222_p3), 392192  }
   0x7   : > { %225 = sbr.rel (%p222_p3) target bundleno = 350 (0x15e), region = 36  ;;  %p268_p4 = scmp.lt.s32.totalorder (!%p222_p3), %s1503_s21, 63  ;;  %1724 = vmatprep.subr.bf16.mxu0 (!%p222_p3), %v1792_v0  ;;  %1762 = vmatprep.subr.bf16.mxu1 (!%p222_p3), %v1792_v0  ;;  %v2060_v19 = vld [vmem:[%s2512_s2] ss:$0 sm:$0xff] (!%p222_p3) }
   0x8   : > { %1725 = vmatpush3.bf16.msra.mxu0 (!%p222_p3), %v1792_v0  ;;  %1765 = vmatpush3.bf16.msra.mxu1 (!%p222_p3), %v1792_v0  ;;  %v2065_v21 = vld [vmem:[%s2513_s3] ss:$0 sm:$0xff] (!%p222_p3) }
   0x9   : > { %1726 = vmatprep.subr.bf16.mxu0 (!%p222_p3), %v1793_v1  ;;  %1763 = vmatprep.subr.bf16.mxu1 (!%p222_p3), %v1793_v1 }
   0xc   : > { %1727 = vmatpush3.bf16.msra.mxu0 (!%p222_p3), %v1793_v1  ;;  %1766 = vmatpush3.bf16.msra.mxu1 (!%p222_p3), %v1793_v1 }
   0xd   : > { %1728 = vmatprep.subr.bf16.mxu0 (!%p222_p3), %v1794_v2  ;;  %1764 = vmatprep.subr.bf16.mxu1 (!%p222_p3), %v1794_v2 }
   0xe   : > { %s2520_s21 = smov (!%p268_p4, %s1503_s21), 63 }
   0xf   : > { %s1504_s26 = sshll.u32 %s2520_s21, 2 }
  0x10   : > { %s2023_s29 = scalar_lea.vmem %s2510_s0, %s1504_s26  ;;  %1729 = vmatpush3.bf16.msra.mxu0 %v1794_v2  ;;  %1767 = vmatpush3.bf16.msra.mxu1 %v1794_v2  ;;  %s2267_s10 = scalar_lea.vmem %s2514_s4, %s1504_s26 }
  0x11   : > { %v1795_v3 = vld [vmem:[%s2023_s29] sm:$0xff]   ;;  %v1797_v5 = vld [vmem:[%s2023_s29 + $0x8] sm:$0xff]   ;;  %v1799_v7 = vld [vmem:[%s2023_s29 + $0x10] sm:$0xff]  }
  0x12   : > { %v1796_v4 = vld [vmem:[%s2023_s29 + $0x40] sm:$0xff]   ;;  %1730 = vmatprep.mubr.msk.bf16.mxu0 %vm505_vm0, %v1795_v3  ;;  %v1798_v6 = vld [vmem:[%s2023_s29 + $0x48] sm:$0xff]   ;;  %v1800_v8 = vld [vmem:[%s2023_s29 + $0x50] sm:$0xff]  }
  0x13   : > { %1746 = vmatprep.mubr.msk.bf16.mxu1 %vm505_vm0, %v1796_v4  ;;  %1731 = vmatmul.mubr.msk.bf16.vlgmr.msra.gmra.mrb[0].mxu0 %vm505_vm0, %v1797_v5  ;;  %v1801_v9 = vld [vmem:[%s2023_s29 + $0x18] sm:$0xff]   ;;  %v1803_v11 = vld [vmem:[%s2023_s29 + $0x20] sm:$0xff]   ;;  %v1805_v13 = vld [vmem:[%s2023_s29 + $0x28] sm:$0xff]  }
  0x14   : > { %1747 = vmatmul.mubr.msk.bf16.vlgmr.msra.gmra.mrb[0].mxu1 %vm505_vm0, %v1798_v6  ;;  %1734 = vmatprep.mubr.msk.bf16.mxu0 %vm505_vm0, %v1799_v7  ;;  %v1802_v10 = vld [vmem:[%s2023_s29 + $0x58] sm:$0xff]   ;;  %v1804_v12 = vld [vmem:[%s2023_s29 + $0x60] sm:$0xff]   ;;  %v1806_v14 = vld [vmem:[%s2023_s29 + $0x68] sm:$0xff]  }
  0x15   : > { %1750 = vmatprep.mubr.msk.bf16.mxu1 %vm505_vm0, %v1800_v8  ;;  %v1807_v15 = vld [vmem:[%s2023_s29 + $0x30] sm:$0xff]   ;;  %v1809_v17 = vld [vmem:[%s2023_s29 + $0x38] sm:$0xff]  }
  0x16   : > { %v1808_v16 = vld [vmem:[%s2023_s29 + $0x70] sm:$0xff]   ;;  %v1810_v18 = vld [vmem:[%s2023_s29 + $0x78] sm:$0xff]  }
  0x1b   : > { %1735 = vmatmul.mubr.msk.bf16.gmra.mrb[4].mxu0 %vm505_vm0, %v1801_v9 }
  0x1c   : > { %1751 = vmatmul.mubr.msk.bf16.gmra.mrb[4].mxu1 %vm505_vm0, %v1802_v10  ;;  %1738 = vmatprep.mubr.msk.bf16.mxu0 %vm505_vm0, %v1803_v11 }
  0x1d   : > { %1754 = vmatprep.mubr.msk.bf16.mxu1 %vm505_vm0, %v1804_v12 }
  0x23   : > { %1739 = vmatmul.mubr.msk.bf16.gmra.mrb[8].mxu0 %vm505_vm0, %v1805_v13 }
  0x24   : > { %1755 = vmatmul.mubr.msk.bf16.gmra.mrb[8].mxu1 %vm505_vm0, %v1806_v14  ;;  %1742 = vmatprep.mubr.msk.bf16.mxu0 %vm505_vm0, %v1807_v15 }
  0x25   : > { %1758 = vmatprep.mubr.msk.bf16.mxu1 %vm505_vm0, %v1808_v16 }
  0x2b   : > { %1743 = vmatmul.mubr.msk.bf16.gmra.mrb[12].mxu0 %vm505_vm0, %v1809_v17 }
  0x2c   : > { %1759 = vmatmul.mubr.msk.bf16.gmra.mrb[12].mxu1 %vm505_vm0, %v1810_v18 }
  0xe6   : > { %v1732_v20 = vpop.f32.mrb[0].mxu0 }
  0xe7   : > { %v1748_v22 = vpop.f32.mrb[0].mxu1  ;;  %v823_v23 = vmul.f32 %v1732_v20, %v2060_v19  ;;  %v588_v25 = vpop.f32.mrb[1].mxu0 }
  0xe8   : > { %v839_v24 = vmul.f32 %v1748_v22, %v2060_v19  ;;  %v652_v26 = vpop.f32.mrb[1].mxu1  ;;  %v821_v27 = vmul.f32 %v2060_v19, %v588_v25  ;;  %v1733_v29 = vpop.f32.mrb[2].mxu0 }
  0xe9   : > { %v837_v28 = vmul.f32 %v2060_v19, %v652_v26  ;;  %v1749_v30 = vpop.f32.mrb[2].mxu1  ;;  %v2072_v31 = vadd.f32 %v2065_v21, %v823_v23  ;;  %v824_v33 = vmul.f32 %v1733_v29, %v2060_v19  ;;  %v591_v35 = vpop.f32.mrb[3].mxu0 }
  0xea   : > { %v2075_v32 = vadd.f32 %v2065_v21, %v839_v24  ;;  %v840_v34 = vmul.f32 %v1749_v30, %v2060_v19  ;;  %v655_v36 = vpop.f32.mrb[3].mxu1  ;;  %v2080_v37 = vadd.f32 %v2065_v21, %v821_v27  ;;  %v822_v39 = vmul.f32 %v2060_v19, %v591_v35 }
  0xeb   : > { %v2083_v38 = vadd.f32 %v2065_v21, %v837_v28  ;;  %v838_v40 = vmul.f32 %v2060_v19, %v655_v36  ;;  %v894_v41 = vand.u32 2147483647, %v2072_v31  ;;  %v2092_v47 = vadd.f32 %v2065_v21, %v824_v33 }
  0xec   : > { %v910_v42 = vand.u32 2147483647, %v2075_v32  ;;  %v892_v43 = vand.u32 2147483647, %v2080_v37  ;;  %v2095_v48 = vadd.f32 %v2065_v21, %v840_v34  ;;  %v2098_v51 = vadd.f32 %v2065_v21, %v822_v39 }
  0xed   : > { %v908_v44 = vand.u32 2147483647, %v2083_v38  ;;  %v926_v45 = vsub.f32 0.0, %v894_v41  ;;  %v2101_v52 = vadd.f32 %v2065_v21, %v838_v40  ;;  %v895_v57 = vand.u32 2147483647, %v2092_v47 }
  0xee   : > { %v942_v46 = vsub.f32 0.0, %v910_v42  ;;  %v924_v49 = vsub.f32 0.0, %v892_v43  ;;  %v1736_v53 = vpop.f32.mrb[4].mxu0  ;;  %v911_v62 = vand.u32 2147483647, %v2095_v48  ;;  %vm1086_vm1 = vcmp.ge.f32.partialorder %v2072_v31, 0.0 }
  0xef   : > { %v940_v50 = vsub.f32 0.0, %v908_v44  ;;  %v1752_v54 = vpop.f32.mrb[4].mxu1  ;;  %v960_v55 = vmul.f32 1.442695, %v926_v45  ;;  %v827_v60 = vmul.f32 %v1736_v53, %v2060_v19  ;;  %v927_v61 = vsub.f32 0.0, %v895_v57  ;;  %v604_v0 = vpop.f32.mrb[5].mxu0 }
  0xf0   : > { %v992_v56 = vmul.f32 1.442695, %v942_v46  ;;  %v956_v58 = vmul.f32 1.442695, %v924_v49  ;;  %v893_v63 = vand.u32 2147483647, %v2098_v51  ;;  %v843_v11 = vmul.f32 %v1752_v54, %v2060_v19 }
  0xf1   : > { %v988_v59 = vmul.f32 1.442695, %v940_v50  ;;  %1811 = vpow2.f32 %v960_v55  ;;  %v909_v1 = vand.u32 2147483647, %v2101_v52  ;;  %v668_v2 = vpop.f32.mrb[5].mxu1  ;;  %v1737_v3 = vpop.f32.mrb[6].mxu0  ;;  %v2109_v10 = vadd.f32 %v2065_v21, %v827_v60 }
  0xf2   : > { %1813 = vpow2.f32 %v992_v56  ;;  %v962_v4 = vmul.f32 1.442695, %v927_v61  ;;  %v943_v5 = vsub.f32 0.0, %v911_v62  ;;  %v925_v6 = vsub.f32 0.0, %v893_v63  ;;  %v1753_v7 = vpop.f32.mrb[6].mxu1  ;;  %v607_v8 = vpop.f32.mrb[7].mxu0 }
  0xf3   : > { %1815 = vpow2.f32 %v956_v58  ;;  %v941_v9 = vsub.f32 0.0, %v909_v1  ;;  %v2112_v12 = vpop.f32.mrb[7].mxu1  ;;  %v825_v15 = vmul.f32 %v2060_v19, %v604_v0  ;;  %v898_v17 = vand.u32 2147483647, %v2109_v10 }
  0xf4   : > { %1817 = vpow2.f32 %v988_v59  ;;  %v994_v13 = vmul.f32 1.442695, %v943_v5  ;;  %v958_v14 = vmul.f32 1.442695, %v925_v6  ;;  %v2117_v18 = vadd.f32 %v2065_v21, %v843_v11 }
  0xf5   : > { %1819 = vpow2.f32 %v962_v4  ;;  %v990_v16 = vmul.f32 1.442695, %v941_v9  ;;  %v2122_v22 = vadd.f32 %v2065_v21, %v825_v15  ;;  %v841_v23 = vmul.f32 %v2060_v19, %v668_v2 }
  0xf6   : > { %v2119_v20 = vpop.f32.mrb[8].mxu0  ;;  %1821 = vpow2.f32 %v994_v13  ;;  %v828_v24 = vmul.f32 %v1737_v3, %v2060_v19  ;;  %v930_v27 = vsub.f32 0.0, %v898_v17  ;;  %v914_v28 = vand.u32 2147483647, %v2117_v18 }
  0xf7   : > { %v2126_v25 = vpop.f32.mrb[8].mxu1  ;;  %v2128_v26 = vpop.f32.mrb[9].mxu0  ;;  %1823 = vpow2.f32 %v958_v14  ;;  %v896_v33 = vand.u32 2147483647, %v2122_v22  ;;  %v2137_v34 = vadd.f32 %v2065_v21, %v841_v23  ;;  %v844_v42 = vmul.f32 %v1753_v7, %v2060_v19 }
  0xf8   : > { %v2131_v29 = vpop.f32.mrb[9].mxu1  ;;  %v2133_v30 = vpop.f32.mrb[10].mxu0  ;;  %1825 = vpow2.f32 %v990_v16  ;;  %v968_v39 = vmul.f32 1.442695, %v930_v27  ;;  %v946_v40 = vsub.f32 0.0, %v914_v28  ;;  %v2144_v41 = vadd.f32 %v2065_v21, %v828_v24 }
  0xf9   : > { %v2139_v35 = vpop.f32.mrb[10].mxu1  ;;  %v2141_v36 = vpop.f32.mrb[11].mxu0  ;;  %v928_v45 = vsub.f32 0.0, %v896_v33  ;;  %v826_v46 = vmul.f32 %v2060_v19, %v607_v8  ;;  %v912_v53 = vand.u32 2147483647, %v2137_v34  ;;  %v2164_v60 = vadd.f32 %v2065_v21, %v844_v42 }
  0xfa   : > { %v2147_v43 = vpop.f32.mrb[11].mxu1  ;;  %1827 = vpow2.f32 %v968_v39  ;;  %v899_v56 = vand.u32 2147483647, %v2144_v41  ;;  %v1000_v59 = vmul.f32 1.442695, %v946_v40  ;;  %v842_v24 = vmul.f32 %v2060_v19, %v2112_v12 }
  0xfb   : > { %v2149_v44 = vpop.eup %1811  ;;  %v964_v1 = vmul.f32 1.442695, %v928_v45  ;;  %v2174_v2 = vadd.f32 %v2065_v21, %v826_v46  ;;  %v944_v6 = vsub.f32 0.0, %v912_v53  ;;  %v915_v7 = vand.u32 2147483647, %v2164_v60 }
  0xfc   : > { %v2152_v49 = vpop.eup %1813  ;;  %v1022_v50 = vadd.f32 1.0, %v2149_v44  ;;  %v931_v11 = vsub.f32 0.0, %v899_v56  ;;  %vm1102_vm2 = vcmp.ge.f32.partialorder %v2075_v32, 0.0  ;;  %v831_v40 = vmul.f32 %v2119_v20, %v2060_v19 }
  0xfd   : > { %v2156_v54 = vpop.eup %1815  ;;  %v1038_v55 = vadd.f32 1.0, %v2152_v49  ;;  %v897_v13 = vand.u32 2147483647, %v2174_v2  ;;  %v947_v23 = vsub.f32 0.0, %v915_v7  ;;  %v996_v45 = vmul.f32 1.442695, %v944_v6 }
  0xfe   : > { %v2160_v57 = vpop.eup %1817  ;;  %1829 = vrcp.f32 %v1022_v50  ;;  %v1020_v58 = vadd.f32 1.0, %v2156_v54  ;;  %v2166_v61 = vpop.f32.mrb[12].mxu0  ;;  %v2207_v46 = vadd.f32 %v2065_v21, %v842_v24  ;;  %vm1084_vm3 = vcmp.ge.f32.partialorder %v2080_v37, 0.0 }
  0xff   : > { %v2168_v62 = vpop.f32.mrb[12].mxu1  ;;  %v2170_v63 = vpop.eup %1819  ;;  %1831 = vrcp.f32 %v1038_v55  ;;  %v1036_v0 = vadd.f32 1.0, %v2160_v57  ;;  %v929_v39 = vsub.f32 0.0, %v897_v13  ;;  %v2211_v12 = vadd.f32 %v2065_v21, %v831_v40 }
 0x100   : > { %v2176_v3 = vpop.f32.mrb[13].mxu0  ;;  %v2178_v4 = vpop.f32.mrb[13].mxu1  ;;  %1833 = vrcp.f32 %v1020_v58  ;;  %v1023_v5 = vadd.f32 1.0, %v2170_v63  ;;  %v847_v50 = vmul.f32 %v2126_v25, %v2060_v19  ;;  %vm1087_vm4 = vcmp.ge.f32.partialorder %v2092_v47, 0.0 }
 0x101   : > { %v2182_v8 = vpop.f32.mrb[14].mxu0  ;;  %v2184_v9 = vpop.eup %1821  ;;  %1835 = vrcp.f32 %v1036_v0  ;;  %v970_v20 = vmul.f32 1.442695, %v931_v11  ;;  %v1002_v55 = vmul.f32 1.442695, %v947_v23  ;;  %vm1100_vm5 = vcmp.ge.f32.partialorder %v2083_v38, 0.0 }
 0x102   : > { %v2187_v14 = vpop.f32.mrb[14].mxu1  ;;  %v2189_v15 = vpop.f32.mrb[15].mxu0  ;;  %1837 = vrcp.f32 %v1023_v5  ;;  %v1039_v17 = vadd.f32 1.0, %v2184_v9  ;;  %v913_v56 = vand.u32 2147483647, %v2207_v46  ;;  %vm1103_vm6 = vcmp.ge.f32.partialorder %v2095_v48, 0.0 }
 0x103   : > { %v2191_v16 = vpop.eup %1823  ;;  %v2197_v27 = vpop.f32.mrb[15].mxu1  ;;  %1839 = vpow2.f32 %v1000_v59  ;;  %v966_v59 = vmul.f32 1.442695, %v929_v39  ;;  %v902_v0 = vand.u32 2147483647, %v2211_v12  ;;  %v2224_v6 = vadd.f32 %v2065_v21, %v847_v50 }
 0x104   : > { %v2199_v28 = vpop.eup %1825  ;;  %v1021_v33 = vadd.f32 1.0, %v2191_v16  ;;  %1841 = vrcp.f32 %v1039_v17  ;;  %v945_v25 = vsub.f32 0.0, %v913_v56  ;;  %v829_v7 = vmul.f32 %v2060_v19, %v2128_v26 }
 0x105   : > { %v1037_v42 = vadd.f32 1.0, %v2199_v28  ;;  %v2215_v53 = vpop.eup %1827  ;;  %vm1085_vm7 = vcmp.ge.f32.partialorder %v2098_v51, 0.0  ;;  %vm1101_vm8 = vcmp.ge.f32.partialorder %v2101_v52, 0.0  ;;  %vm1090_vm9 = vcmp.ge.f32.partialorder %v2109_v10, 0.0 }
 0x106   : > { %1843 = vrcp.f32 %v1021_v33  ;;  %v1026_v58 = vadd.f32 1.0, %v2215_v53  ;;  %v998_v24 = vmul.f32 1.442695, %v945_v25  ;;  %v918_v33 = vand.u32 2147483647, %v2224_v6 }
 0x107   : > { %1845 = vrcp.f32 %v1037_v42  ;;  %v2240_v50 = vadd.f32 %v2065_v21, %v829_v7  ;;  %vm1106_vm10 = vcmp.ge.f32.partialorder %v2117_v18, 0.0  ;;  %vm1088_vm11 = vcmp.ge.f32.partialorder %v2122_v22, 0.0 }
 0x108   : > { %1847 = vpow2.f32 %v964_v1  ;;  %v1830_v5 = vpop.eup %1829  ;;  %v934_v1 = vsub.f32 0.0, %v902_v0  ;;  %vm1104_vm12 = vcmp.ge.f32.partialorder %v2137_v34, 0.0  ;;  %vm1091_vm13 = vcmp.ge.f32.partialorder %v2144_v41, 0.0 }
 0x109   : > { %1849 = vpow2.f32 %v996_v45  ;;  %v1832_v11 = vpop.eup %1831  ;;  %v1118_v13 = vmul.f32 %v1830_v5, %v2149_v44  ;;  %vm1107_vm14 = vcmp.ge.f32.partialorder %v2164_v60, 0.0  ;;  %vm1089_vm15 = vcmp.ge.f32.partialorder %v2174_v2, 0.0 }
 0x10a   : > { %1851 = vrcp.f32 %v1026_v58  ;;  %v1834_v17 = vpop.eup %1833  ;;  %v1134_v23 = vmul.f32 %v1832_v11, %v2152_v49  ;;  %v976_v44 = vmul.f32 1.442695, %v934_v1  ;;  %vm1105_vm0 = vcmp.ge.f32.partialorder %v2207_v46, 0.0 }
 0x10b   : > { %1853 = vpow2.f32 %v970_v20  ;;  %v1836_v39 = vpop.eup %1835  ;;  %v1150_v26 = vsel %vm1086_vm1, %v1830_v5, %v1118_v13  ;;  %v1116_v40 = vmul.f32 %v1834_v17, %v2156_v54  ;;  %v845_v54 = vmul.f32 %v2060_v19, %v2131_v29 }
 0x10c   : > { %1855 = vpow2.f32 %v1002_v55  ;;  %v1838_v42 = vpop.eup %1837  ;;  %v1166_v45 = vsel %vm1102_vm2, %v1832_v11, %v1134_v23  ;;  %v1132_v49 = vmul.f32 %v1836_v39, %v2160_v57  ;;  %v1182_v0 = vmul.f32 %v1150_v26, %v2072_v31 }
 0x10d   : > { %1857 = vpow2.f32 %v966_v59  ;;  %v2242_v20 = vpop.eup %1839  ;;  %v1148_v56 = vsel %vm1084_vm3, %v1834_v17, %v1116_v40  ;;  %v1119_v58 = vmul.f32 %v1838_v42, %v2170_v63  ;;  %v1198_v57 = vmul.f32 %v1166_v45, %v2075_v32 }
 0x10e   : > { %1859 = vpow2.f32 %v998_v24  ;;  %v1842_v55 = vpop.eup %1841  ;;  %v1180_v59 = vmul.f32 %v1148_v56, %v2080_v37  ;;  %v1042_v5 = vadd.f32 1.0, %v2242_v20  ;;  %v950_v11 = vsub.f32 0.0, %v918_v33 }
 0x10f   : > { %v1151_v7 = vsel %vm1087_vm4, %v1838_v42, %v1119_v58  ;;  %v1135_v63 = vmul.f32 %v1842_v55, %v2184_v9  ;;  %1861 = vpow2.f32 %v976_v44  ;;  %v1164_v29 = vsel %vm1100_vm5, %v1836_v39, %v1132_v49 }
 0x110   : > { %v1844_v25 = vpop.eup %1843  ;;  %v1183_v31 = vmul.f32 %v1151_v7, %v2092_v47  ;;  %1863 = vrcp.f32 %v1042_v5  ;;  %v1008_v17 = vmul.f32 1.442695, %v950_v11  ;;  %v900_v47 = vand.u32 2147483647, %v2240_v50 }
 0x111   : > { %v1846_v13 = vpop.eup %1845  ;;  %v1117_v32 = vmul.f32 %v1844_v25, %v2191_v16  ;;  %v1167_v9 = vsel %vm1103_vm6, %v1842_v55, %v1135_v63  ;;  %v1196_v45 = vmul.f32 %v1164_v29, %v2083_v38  ;;  %v2305_v63 = vadd.f32 %v2065_v21, %v845_v54 }
 0x112   : > { %v2260_v37 = vpop.eup %1847  ;;  %v1133_v1 = vmul.f32 %v1846_v13, %v2199_v28  ;;  %v1618_v16 = vpack.c.bf16 %v1183_v31, %v1182_v0  ;;  %v1199_v24 = vmul.f32 %v1167_v9, %v2095_v48  ;;  %1865 = vpow2.f32 %v1008_v17 }
 0x113   : > { %v2273_v23 = vpop.eup %1849  ;;  %v1149_v33 = vsel %vm1085_vm7, %v1844_v25, %v1117_v32  ;;  %v1024_v39 = vadd.f32 1.0, %v2260_v37  ;;  %v932_v55 = vsub.f32 0.0, %v900_v47  ;;  %v832_v11 = vmul.f32 %v2133_v30, %v2060_v19 }
 0x114   : > { %v1852_v26 = vpop.eup %1851  ;;  %v1181_v40 = vmul.f32 %v1149_v33, %v2098_v51  ;;  %v1165_v28 = vsel %vm1101_vm8, %v1846_v13, %v1133_v1  ;;  %v1040_v44 = vadd.f32 1.0, %v2273_v23  ;;  %1690 = vst [vmem:[%s2267_s10 + $0x8] sm:$0xff] %v1618_v16   ;;  %v1658_v48 = vpack.c.bf16 %v1199_v24, %v1198_v57 }
 0x115   : > { %v2283_v42 = vpop.eup %1853  ;;  %v1197_v49 = vmul.f32 %v1165_v28, %v2101_v52  ;;  %1867 = vrcp.f32 %v1024_v39  ;;  %v1122_v52 = vmul.f32 %v1852_v26, %v2215_v53  ;;  %v972_v25 = vmul.f32 1.442695, %v932_v55 }
 0x116   : > { %v2288_v56 = vpop.eup %1855  ;;  %v1613_v51 = vpack.c.bf16 %v1181_v40, %v1180_v59  ;;  %1869 = vrcp.f32 %v1040_v44  ;;  %v1027_v58 = vadd.f32 1.0, %v2283_v42  ;;  %1698 = vst [vmem:[%s2267_s10 + $0x48] sm:$0xff] %v1658_v48   ;;  %v848_v53 = vmul.f32 %v2139_v35, %v2060_v19 }
 0x117   : > { %v2291_v0 = vpop.eup %1857  ;;  %v1653_v5 = vpack.c.bf16 %v1197_v49, %v1196_v45  ;;  %v1043_v38 = vadd.f32 1.0, %v2288_v56  ;;  %v830_v29 = vmul.f32 %v2060_v19, %v2141_v36  ;;  %v916_v54 = vand.u32 2147483647, %v2305_v63 }
 0x118   : > { %v2296_v57 = vpop.eup %1859  ;;  %1614 = vst [vmem:[%s2267_s10] sm:$0xff] %v1613_v51   ;;  %1871 = vrcp.f32 %v1027_v58  ;;  %v1025_v59 = vadd.f32 1.0, %v2291_v0  ;;  %v2319_v32 = vadd.f32 %v2065_v21, %v832_v11  ;;  %v1154_v30 = vsel %vm1090_vm9, %v1852_v26, %v1122_v52 }
 0x119   : > { %1697 = vst [vmem:[%s2267_s10 + $0x40] sm:$0xff] %v1653_v5   ;;  %1873 = vrcp.f32 %v1043_v38  ;;  %v1041_v7 = vadd.f32 1.0, %v2296_v57  ;;  %v2309_v13 = vpop.eup %1861  ;;  %v2325_v9 = vadd.f32 %v2065_v21, %v848_v53  ;;  %v2328_v35 = vadd.f32 %v2065_v21, %v830_v29 }
 0x11a   : > { %1875 = vrcp.f32 %v1025_v59  ;;  %v1864_v31 = vpop.eup %1863  ;;  %v1030_v36 = vadd.f32 1.0, %v2309_v13  ;;  %v948_v1 = vsub.f32 0.0, %v916_v54  ;;  %v903_v17 = vand.u32 2147483647, %v2319_v32 }
 0x11b   : > { %1877 = vrcp.f32 %v1041_v7  ;;  %v1138_v16 = vmul.f32 %v1864_v31, %v2242_v20  ;;  %v919_v24 = vand.u32 2147483647, %v2325_v9  ;;  %v901_v33 = vand.u32 2147483647, %v2328_v35 }
 0x11c   : > { %1879 = vpow2.f32 %v972_v25  ;;  %v2332_v47 = vpop.eup %1865  ;;  %v1004_v26 = vmul.f32 1.442695, %v948_v1  ;;  %v935_v40 = vsub.f32 0.0, %v903_v17  ;;  %v1186_v44 = vmul.f32 %v1154_v30, %v2109_v10 }
 0x11d   : > { %v951_v48 = vsub.f32 0.0, %v919_v24  ;;  %v933_v20 = vsub.f32 0.0, %v901_v33  ;;  %1881 = vrcp.f32 %v1030_v36  ;;  %v846_v58 = vmul.f32 %v2060_v19, %v2147_v43 }
 0x11e   : > { %v978_v51 = vmul.f32 1.442695, %v935_v40  ;;  %v1170_v5 = vsel %vm1106_vm10, %v1864_v31, %v1138_v16  ;;  %1883 = vpow2.f32 %v1004_v26  ;;  %vm1094_vm1 = vcmp.ge.f32.partialorder %v2211_v12, 0.0 }
 0x11f   : > { %v1868_v39 = vpop.eup %1867  ;;  %v1010_v38 = vmul.f32 1.442695, %v951_v48  ;;  %v974_v52 = vmul.f32 1.442695, %v933_v20  ;;  %v2355_v11 = vadd.f32 %v2065_v21, %v846_v58  ;;  %v1202_v17 = vmul.f32 %v1170_v5, %v2117_v18 }
 0x120   : > { %v1870_v28 = vpop.eup %1869  ;;  %v1120_v45 = vmul.f32 %v1868_v39, %v2260_v37  ;;  %1885 = vpow2.f32 %v978_v51  ;;  %v849_v20 = vmul.f32 %v2060_v19, %v2178_v4  ;;  %vm1110_vm2 = vcmp.ge.f32.partialorder %v2224_v6, 0.0 }
 0x121   : > { %v1136_v49 = vmul.f32 %v1870_v28, %v2273_v23  ;;  %v1046_v23 = vadd.f32 1.0, %v2332_v47  ;;  %1887 = vpow2.f32 %v1010_v38  ;;  %v917_v36 = vand.u32 2147483647, %v2355_v11 }
 0x122   : > { %v1872_v55 = vpop.eup %1871  ;;  %v1152_v10 = vsel %vm1088_vm11, %v1868_v39, %v1120_v45  ;;  %1889 = vpow2.f32 %v974_v52  ;;  %v851_v45 = vmul.f32 %v2168_v62, %v2060_v19  ;;  %v2405_v5 = vadd.f32 %v2065_v21, %v849_v20 }
 0x123   : > { %v1874_v59 = vpop.eup %1873  ;;  %v1123_v37 = vmul.f32 %v1872_v55, %v2283_v42  ;;  %v1168_v43 = vsel %vm1104_vm12, %v1870_v28, %v1136_v49  ;;  %v835_v42 = vmul.f32 %v2166_v61, %v2060_v19  ;;  %v949_v26 = vsub.f32 0.0, %v917_v36 }
 0x124   : > { %v1876_v25 = vpop.eup %1875  ;;  %v1139_v7 = vmul.f32 %v1874_v59, %v2288_v56  ;;  %v1200_v39 = vmul.f32 %v1168_v43, %v2137_v34  ;;  %1891 = vrcp.f32 %v1046_v23  ;;  %v833_v34 = vmul.f32 %v2060_v19, %v2176_v3 }
 0x125   : > { %v1878_v53 = vpop.eup %1877  ;;  %v1155_v29 = vsel %vm1091_vm13, %v1872_v55, %v1123_v37  ;;  %v1121_v31 = vmul.f32 %v1876_v25, %v2291_v0  ;;  %v1184_v0 = vmul.f32 %v1152_v10, %v2122_v22  ;;  %v2382_v40 = vadd.f32 %v2065_v21, %v835_v42 }
 0x126   : > { %v1187_v54 = vmul.f32 %v1155_v29, %v2144_v41  ;;  %v1171_v30 = vsel %vm1107_vm14, %v1874_v59, %v1139_v7  ;;  %v1137_v56 = vmul.f32 %v1878_v53, %v2296_v57  ;;  %v2367_v1 = vpop.eup %1879  ;;  %v2397_v51 = vadd.f32 %v2065_v21, %v851_v45 }
 0x127   : > { %v1203_v16 = vmul.f32 %v1171_v30, %v2164_v60  ;;  %v1153_v41 = vsel %vm1089_vm15, %v1876_v25, %v1121_v31  ;;  %v1028_v33 = vadd.f32 1.0, %v2367_v1  ;;  %v2400_v62 = vadd.f32 %v2065_v21, %v833_v34 }
 0x128   : > { %v1628_v61 = vpack.c.bf16 %v1187_v54, %v1186_v44  ;;  %v1185_v24 = vmul.f32 %v1153_v41, %v2174_v2  ;;  %v1169_v57 = vsel %vm1105_vm0, %v1878_v53, %v1137_v56  ;;  %v1882_v2 = vpop.eup %1881  ;;  %v1006_v44 = vmul.f32 1.442695, %v949_v26 }
 0x129   : > { %v1668_v18 = vpack.c.bf16 %v1203_v16, %v1202_v17  ;;  %v1201_v22 = vmul.f32 %v1169_v57, %v2207_v46  ;;  %v2389_v48 = vpop.eup %1883  ;;  %1893 = vrcp.f32 %v1028_v33  ;;  %v906_v46 = vand.u32 2147483647, %v2382_v40 }
 0x12a   : > { %1692 = vst [vmem:[%s2267_s10 + $0x18] sm:$0xff] %v1628_v61   ;;  %v1623_v60 = vpack.c.bf16 %v1185_v24, %v1184_v0  ;;  %v1886_v49 = vpop.eup %1885  ;;  %1895 = vpow2.f32 %v1006_v44  ;;  %v922_v52 = vand.u32 2147483647, %v2397_v51  ;;  %v1044_v59 = vadd.f32 1.0, %v2389_v48 }
 0x12b   : > { %1700 = vst [vmem:[%s2267_s10 + $0x58] sm:$0xff] %v1668_v18   ;;  %v1663_v28 = vpack.c.bf16 %v1201_v22, %v1200_v39  ;;  %v2402_v58 = vpop.eup %1887  ;;  %v1031_v3 = vadd.f32 1.0, %v1886_v49  ;;  %v938_v55 = vsub.f32 0.0, %v906_v46  ;;  %v904_v25 = vand.u32 2147483647, %v2400_v62 }
 0x12c   : > { %1691 = vst [vmem:[%s2267_s10 + $0x10] sm:$0xff] %v1623_v60   ;;  %v2407_v38 = vpop.eup %1889  ;;  %v1047_v4 = vadd.f32 1.0, %v2402_v58  ;;  %v954_v23 = vsub.f32 0.0, %v922_v52  ;;  %v1126_v43 = vmul.f32 %v1882_v2, %v2309_v13  ;;  %v920_v7 = vand.u32 2147483647, %v2405_v5 }
 0x12d   : > { %1699 = vst [vmem:[%s2267_s10 + $0x50] sm:$0xff] %v1663_v28   ;;  %1897 = vrcp.f32 %v1031_v3  ;;  %v1029_v10 = vadd.f32 1.0, %v2407_v38  ;;  %v984_v37 = vmul.f32 1.442695, %v938_v55  ;;  %v836_v53 = vmul.f32 %v2182_v8, %v2060_v19 }
 0x12e   : > { %1899 = vrcp.f32 %v1047_v4  ;;  %v1016_v29 = vmul.f32 1.442695, %v954_v23  ;;  %v936_v31 = vsub.f32 0.0, %v904_v25  ;;  %v852_v42 = vmul.f32 %v2187_v14, %v2060_v19  ;;  %v1892_v54 = vpop.eup %1891 }
 0x12f   : > { %1901 = vrcp.f32 %v1029_v10  ;;  %v952_v30 = vsub.f32 0.0, %v920_v7  ;;  %v2423_v56 = vadd.f32 %v2065_v21, %v836_v53  ;;  %v834_v13 = vmul.f32 %v2060_v19, %v2189_v15 }
 0x130   : > { %1903 = vpow2.f32 %v984_v37  ;;  %v980_v36 = vmul.f32 1.442695, %v936_v31  ;;  %v2428_v8 = vadd.f32 %v2065_v21, %v852_v42  ;;  %v850_v17 = vmul.f32 %v2060_v19, %v2197_v27 }
 0x131   : > { %1905 = vrcp.f32 %v1044_v59  ;;  %vm1092_vm3 = vcmp.ge.f32.partialorder %v2240_v50, 0.0  ;;  %v1012_v14 = vmul.f32 1.442695, %v952_v30  ;;  %v907_v16 = vand.u32 2147483647, %v2423_v56 }
 0x132   : > { %1907 = vpow2.f32 %v1016_v29  ;;  %v2435_v41 = vadd.f32 %v2065_v21, %v834_v13  ;;  %v1158_v15 = vsel %vm1094_vm1, %v1882_v2, %v1126_v43  ;;  %vm1095_vm4 = vcmp.ge.f32.partialorder %v2319_v32, 0.0 }
 0x133   : > { %v1894_v0 = vpop.eup %1893  ;;  %1909 = vpow2.f32 %v980_v36  ;;  %v923_v24 = vand.u32 2147483647, %v2428_v8  ;;  %v1142_v19 = vmul.f32 %v1892_v54, %v2332_v47  ;;  %v939_v57 = vsub.f32 0.0, %v907_v16 }
 0x134   : > { %v2437_v61 = vpop.eup %1895  ;;  %1911 = vpow2.f32 %v1012_v14  ;;  %v1124_v33 = vmul.f32 %v1894_v0, %v2367_v1  ;;  %v905_v18 = vand.u32 2147483647, %v2435_v41  ;;  %v2448_v22 = vadd.f32 %v2065_v21, %v850_v17 }
 0x135   : > { %v1045_v27 = vadd.f32 1.0, %v2437_v61  ;;  %v955_v39 = vsub.f32 0.0, %v923_v24  ;;  %vm1111_vm5 = vcmp.ge.f32.partialorder %v2325_v9, 0.0  ;;  %vm1093_vm6 = vcmp.ge.f32.partialorder %v2328_v35, 0.0 }
 0x136   : > { %v986_v60 = vmul.f32 1.442695, %v939_v57  ;;  %v937_v44 = vsub.f32 0.0, %v905_v18  ;;  %v921_v45 = vand.u32 2147483647, %v2448_v22  ;;  %v1190_v34 = vmul.f32 %v1158_v15, %v2211_v12 }
 0x137   : > { %v1898_v26 = vpop.eup %1897  ;;  %1913 = vrcp.f32 %v1045_v27  ;;  %v1018_v28 = vmul.f32 1.442695, %v955_v39  ;;  %v1174_v21 = vsel %vm1110_vm2, %v1892_v54, %v1142_v19  ;;  %v1156_v3 = vsel %vm1092_vm3, %v1894_v0, %v1124_v33 }
 0x138   : > { %v1900_v47 = vpop.eup %1899  ;;  %v1127_v2 = vmul.f32 %v1898_v26, %v1886_v49  ;;  %1915 = vpow2.f32 %v986_v60  ;;  %v982_v10 = vmul.f32 1.442695, %v937_v44  ;;  %v1206_v37 = vmul.f32 %v1174_v21, %v2224_v6 }
 0x139   : > { %v1902_v1 = vpop.eup %1901  ;;  %v1143_v46 = vmul.f32 %v1900_v47, %v2402_v58  ;;  %1917 = vpow2.f32 %v1018_v28  ;;  %v1188_v43 = vmul.f32 %v1156_v3, %v2240_v50  ;;  %vm1108_vm7 = vcmp.ge.f32.partialorder %v2305_v63, 0.0 }
 0x13a   : > { %v1904_v20 = vpop.eup %1903  ;;  %v1159_v49 = vsel %vm1095_vm4, %v1898_v26, %v1127_v2  ;;  %v1125_v55 = vmul.f32 %v1902_v1, %v2407_v38  ;;  %v953_v38 = vsub.f32 0.0, %v921_v45  ;;  %1919 = vpow2.f32 %v982_v10 }
 0x13b   : > { %v1906_v4 = vpop.eup %1905  ;;  %v1191_v52 = vmul.f32 %v1159_v49, %v2319_v32  ;;  %v1175_v12 = vsel %vm1111_vm5, %v1900_v47, %v1143_v46  ;;  %v1034_v59 = vadd.f32 1.0, %v1904_v20  ;;  %vm1109_vm8 = vcmp.ge.f32.partialorder %v2355_v11, 0.0 }
 0x13c   : > { %v1908_v58 = vpop.eup %1907  ;;  %v1207_v23 = vmul.f32 %v1175_v12, %v2325_v9  ;;  %v1157_v25 = vsel %vm1093_vm6, %v1902_v1, %v1125_v55  ;;  %v1140_v31 = vmul.f32 %v1906_v4, %v2389_v48  ;;  %v1014_v6 = vmul.f32 1.442695, %v953_v38 }
 0x13d   : > { %v1638_v7 = vpack.c.bf16 %v1191_v52, %v1190_v34  ;;  %v1189_v32 = vmul.f32 %v1157_v25, %v2328_v35  ;;  %v1050_v53 = vadd.f32 1.0, %v1908_v58  ;;  %v1910_v29 = vpop.eup %1909  ;;  %1921 = vrcp.f32 %v1034_v59 }
 0x13e   : > { %v1678_v42 = vpack.c.bf16 %v1207_v23, %v1206_v37  ;;  %v1912_v54 = vpop.eup %1911  ;;  %v1032_v30 = vadd.f32 1.0, %v1910_v29  ;;  %1923 = vpow2.f32 %v1014_v6  ;;  %v1172_v35 = vsel %vm1108_vm7, %v1906_v4, %v1140_v31 }
 0x13f   : > { %1694 = vst [vmem:[%s2267_s10 + $0x28] sm:$0xff] %v1638_v7   ;;  %v1633_v9 = vpack.c.bf16 %v1189_v32, %v1188_v43  ;;  %1925 = vrcp.f32 %v1050_v53  ;;  %v1048_v50 = vadd.f32 1.0, %v1912_v54  ;;  %v1204_v16 = vmul.f32 %v1172_v35, %v2305_v63 }
 0x140   : > { %1702 = vst [vmem:[%s2267_s10 + $0x68] sm:$0xff] %v1678_v42   ;;  %1927 = vrcp.f32 %v1032_v30  ;;  %vm1098_vm9 = vcmp.ge.f32.partialorder %v2382_v40, 0.0  ;;  %vm1114_vm10 = vcmp.ge.f32.partialorder %v2397_v51, 0.0  ;;  %vm1099_vm11 = vcmp.ge.f32.partialorder %v2423_v56, 0.0 }
 0x141   : > { %v1914_v13 = vpop.eup %1913  ;;  %1693 = vst [vmem:[%s2267_s10 + $0x20] sm:$0xff] %v1633_v9   ;;  %1929 = vrcp.f32 %v1048_v50  ;;  %vm1115_vm12 = vcmp.ge.f32.partialorder %v2428_v8, 0.0  ;;  %vm1096_vm13 = vcmp.ge.f32.partialorder %v2400_v62, 0.0  ;;  %vm1112_vm14 = vcmp.ge.f32.partialorder %v2405_v5, 0.0 }
 0x142   : > { %v1141_v36 = vmul.f32 %v1914_v13, %v2437_v61  ;;  %v1916_v48 = vpop.eup %1915  ;;  %vm1097_vm15 = vcmp.ge.f32.partialorder %v2435_v41, 0.0  ;;  %vm1113_vm0 = vcmp.ge.f32.partialorder %v2448_v22, 0.0 }
 0x143   : > { %v1918_v17 = vpop.eup %1917  ;;  %v1035_v14 = vadd.f32 1.0, %v1916_v48 }
 0x144   : > { %v1173_v0 = vsel %vm1109_vm8, %v1914_v13, %v1141_v36  ;;  %v1051_v24 = vadd.f32 1.0, %v1918_v17  ;;  %v1920_v27 = vpop.eup %1919 }
 0x145   : > { %v1205_v15 = vmul.f32 %v1173_v0, %v2355_v11  ;;  %1931 = vrcp.f32 %v1035_v14  ;;  %v1033_v61 = vadd.f32 1.0, %v1920_v27 }
 0x146   : > { %1933 = vrcp.f32 %v1051_v24 }
 0x147   : > { %v1673_v19 = vpack.c.bf16 %v1205_v15, %v1204_v16  ;;  %v1922_v57 = vpop.eup %1921  ;;  %1935 = vrcp.f32 %v1033_v61 }
 0x148   : > { %v1924_v33 = vpop.eup %1923  ;;  %v1130_v26 = vmul.f32 %v1922_v57, %v1904_v20 }
 0x149   : > { %1701 = vst [vmem:[%s2267_s10 + $0x60] sm:$0xff] %v1673_v19   ;;  %v1926_v39 = vpop.eup %1925  ;;  %v1049_v18 = vadd.f32 1.0, %v1924_v33 }
 0x14a   : > { %v1928_v60 = vpop.eup %1927  ;;  %v1146_v47 = vmul.f32 %v1926_v39, %v1908_v58  ;;  %v1162_v28 = vsel %vm1098_vm9, %v1922_v57, %v1130_v26 }
 0x14b   : > { %1937 = vrcp.f32 %v1049_v18  ;;  %v1930_v63 = vpop.eup %1929  ;;  %v1128_v1 = vmul.f32 %v1928_v60, %v1910_v29  ;;  %v1194_v46 = vmul.f32 %v1162_v28, %v2382_v40 }
 0x14c   : > { %v1178_v45 = vsel %vm1114_vm10, %v1926_v39, %v1146_v47  ;;  %v1144_v20 = vmul.f32 %v1930_v63, %v1912_v54 }
 0x14d   : > { %v1210_v4 = vmul.f32 %v1178_v45, %v2397_v51  ;;  %v1160_v12 = vsel %vm1096_vm13, %v1928_v60, %v1128_v1 }
 0x14e   : > { %v1192_v51 = vmul.f32 %v1160_v12, %v2400_v62 }
 0x14f   : > { %v1932_v2 = vpop.eup %1931 }
 0x150   : > { %v1934_v11 = vpop.eup %1933  ;;  %v1131_v44 = vmul.f32 %v1932_v2, %v1916_v48 }
 0x151   : > { %v1147_v34 = vmul.f32 %v1934_v11, %v1918_v17  ;;  %v1936_v55 = vpop.eup %1935 }
 0x152   : > { %v1163_v21 = vsel %vm1099_vm11, %v1932_v2, %v1131_v44  ;;  %v1129_v10 = vmul.f32 %v1936_v55, %v1920_v27 }
 0x153   : > { %v1195_v3 = vmul.f32 %v1163_v21, %v2423_v56  ;;  %v1179_v49 = vsel %vm1115_vm12, %v1934_v11, %v1147_v34  ;;  %v1176_v56 = vsel %vm1112_vm14, %v1930_v63, %v1144_v20 }
 0x154   : > { %v1211_v52 = vmul.f32 %v1179_v49, %v2428_v8  ;;  %v1161_v37 = vsel %vm1097_vm15, %v1936_v55, %v1129_v10  ;;  %v1208_v38 = vmul.f32 %v1176_v56, %v2405_v5 }
 0x155   : > { %v1648_v59 = vpack.c.bf16 %v1195_v3, %v1194_v46  ;;  %v1938_v58 = vpop.eup %1937  ;;  %v1193_v8 = vmul.f32 %v1161_v37, %v2435_v41 }
 0x156   : > { %v1688_v40 = vpack.c.bf16 %v1211_v52, %v1210_v4  ;;  %v1145_v23 = vmul.f32 %v1938_v58, %v1924_v33 }
 0x157   : > { %1696 = vst [vmem:[%s2267_s10 + $0x38] sm:$0xff] %v1648_v59   ;;  %v1643_v43 = vpack.c.bf16 %v1193_v8, %v1192_v51 }
 0x158   : > { %1704 = vst [vmem:[%s2267_s10 + $0x78] sm:$0xff] %v1688_v40   ;;  %v1177_v25 = vsel %vm1113_vm0, %v1938_v58, %v1145_v23 }
 0x159   : > { %v1209_v7 = vmul.f32 %v1177_v25, %v2448_v22  ;;  %1695 = vst [vmem:[%s2267_s10 + $0x30] sm:$0xff] %v1643_v43  }
 0x15b   : > { %v1683_v32 = vpack.c.bf16 %v1209_v7, %v1208_v38 }
 0x15d   : > { %1703 = vst [vmem:[%s2267_s10 + $0x70] sm:$0xff] %v1683_v32  }
 0x15e PF: > { %s14_s17 = sadd.s32 1, %s1961_s17   ;;  %s2515_s15 = smov %s1957_s16 }
 0x15f   : > { %p11_p5 = scmp.ge.s32.totalorder %s14_s17, 4   ;;  %s2516_s16 = smov %s2518_s18 }
 0x161   :  { %13 = sbr.rel (!%p11_p5) target bundleno = 2 (0x2), region = 83 }

// kernel: fpn_forward.23
= control target key start
LH: loop header
LB: loop body
LE: loop exit
PB: predicated region body
PF: predicated region fallthrough
CT: control target
= control target key end

     0   :  { %s2020_s15 = smov 0   ;;  %s2022_s16 = smov 0   ;;  %s2548_s0 = inlined_call_operand.vmem [shape: bf16[512,72], index: 0, kind: input, shape index: {}]   ;;  %s2549_s1 = inlined_call_operand.vmem [shape: bf16[72,128], index: 1, kind: input, shape index: {}]   ;;  %s2550_s2 = inlined_call_operand.vmem [shape: f32[1,128], index: 2, kind: input, shape index: {}]   ;;  %s2551_s3 = inlined_call_operand.vmem [shape: f32[1,128], index: 3, kind: input, shape index: {}]   ;;  %s2552_s4 = inlined_call_operand.vmem [shape: bf16[512,128], index: 4, kind: output, shape index: {}]  }
   0x1   :  { %s2024_s17 = smov 0  }
   0x2 LB: > { %s33_s18 = sadd.s32 1, %s1989_s16  ;;  %p1518_p0 = scmp.ge.s32.totalorder %s1993_s17, 1  ;;  %s1993_s17 = sphi %s2024_s17, %s14_s17   ;;  %s1989_s16 = sphi %s2022_s16, %s2554_s16   ;;  %s1985_s15 = sphi %s2020_s15, %s2553_s15  }
   0x3   : > { %p35_p1 = scmp.ge.s32.totalorder %s33_s18, 2  ;;  %p221_p2 = scmp.lt.s32.totalorder %s1993_s17, 3 }
   0x5   : > { %s2556_s18 = smov (%p35_p1, %s33_s18), 0  ;;  %p222_p3 = pnand %p1518_p0, %p221_p2 }
   0x6   : > { %v1822_v0 = vld [vmem:[%s2549_s1] sm:$0xff] (!%p222_p3)   ;;  %v1823_v1 = vld [vmem:[%s2549_s1 + $0x8] sm:$0xff] (!%p222_p3)   ;;  %s1519_s23 = sshll.u32 (!%p222_p3), %s1985_s15, 5  ;;  %v1824_v2 = vld [vmem:[%s2549_s1 + $0x10] sm:$0xff] (!%p222_p3)   ;;  %vm517_vm0 = vcmask (!%p222_p3), 588800   ;;  %vm566_vm1 = vcmask (!%p222_p3), 1043456  }
   0x7   : > { %225 = sbr.rel (%p222_p3) target bundleno = 358 (0x166), region = 36  ;;  %1744 = vmatprep.subr.bf16.mxu0 (!%p222_p3), %v1822_v0  ;;  %1786 = vmatprep.subr.bf16.mxu1 (!%p222_p3), %v1822_v0  ;;  %p268_p4 = scmp.lt.s32.totalorder (!%p222_p3), %s1519_s23, 63  ;;  %v1825_v3 = vld [vmem:[%s2549_s1 + $0x18] sm:$0xff] (!%p222_p3)   ;;  %v1826_v6 = vld [vmem:[%s2549_s1 + $0x20] ss:$0 sps:$4 sm:$0xff] (!%p222_p3)  }
   0x8   : > { %1745 = vmatpush3.bf16.msra.mxu0 (!%p222_p3), %v1822_v0  ;;  %1791 = vmatpush3.bf16.msra.mxu1 (!%p222_p3), %v1822_v0  ;;  %v568_v7 = vsel (!%p222_p3), %vm566_vm1, %v1826_v6, 0  ;;  %v2098_v22 = vld [vmem:[%s2550_s2] ss:$0 sm:$0xff] (!%p222_p3) }
   0x9   : > { %1746 = vmatprep.subr.bf16.mxu0 (!%p222_p3), %v1823_v1  ;;  %1787 = vmatprep.subr.bf16.mxu1 (!%p222_p3), %v1823_v1  ;;  %v2103_v24 = vld [vmem:[%s2551_s3] ss:$0 sm:$0xff] (!%p222_p3) }
   0xc   : > { %1747 = vmatpush3.bf16.msra.mxu0 (!%p222_p3), %v1823_v1  ;;  %1792 = vmatpush3.bf16.msra.mxu1 (!%p222_p3), %v1823_v1 }
   0xd   : > { %1748 = vmatprep.subr.bf16.mxu0 (!%p222_p3), %v1824_v2  ;;  %1788 = vmatprep.subr.bf16.mxu1 (!%p222_p3), %v1824_v2 }
   0xe   : > { %s2558_s23 = smov (!%p268_p4, %s1519_s23), 63 }
   0xf   : > { %s1520_s26 = sshll.u32 %s2558_s23, 2 }
  0x10   : > { %s2058_s5 = scalar_lea.vmem %s2548_s0, %s1520_s26  ;;  %1749 = vmatpush3.bf16.msra.mxu0 %v1824_v2  ;;  %1793 = vmatpush3.bf16.msra.mxu1 %v1824_v2  ;;  %s2305_s14 = scalar_lea.vmem %s2552_s4, %s1520_s26 }
  0x11   : > { %v1827_v4 = vld [vmem:[%s2058_s5] sm:$0xff]   ;;  %1750 = vmatprep.subr.bf16.mxu0 %v1825_v3  ;;  %1789 = vmatprep.subr.bf16.mxu1 %v1825_v3  ;;  %v1829_v8 = vld [vmem:[%s2058_s5 + $0x8] sm:$0xff]   ;;  %v1831_v10 = vld [vmem:[%s2058_s5 + $0x10] sm:$0xff]  }
  0x12   : > { %v1828_v5 = vld [vmem:[%s2058_s5 + $0x40] sm:$0xff]   ;;  %1754 = vmatprep.mubr.msk.bf16.mxu0 %vm517_vm0, %v1827_v4  ;;  %v1830_v9 = vld [vmem:[%s2058_s5 + $0x48] sm:$0xff]   ;;  %v1832_v11 = vld [vmem:[%s2058_s5 + $0x50] sm:$0xff]  }
  0x13   : > { %1770 = vmatprep.mubr.msk.bf16.mxu1 %vm517_vm0, %v1828_v5  ;;  %v1833_v12 = vld [vmem:[%s2058_s5 + $0x18] sm:$0xff]   ;;  %v1835_v14 = vld [vmem:[%s2058_s5 + $0x20] sm:$0xff]   ;;  %v1837_v16 = vld [vmem:[%s2058_s5 + $0x28] sm:$0xff]  }
  0x14   : > { %1751 = vmatpush3.bf16.msra.mxu0 %v1825_v3  ;;  %1794 = vmatpush3.bf16.msra.mxu1 %v1825_v3  ;;  %v1834_v13 = vld [vmem:[%s2058_s5 + $0x58] sm:$0xff]   ;;  %v1836_v15 = vld [vmem:[%s2058_s5 + $0x60] sm:$0xff]   ;;  %v1838_v17 = vld [vmem:[%s2058_s5 + $0x68] sm:$0xff]  }
  0x15   : > { %1796 = vmatprep.subr.msk.bf16.mxu0 %vm566_vm1, %v1826_v6  ;;  %1797 = vmatprep.subr.msk.bf16.mxu1 %vm566_vm1, %v1826_v6  ;;  %v1839_v18 = vld [vmem:[%s2058_s5 + $0x30] sm:$0xff]   ;;  %v1841_v20 = vld [vmem:[%s2058_s5 + $0x38] sm:$0xff]  }
  0x16   : > { %v1840_v19 = vld [vmem:[%s2058_s5 + $0x70] sm:$0xff]   ;;  %v1842_v21 = vld [vmem:[%s2058_s5 + $0x78] sm:$0xff]  }
  0x18   : > { %1753 = vmatpush3.bf16.msra.mxu0 %v568_v7  ;;  %1795 = vmatpush3.bf16.msra.mxu1 %v568_v7 }
  0x1b   : > { %1755 = vmatmul.mubr.msk.bf16.vlgmr.msra.gmra.mrb[0].mxu0 %vm517_vm0, %v1829_v8  ;;  %1771 = vmatmul.mubr.msk.bf16.vlgmr.msra.gmra.mrb[0].mxu1 %vm517_vm0, %v1830_v9 }
  0x1c   : > { %1758 = vmatprep.mubr.msk.bf16.mxu0 %vm517_vm0, %v1831_v10  ;;  %1774 = vmatprep.mubr.msk.bf16.mxu1 %vm517_vm0, %v1832_v11 }
  0x23   : > { %1759 = vmatmul.mubr.msk.bf16.gmra.mrb[4].mxu0 %vm517_vm0, %v1833_v12  ;;  %1775 = vmatmul.mubr.msk.bf16.gmra.mrb[4].mxu1 %vm517_vm0, %v1834_v13 }
  0x24   : > { %1762 = vmatprep.mubr.msk.bf16.mxu0 %vm517_vm0, %v1835_v14  ;;  %1778 = vmatprep.mubr.msk.bf16.mxu1 %vm517_vm0, %v1836_v15 }
  0x2b   : > { %1763 = vmatmul.mubr.msk.bf16.gmra.mrb[8].mxu0 %vm517_vm0, %v1837_v16  ;;  %1779 = vmatmul.mubr.msk.bf16.gmra.mrb[8].mxu1 %vm517_vm0, %v1838_v17 }
  0x2c   : > { %1766 = vmatprep.mubr.msk.bf16.mxu0 %vm517_vm0, %v1839_v18  ;;  %1782 = vmatprep.mubr.msk.bf16.mxu1 %vm517_vm0, %v1840_v19 }
  0x33   : > { %1767 = vmatmul.mubr.msk.bf16.gmra.mrb[12].mxu0 %vm517_vm0, %v1841_v20  ;;  %1783 = vmatmul.mubr.msk.bf16.gmra.mrb[12].mxu1 %vm517_vm0, %v1842_v21 }
  0xee   : > { %v1756_v23 = vpop.f32.mrb[0].mxu0  ;;  %v1772_v25 = vpop.f32.mrb[0].mxu1 }
  0xef   : > { %v839_v26 = vmul.f32 %v1756_v23, %v2098_v22  ;;  %v855_v27 = vmul.f32 %v1772_v25, %v2098_v22  ;;  %v604_v28 = vpop.f32.mrb[1].mxu0  ;;  %v668_v29 = vpop.f32.mrb[1].mxu1 }
  0xf0   : > { %v837_v30 = vmul.f32 %v2098_v22, %v604_v28  ;;  %v853_v31 = vmul.f32 %v2098_v22, %v668_v29  ;;  %v1757_v32 = vpop.f32.mrb[2].mxu0  ;;  %v1773_v33 = vpop.f32.mrb[2].mxu1 }
  0xf1   : > { %v2110_v34 = vadd.f32 %v2103_v24, %v839_v26  ;;  %v2113_v35 = vadd.f32 %v2103_v24, %v855_v27  ;;  %v840_v36 = vmul.f32 %v1757_v32, %v2098_v22  ;;  %v856_v37 = vmul.f32 %v1773_v33, %v2098_v22  ;;  %v607_v38 = vpop.f32.mrb[3].mxu0  ;;  %v671_v39 = vpop.f32.mrb[3].mxu1 }
  0xf2   : > { %v2118_v40 = vadd.f32 %v2103_v24, %v837_v30  ;;  %v2121_v41 = vadd.f32 %v2103_v24, %v853_v31  ;;  %v838_v42 = vmul.f32 %v2098_v22, %v607_v38  ;;  %v854_v43 = vmul.f32 %v2098_v22, %v671_v39 }
  0xf3   : > { %v910_v44 = vand.u32 2147483647, %v2110_v34  ;;  %v926_v45 = vand.u32 2147483647, %v2113_v35  ;;  %v2130_v50 = vadd.f32 %v2103_v24, %v840_v36  ;;  %v2133_v51 = vadd.f32 %v2103_v24, %v856_v37 }
  0xf4   : > { %v908_v46 = vand.u32 2147483647, %v2118_v40  ;;  %v924_v47 = vand.u32 2147483647, %v2121_v41  ;;  %v2136_v54 = vadd.f32 %v2103_v24, %v838_v42  ;;  %v2139_v55 = vadd.f32 %v2103_v24, %v854_v43 }
  0xf5   : > { %v942_v48 = vsub.f32 0.0, %v910_v44  ;;  %v958_v49 = vsub.f32 0.0, %v926_v45  ;;  %v911_v60 = vand.u32 2147483647, %v2130_v50  ;;  %v927_v1 = vand.u32 2147483647, %v2133_v51 }
  0xf6   : > { %v940_v52 = vsub.f32 0.0, %v908_v46  ;;  %v956_v53 = vsub.f32 0.0, %v924_v47  ;;  %v1760_v56 = vpop.f32.mrb[4].mxu0  ;;  %v1776_v57 = vpop.f32.mrb[4].mxu1  ;;  %v909_v2 = vand.u32 2147483647, %v2136_v54 }
  0xf7   : > { %v976_v58 = vmul.f32 1.442695, %v942_v48  ;;  %v1008_v59 = vmul.f32 1.442695, %v958_v49  ;;  %v843_v63 = vmul.f32 %v1760_v56, %v2098_v22  ;;  %v943_v0 = vsub.f32 0.0, %v911_v60  ;;  %v620_v3 = vpop.f32.mrb[5].mxu0 }
  0xf8   : > { %v972_v61 = vmul.f32 1.442695, %v940_v52  ;;  %v1004_v62 = vmul.f32 1.442695, %v956_v53  ;;  %v925_v4 = vand.u32 2147483647, %v2139_v55  ;;  %v859_v14 = vmul.f32 %v1776_v57, %v2098_v22 }
  0xf9   : > { %1843 = vpow2.f32 %v976_v58  ;;  %v684_v5 = vpop.f32.mrb[5].mxu1  ;;  %v1761_v6 = vpop.f32.mrb[6].mxu0  ;;  %v978_v7 = vmul.f32 1.442695, %v943_v0  ;;  %v959_v8 = vsub.f32 0.0, %v927_v1  ;;  %v941_v9 = vsub.f32 0.0, %v909_v2 }
  0xfa   : > { %1845 = vpow2.f32 %v1008_v59  ;;  %v1777_v10 = vpop.f32.mrb[6].mxu1  ;;  %v623_v11 = vpop.f32.mrb[7].mxu0  ;;  %v957_v12 = vsub.f32 0.0, %v925_v4  ;;  %v2147_v13 = vadd.f32 %v2103_v24, %v843_v63  ;;  %v841_v18 = vmul.f32 %v2098_v22, %v620_v3 }
  0xfb   : > { %1847 = vpow2.f32 %v972_v61  ;;  %v2150_v15 = vpop.f32.mrb[7].mxu1  ;;  %v1010_v16 = vmul.f32 1.442695, %v959_v8  ;;  %v974_v17 = vmul.f32 1.442695, %v941_v9  ;;  %v2155_v21 = vadd.f32 %v2103_v24, %v859_v14 }
  0xfc   : > { %1849 = vpow2.f32 %v1004_v62  ;;  %v1006_v19 = vmul.f32 1.442695, %v957_v12  ;;  %v914_v20 = vand.u32 2147483647, %v2147_v13  ;;  %v2160_v25 = vadd.f32 %v2103_v24, %v841_v18 }
  0xfd   : > { %1851 = vpow2.f32 %v978_v7  ;;  %v857_v26 = vmul.f32 %v2098_v22, %v684_v5  ;;  %v844_v27 = vmul.f32 %v1761_v6, %v2098_v22  ;;  %v930_v31 = vand.u32 2147483647, %v2155_v21 }
  0xfe   : > { %v2157_v23 = vpop.f32.mrb[8].mxu0  ;;  %1853 = vpow2.f32 %v1010_v16  ;;  %v2164_v28 = vpop.f32.mrb[8].mxu1  ;;  %v946_v30 = vsub.f32 0.0, %v914_v20  ;;  %v912_v36 = vand.u32 2147483647, %v2160_v25  ;;  %v860_v45 = vmul.f32 %v1777_v10, %v2098_v22 }
  0xff   : > { %v2166_v29 = vpop.f32.mrb[9].mxu0  ;;  %1855 = vpow2.f32 %v974_v17  ;;  %v2169_v32 = vpop.f32.mrb[9].mxu1  ;;  %v2175_v37 = vadd.f32 %v2103_v24, %v857_v26  ;;  %v962_v43 = vsub.f32 0.0, %v930_v31  ;;  %v2182_v44 = vadd.f32 %v2103_v24, %v844_v27 }
 0x100   : > { %v2171_v33 = vpop.f32.mrb[10].mxu0  ;;  %1857 = vpow2.f32 %v1006_v19  ;;  %v2177_v38 = vpop.f32.mrb[10].mxu1  ;;  %v984_v42 = vmul.f32 1.442695, %v946_v30  ;;  %v944_v48 = vsub.f32 0.0, %v912_v36  ;;  %v842_v49 = vmul.f32 %v2098_v22, %v623_v11 }
 0x101   : > { %v2179_v39 = vpop.f32.mrb[11].mxu0  ;;  %v2185_v46 = vpop.f32.mrb[11].mxu1  ;;  %v928_v56 = vand.u32 2147483647, %v2175_v37  ;;  %v915_v59 = vand.u32 2147483647, %v2182_v44  ;;  %v2202_v63 = vadd.f32 %v2103_v24, %v860_v45  ;;  %v858_v27 = vmul.f32 %v2098_v22, %v2150_v15 }
 0x102   : > { %1859 = vpow2.f32 %v984_v42  ;;  %v1016_v62 = vmul.f32 1.442695, %v962_v43  ;;  %v980_v4 = vmul.f32 1.442695, %v944_v48  ;;  %v2212_v5 = vadd.f32 %v2103_v24, %v842_v49 }
 0x103   : > { %v2187_v47 = vpop.eup %1843  ;;  %v960_v9 = vsub.f32 0.0, %v928_v56  ;;  %v931_v10 = vand.u32 2147483647, %v2202_v63  ;;  %v947_v14 = vsub.f32 0.0, %v915_v59  ;;  %vm1102_vm2 = vcmp.ge.f32.partialorder %v2110_v34, 0.0 }
 0x104   : > { %v2190_v52 = vpop.eup %1845  ;;  %v1038_v53 = vadd.f32 1.0, %v2187_v47  ;;  %v913_v16 = vand.u32 2147483647, %v2212_v5  ;;  %vm1118_vm3 = vcmp.ge.f32.partialorder %v2113_v35, 0.0  ;;  %v847_v43 = vmul.f32 %v2157_v23, %v2098_v22 }
 0x105   : > { %v2194_v57 = vpop.eup %1847  ;;  %v1054_v58 = vadd.f32 1.0, %v2190_v52  ;;  %v963_v26 = vsub.f32 0.0, %v931_v10  ;;  %v1012_v48 = vmul.f32 1.442695, %v960_v9  ;;  %v2245_v49 = vadd.f32 %v2103_v24, %v858_v27 }
 0x106   : > { %v2198_v60 = vpop.eup %1849  ;;  %1861 = vrcp.f32 %v1038_v53  ;;  %v1036_v61 = vadd.f32 1.0, %v2194_v57  ;;  %v2204_v0 = vpop.f32.mrb[12].mxu0  ;;  %v945_v42 = vsub.f32 0.0, %v913_v16  ;;  %vm1100_vm4 = vcmp.ge.f32.partialorder %v2118_v40, 0.0 }
 0x107   : > { %v2206_v1 = vpop.f32.mrb[12].mxu1  ;;  %v2208_v2 = vpop.eup %1851  ;;  %1863 = vrcp.f32 %v1054_v58  ;;  %v1052_v3 = vadd.f32 1.0, %v2198_v60  ;;  %v2249_v15 = vadd.f32 %v2103_v24, %v847_v43  ;;  %v863_v53 = vmul.f32 %v2164_v28, %v2098_v22 }
 0x108   : > { %v2214_v6 = vpop.f32.mrb[13].mxu0  ;;  %v2216_v7 = vpop.f32.mrb[13].mxu1  ;;  %1865 = vrcp.f32 %v1036_v61  ;;  %v1039_v8 = vadd.f32 1.0, %v2208_v2  ;;  %vm1103_vm5 = vcmp.ge.f32.partialorder %v2130_v50, 0.0  ;;  %v986_v23 = vmul.f32 1.442695, %v947_v14 }
 0x109   : > { %v2220_v11 = vpop.f32.mrb[14].mxu0  ;;  %v2222_v12 = vpop.eup %1853  ;;  %1867 = vrcp.f32 %v1052_v3  ;;  %v1018_v58 = vmul.f32 1.442695, %v963_v26  ;;  %v929_v59 = vand.u32 2147483647, %v2245_v49  ;;  %vm1116_vm6 = vcmp.ge.f32.partialorder %v2121_v41, 0.0 }
 0x10a   : > { %v2225_v17 = vpop.f32.mrb[14].mxu1  ;;  %v2227_v18 = vpop.f32.mrb[15].mxu0  ;;  %1869 = vrcp.f32 %v1039_v8  ;;  %v1055_v20 = vadd.f32 1.0, %v2222_v12  ;;  %v918_v3 = vand.u32 2147483647, %v2249_v15  ;;  %vm1119_vm7 = vcmp.ge.f32.partialorder %v2133_v51, 0.0 }
 0x10b   : > { %v2229_v19 = vpop.eup %1855  ;;  %v2235_v30 = vpop.f32.mrb[15].mxu1  ;;  %1871 = vpow2.f32 %v1016_v62  ;;  %v982_v62 = vmul.f32 1.442695, %v945_v42  ;;  %v961_v28 = vsub.f32 0.0, %v929_v59  ;;  %v2262_v9 = vadd.f32 %v2103_v24, %v863_v53 }
 0x10c   : > { %v2237_v31 = vpop.eup %1857  ;;  %v1037_v36 = vadd.f32 1.0, %v2229_v19  ;;  %1873 = vrcp.f32 %v1055_v20  ;;  %v845_v10 = vmul.f32 %v2098_v22, %v2166_v29  ;;  %vm1101_vm8 = vcmp.ge.f32.partialorder %v2136_v54, 0.0 }
 0x10d   : > { %v1053_v45 = vadd.f32 1.0, %v2237_v31  ;;  %v2253_v56 = vpop.eup %1859  ;;  %vm1117_vm9 = vcmp.ge.f32.partialorder %v2139_v55, 0.0  ;;  %v1014_v27 = vmul.f32 1.442695, %v961_v28  ;;  %vm1106_vm10 = vcmp.ge.f32.partialorder %v2147_v13, 0.0 }
 0x10e   : > { %1875 = vrcp.f32 %v1037_v36  ;;  %v1042_v61 = vadd.f32 1.0, %v2253_v56  ;;  %v934_v36 = vand.u32 2147483647, %v2262_v9  ;;  %v2278_v53 = vadd.f32 %v2103_v24, %v845_v10 }
 0x10f   : > { %1877 = vrcp.f32 %v1053_v45  ;;  %vm1122_vm11 = vcmp.ge.f32.partialorder %v2155_v21, 0.0  ;;  %vm1104_vm12 = vcmp.ge.f32.partialorder %v2160_v25, 0.0  ;;  %vm1120_vm13 = vcmp.ge.f32.partialorder %v2175_v37, 0.0 }
 0x110   : > { %1879 = vpow2.f32 %v980_v4  ;;  %v1862_v8 = vpop.eup %1861  ;;  %v950_v4 = vsub.f32 0.0, %v918_v3  ;;  %vm1107_vm14 = vcmp.ge.f32.partialorder %v2182_v44, 0.0  ;;  %vm1123_vm15 = vcmp.ge.f32.partialorder %v2202_v63, 0.0 }
 0x111   : > { %1881 = vpow2.f32 %v1012_v48  ;;  %v1864_v14 = vpop.eup %1863  ;;  %v1134_v16 = vmul.f32 %v1862_v8, %v2187_v47  ;;  %vm1105_vm0 = vcmp.ge.f32.partialorder %v2212_v5, 0.0  ;;  %vm1121_vm1 = vcmp.ge.f32.partialorder %v2245_v49, 0.0 }
 0x112   : > { %1883 = vrcp.f32 %v1042_v61  ;;  %v1866_v20 = vpop.eup %1865  ;;  %v1150_v26 = vmul.f32 %v1864_v14, %v2190_v52  ;;  %v992_v47 = vmul.f32 1.442695, %v950_v4 }
 0x113   : > { %1885 = vpow2.f32 %v986_v23  ;;  %v1868_v42 = vpop.eup %1867  ;;  %v1166_v29 = vsel %vm1102_vm2, %v1862_v8, %v1134_v16  ;;  %v1132_v43 = vmul.f32 %v1866_v20, %v2194_v57  ;;  %v861_v57 = vmul.f32 %v2098_v22, %v2169_v32 }
 0x114   : > { %1887 = vpow2.f32 %v1018_v58  ;;  %v1870_v45 = vpop.eup %1869  ;;  %v1182_v48 = vsel %vm1118_vm3, %v1864_v14, %v1150_v26  ;;  %v1148_v52 = vmul.f32 %v1868_v42, %v2198_v60  ;;  %v1198_v3 = vmul.f32 %v1166_v29, %v2110_v34 }
 0x115   : > { %1889 = vpow2.f32 %v982_v62  ;;  %v2280_v23 = vpop.eup %1871  ;;  %v1164_v59 = vsel %vm1100_vm4, %v1866_v20, %v1132_v43  ;;  %v1135_v61 = vmul.f32 %v1870_v45, %v2208_v2  ;;  %v1214_v60 = vmul.f32 %v1182_v48, %v2113_v35 }
 0x116   : > { %1891 = vpow2.f32 %v1014_v27  ;;  %v1874_v58 = vpop.eup %1873  ;;  %v1196_v62 = vmul.f32 %v1164_v59, %v2118_v40  ;;  %v1058_v8 = vadd.f32 1.0, %v2280_v23  ;;  %v966_v14 = vsub.f32 0.0, %v934_v36 }
 0x117   : > { %v1167_v10 = vsel %vm1103_vm5, %v1870_v45, %v1135_v61  ;;  %v1151_v2 = vmul.f32 %v1874_v58, %v2222_v12  ;;  %1893 = vpow2.f32 %v992_v47  ;;  %v1180_v32 = vsel %vm1116_vm6, %v1868_v42, %v1148_v52 }
 0x118   : > { %v1876_v28 = vpop.eup %1875  ;;  %v1199_v34 = vmul.f32 %v1167_v10, %v2130_v50  ;;  %1895 = vrcp.f32 %v1058_v8  ;;  %v1024_v20 = vmul.f32 1.442695, %v966_v14  ;;  %v916_v50 = vand.u32 2147483647, %v2278_v53 }
 0x119   : > { %v1878_v16 = vpop.eup %1877  ;;  %v1133_v35 = vmul.f32 %v1876_v28, %v2229_v19  ;;  %v1183_v12 = vsel %vm1119_vm7, %v1874_v58, %v1151_v2  ;;  %v1212_v48 = vmul.f32 %v1180_v32, %v2121_v41  ;;  %v2343_v2 = vadd.f32 %v2103_v24, %v861_v57 }
 0x11a   : > { %v2298_v40 = vpop.eup %1879  ;;  %v1149_v4 = vmul.f32 %v1878_v16, %v2237_v31  ;;  %v1636_v19 = vpack.c.bf16 %v1199_v34, %v1198_v3  ;;  %v1215_v27 = vmul.f32 %v1183_v12, %v2133_v51  ;;  %1897 = vpow2.f32 %v1024_v20 }
 0x11b   : > { %v2311_v26 = vpop.eup %1881  ;;  %v1165_v36 = vsel %vm1101_vm8, %v1876_v28, %v1133_v35  ;;  %v1040_v42 = vadd.f32 1.0, %v2298_v40  ;;  %v948_v58 = vsub.f32 0.0, %v916_v50  ;;  %v848_v14 = vmul.f32 %v2171_v33, %v2098_v22 }
 0x11c   : > { %v1884_v29 = vpop.eup %1883  ;;  %v1197_v43 = vmul.f32 %v1165_v36, %v2136_v54  ;;  %v1181_v31 = vsel %vm1117_vm9, %v1878_v16, %v1149_v4  ;;  %v1056_v47 = vadd.f32 1.0, %v2311_v26  ;;  %1708 = vst [vmem:[%s2305_s14 + $0x8] sm:$0xff] %v1636_v19   ;;  %v1676_v51 = vpack.c.bf16 %v1215_v27, %v1214_v60 }
 0x11d   : > { %v2321_v45 = vpop.eup %1885  ;;  %v1213_v52 = vmul.f32 %v1181_v31, %v2139_v55  ;;  %1899 = vrcp.f32 %v1040_v42  ;;  %v1138_v55 = vmul.f32 %v1884_v29, %v2253_v56  ;;  %v988_v28 = vmul.f32 1.442695, %v948_v58 }
 0x11e   : > { %v2326_v59 = vpop.eup %1887  ;;  %v1631_v54 = vpack.c.bf16 %v1197_v43, %v1196_v62  ;;  %1901 = vrcp.f32 %v1056_v47  ;;  %v1043_v61 = vadd.f32 1.0, %v2321_v45  ;;  %1716 = vst [vmem:[%s2305_s14 + $0x48] sm:$0xff] %v1676_v51   ;;  %v864_v56 = vmul.f32 %v2177_v38, %v2098_v22 }
 0x11f   : > { %v2329_v3 = vpop.eup %1889  ;;  %v1671_v8 = vpack.c.bf16 %v1213_v52, %v1212_v48  ;;  %v1059_v41 = vadd.f32 1.0, %v2326_v59  ;;  %v846_v32 = vmul.f32 %v2098_v22, %v2179_v39  ;;  %v932_v57 = vand.u32 2147483647, %v2343_v2 }
 0x120   : > { %v2334_v60 = vpop.eup %1891  ;;  %1632 = vst [vmem:[%s2305_s14] sm:$0xff] %v1631_v54   ;;  %1903 = vrcp.f32 %v1043_v61  ;;  %v1041_v62 = vadd.f32 1.0, %v2329_v3  ;;  %v2357_v35 = vadd.f32 %v2103_v24, %v848_v14  ;;  %v1170_v33 = vsel %vm1106_vm10, %v1884_v29, %v1138_v55 }
 0x121   : > { %1715 = vst [vmem:[%s2305_s14 + $0x40] sm:$0xff] %v1671_v8   ;;  %1905 = vrcp.f32 %v1059_v41  ;;  %v1057_v10 = vadd.f32 1.0, %v2334_v60  ;;  %v2347_v16 = vpop.eup %1893  ;;  %v2363_v12 = vadd.f32 %v2103_v24, %v864_v56  ;;  %v2366_v38 = vadd.f32 %v2103_v24, %v846_v32 }
 0x122   : > { %1907 = vrcp.f32 %v1041_v62  ;;  %v1896_v34 = vpop.eup %1895  ;;  %v1046_v39 = vadd.f32 1.0, %v2347_v16  ;;  %v964_v4 = vsub.f32 0.0, %v932_v57  ;;  %v919_v20 = vand.u32 2147483647, %v2357_v35 }
 0x123   : > { %1909 = vrcp.f32 %v1057_v10  ;;  %v1154_v19 = vmul.f32 %v1896_v34, %v2280_v23  ;;  %v935_v27 = vand.u32 2147483647, %v2363_v12  ;;  %v917_v36 = vand.u32 2147483647, %v2366_v38 }
 0x124   : > { %1911 = vpow2.f32 %v988_v28  ;;  %v2370_v50 = vpop.eup %1897  ;;  %v1020_v29 = vmul.f32 1.442695, %v964_v4  ;;  %v951_v43 = vsub.f32 0.0, %v919_v20  ;;  %v1202_v47 = vmul.f32 %v1170_v33, %v2147_v13 }
 0x125   : > { %v967_v51 = vsub.f32 0.0, %v935_v27  ;;  %v949_v23 = vsub.f32 0.0, %v917_v36  ;;  %1913 = vrcp.f32 %v1046_v39  ;;  %v862_v61 = vmul.f32 %v2098_v22, %v2185_v46 }
 0x126   : > { %v994_v54 = vmul.f32 1.442695, %v951_v43  ;;  %v1186_v8 = vsel %vm1122_vm11, %v1896_v34, %v1154_v19  ;;  %1915 = vpow2.f32 %v1020_v29  ;;  %vm1110_vm2 = vcmp.ge.f32.partialorder %v2249_v15, 0.0 }
 0x127   : > { %v1900_v42 = vpop.eup %1899  ;;  %v1026_v41 = vmul.f32 1.442695, %v967_v51  ;;  %v990_v55 = vmul.f32 1.442695, %v949_v23  ;;  %v2393_v14 = vadd.f32 %v2103_v24, %v862_v61  ;;  %v1218_v20 = vmul.f32 %v1186_v8, %v2155_v21 }
 0x128   : > { %v1902_v31 = vpop.eup %1901  ;;  %v1136_v48 = vmul.f32 %v1900_v42, %v2298_v40  ;;  %1917 = vpow2.f32 %v994_v54  ;;  %v865_v23 = vmul.f32 %v2098_v22, %v2216_v7  ;;  %vm1126_vm3 = vcmp.ge.f32.partialorder %v2262_v9, 0.0 }
 0x129   : > { %v1152_v52 = vmul.f32 %v1902_v31, %v2311_v26  ;;  %v1062_v26 = vadd.f32 1.0, %v2370_v50  ;;  %1919 = vpow2.f32 %v1026_v41  ;;  %v933_v39 = vand.u32 2147483647, %v2393_v14 }
 0x12a   : > { %v1904_v58 = vpop.eup %1903  ;;  %v1168_v13 = vsel %vm1104_vm12, %v1900_v42, %v1136_v48  ;;  %1921 = vpow2.f32 %v990_v55  ;;  %v867_v48 = vmul.f32 %v2206_v1, %v2098_v22  ;;  %v2443_v8 = vadd.f32 %v2103_v24, %v865_v23 }
 0x12b   : > { %v1906_v62 = vpop.eup %1905  ;;  %v1139_v40 = vmul.f32 %v1904_v58, %v2321_v45  ;;  %v1184_v46 = vsel %vm1120_vm13, %v1902_v31, %v1152_v52  ;;  %v851_v45 = vmul.f32 %v2204_v0, %v2098_v22  ;;  %v965_v29 = vsub.f32 0.0, %v933_v39 }
 0x12c   : > { %v1908_v28 = vpop.eup %1907  ;;  %v1155_v10 = vmul.f32 %v1906_v62, %v2326_v59  ;;  %v1216_v42 = vmul.f32 %v1184_v46, %v2175_v37  ;;  %1923 = vrcp.f32 %v1062_v26  ;;  %v849_v37 = vmul.f32 %v2098_v22, %v2214_v6 }
 0x12d   : > { %v1910_v56 = vpop.eup %1909  ;;  %v1171_v32 = vsel %vm1107_vm14, %v1904_v58, %v1139_v40  ;;  %v1137_v34 = vmul.f32 %v1908_v28, %v2329_v3  ;;  %v1200_v3 = vmul.f32 %v1168_v13, %v2160_v25  ;;  %v2420_v43 = vadd.f32 %v2103_v24, %v851_v45 }
 0x12e   : > { %v1203_v57 = vmul.f32 %v1171_v32, %v2182_v44  ;;  %v1187_v33 = vsel %vm1123_vm15, %v1906_v62, %v1155_v10  ;;  %v1153_v59 = vmul.f32 %v1910_v56, %v2334_v60  ;;  %v2405_v4 = vpop.eup %1911  ;;  %v2435_v54 = vadd.f32 %v2103_v24, %v867_v48 }
 0x12f   : > { %v1219_v19 = vmul.f32 %v1187_v33, %v2202_v63  ;;  %v1169_v44 = vsel %vm1105_vm0, %v1908_v28, %v1137_v34  ;;  %v1044_v36 = vadd.f32 1.0, %v2405_v4  ;;  %v2438_v1 = vadd.f32 %v2103_v24, %v849_v37 }
 0x130   : > { %v1646_v0 = vpack.c.bf16 %v1203_v57, %v1202_v47  ;;  %v1201_v27 = vmul.f32 %v1169_v44, %v2212_v5  ;;  %v1185_v60 = vsel %vm1121_vm1, %v1910_v56, %v1153_v59  ;;  %v1914_v5 = vpop.eup %1913  ;;  %v1022_v47 = vmul.f32 1.442695, %v965_v29 }
 0x131   : > { %v1686_v21 = vpack.c.bf16 %v1219_v19, %v1218_v20  ;;  %v1217_v25 = vmul.f32 %v1185_v60, %v2245_v49  ;;  %v2427_v51 = vpop.eup %1915  ;;  %1925 = vrcp.f32 %v1044_v36  ;;  %v922_v49 = vand.u32 2147483647, %v2420_v43 }
 0x132   : > { %1710 = vst [vmem:[%s2305_s14 + $0x18] sm:$0xff] %v1646_v0   ;;  %v1641_v63 = vpack.c.bf16 %v1201_v27, %v1200_v3  ;;  %v1918_v52 = vpop.eup %1917  ;;  %1927 = vpow2.f32 %v1022_v47  ;;  %v938_v55 = vand.u32 2147483647, %v2435_v54  ;;  %v1060_v62 = vadd.f32 1.0, %v2427_v51 }
 0x133   : > { %1718 = vst [vmem:[%s2305_s14 + $0x58] sm:$0xff] %v1686_v21   ;;  %v1681_v31 = vpack.c.bf16 %v1217_v25, %v1216_v42  ;;  %v2440_v61 = vpop.eup %1919  ;;  %v1047_v6 = vadd.f32 1.0, %v1918_v52  ;;  %v954_v58 = vsub.f32 0.0, %v922_v49  ;;  %v920_v28 = vand.u32 2147483647, %v2438_v1 }
 0x134   : > { %1709 = vst [vmem:[%s2305_s14 + $0x10] sm:$0xff] %v1641_v63   ;;  %v2445_v41 = vpop.eup %1921  ;;  %v1063_v7 = vadd.f32 1.0, %v2440_v61  ;;  %v970_v26 = vsub.f32 0.0, %v938_v55  ;;  %v1142_v46 = vmul.f32 %v1914_v5, %v2347_v16  ;;  %v936_v10 = vand.u32 2147483647, %v2443_v8 }
 0x135   : > { %1717 = vst [vmem:[%s2305_s14 + $0x50] sm:$0xff] %v1681_v31   ;;  %1929 = vrcp.f32 %v1047_v6  ;;  %v1045_v13 = vadd.f32 1.0, %v2445_v41  ;;  %v1000_v40 = vmul.f32 1.442695, %v954_v58  ;;  %v852_v56 = vmul.f32 %v2220_v11, %v2098_v22 }
 0x136   : > { %1931 = vrcp.f32 %v1063_v7  ;;  %v1032_v32 = vmul.f32 1.442695, %v970_v26  ;;  %v952_v34 = vsub.f32 0.0, %v920_v28  ;;  %v868_v45 = vmul.f32 %v2225_v17, %v2098_v22  ;;  %v1924_v57 = vpop.eup %1923 }
 0x137   : > { %1933 = vrcp.f32 %v1045_v13  ;;  %v968_v33 = vsub.f32 0.0, %v936_v10  ;;  %v2461_v59 = vadd.f32 %v2103_v24, %v852_v56  ;;  %v850_v16 = vmul.f32 %v2098_v22, %v2227_v18 }
 0x138   : > { %1935 = vpow2.f32 %v1000_v40  ;;  %v996_v39 = vmul.f32 1.442695, %v952_v34  ;;  %v2466_v11 = vadd.f32 %v2103_v24, %v868_v45  ;;  %v866_v20 = vmul.f32 %v2098_v22, %v2235_v30 }
 0x139   : > { %1937 = vrcp.f32 %v1060_v62  ;;  %vm1108_vm4 = vcmp.ge.f32.partialorder %v2278_v53, 0.0  ;;  %v1028_v17 = vmul.f32 1.442695, %v968_v33  ;;  %v923_v19 = vand.u32 2147483647, %v2461_v59 }
 0x13a   : > { %1939 = vpow2.f32 %v1032_v32  ;;  %v2473_v44 = vadd.f32 %v2103_v24, %v850_v16  ;;  %v1174_v18 = vsel %vm1110_vm2, %v1914_v5, %v1142_v46  ;;  %vm1111_vm5 = vcmp.ge.f32.partialorder %v2357_v35, 0.0 }
 0x13b   : > { %v1926_v3 = vpop.eup %1925  ;;  %1941 = vpow2.f32 %v996_v39  ;;  %v939_v27 = vand.u32 2147483647, %v2466_v11  ;;  %v1158_v22 = vmul.f32 %v1924_v57, %v2370_v50  ;;  %v955_v60 = vsub.f32 0.0, %v923_v19 }
 0x13c   : > { %v2475_v0 = vpop.eup %1927  ;;  %1943 = vpow2.f32 %v1028_v17  ;;  %v1140_v36 = vmul.f32 %v1926_v3, %v2405_v4  ;;  %v921_v21 = vand.u32 2147483647, %v2473_v44  ;;  %v2486_v25 = vadd.f32 %v2103_v24, %v866_v20 }
 0x13d   : > { %v1061_v30 = vadd.f32 1.0, %v2475_v0  ;;  %v971_v42 = vsub.f32 0.0, %v939_v27  ;;  %vm1127_vm6 = vcmp.ge.f32.partialorder %v2363_v12, 0.0  ;;  %vm1109_vm7 = vcmp.ge.f32.partialorder %v2366_v38, 0.0 }
 0x13e   : > { %v1002_v63 = vmul.f32 1.442695, %v955_v60  ;;  %v953_v47 = vsub.f32 0.0, %v921_v21  ;;  %v937_v48 = vand.u32 2147483647, %v2486_v25  ;;  %v1206_v37 = vmul.f32 %v1174_v18, %v2249_v15 }
 0x13f   : > { %v1930_v29 = vpop.eup %1929  ;;  %1945 = vrcp.f32 %v1061_v30  ;;  %v1034_v31 = vmul.f32 1.442695, %v971_v42  ;;  %v1190_v24 = vsel %vm1126_vm3, %v1924_v57, %v1158_v22  ;;  %v1172_v6 = vsel %vm1108_vm4, %v1926_v3, %v1140_v36 }
 0x140   : > { %v1932_v50 = vpop.eup %1931  ;;  %v1143_v5 = vmul.f32 %v1930_v29, %v1918_v52  ;;  %1947 = vpow2.f32 %v1002_v63  ;;  %v998_v13 = vmul.f32 1.442695, %v953_v47  ;;  %v1222_v40 = vmul.f32 %v1190_v24, %v2262_v9 }
 0x141   : > { %v1934_v4 = vpop.eup %1933  ;;  %v1159_v49 = vmul.f32 %v1932_v50, %v2440_v61  ;;  %1949 = vpow2.f32 %v1034_v31  ;;  %v1204_v46 = vmul.f32 %v1172_v6, %v2278_v53  ;;  %vm1124_vm8 = vcmp.ge.f32.partialorder %v2343_v2, 0.0 }
 0x142   : > { %v1936_v23 = vpop.eup %1935  ;;  %v1175_v52 = vsel %vm1111_vm5, %v1930_v29, %v1143_v5  ;;  %v1141_v58 = vmul.f32 %v1934_v4, %v2445_v41  ;;  %v969_v41 = vsub.f32 0.0, %v937_v48  ;;  %1951 = vpow2.f32 %v998_v13 }
 0x143   : > { %v1938_v7 = vpop.eup %1937  ;;  %v1207_v55 = vmul.f32 %v1175_v52, %v2357_v35  ;;  %v1191_v15 = vsel %vm1127_vm6, %v1932_v50, %v1159_v49  ;;  %v1050_v62 = vadd.f32 1.0, %v1936_v23  ;;  %vm1125_vm9 = vcmp.ge.f32.partialorder %v2393_v14, 0.0 }
 0x144   : > { %v1940_v61 = vpop.eup %1939  ;;  %v1223_v26 = vmul.f32 %v1191_v15, %v2363_v12  ;;  %v1173_v28 = vsel %vm1109_vm7, %v1934_v4, %v1141_v58  ;;  %v1156_v34 = vmul.f32 %v1938_v7, %v2427_v51  ;;  %v1030_v9 = vmul.f32 1.442695, %v969_v41 }
 0x145   : > { %v1656_v10 = vpack.c.bf16 %v1207_v55, %v1206_v37  ;;  %v1205_v35 = vmul.f32 %v1173_v28, %v2366_v38  ;;  %v1066_v56 = vadd.f32 1.0, %v1940_v61  ;;  %v1942_v32 = vpop.eup %1941  ;;  %1953 = vrcp.f32 %v1050_v62 }
 0x146   : > { %v1696_v45 = vpack.c.bf16 %v1223_v26, %v1222_v40  ;;  %v1944_v57 = vpop.eup %1943  ;;  %v1048_v33 = vadd.f32 1.0, %v1942_v32  ;;  %1955 = vpow2.f32 %v1030_v9  ;;  %v1188_v38 = vsel %vm1124_vm8, %v1938_v7, %v1156_v34 }
 0x147   : > { %1712 = vst [vmem:[%s2305_s14 + $0x28] sm:$0xff] %v1656_v10   ;;  %v1651_v12 = vpack.c.bf16 %v1205_v35, %v1204_v46  ;;  %1957 = vrcp.f32 %v1066_v56  ;;  %v1064_v53 = vadd.f32 1.0, %v1944_v57  ;;  %v1220_v19 = vmul.f32 %v1188_v38, %v2343_v2 }
 0x148   : > { %1720 = vst [vmem:[%s2305_s14 + $0x68] sm:$0xff] %v1696_v45   ;;  %1959 = vrcp.f32 %v1048_v33  ;;  %vm1114_vm10 = vcmp.ge.f32.partialorder %v2420_v43, 0.0  ;;  %vm1130_vm11 = vcmp.ge.f32.partialorder %v2435_v54, 0.0  ;;  %vm1115_vm12 = vcmp.ge.f32.partialorder %v2461_v59, 0.0 }
 0x149   : > { %v1946_v16 = vpop.eup %1945  ;;  %1711 = vst [vmem:[%s2305_s14 + $0x20] sm:$0xff] %v1651_v12   ;;  %1961 = vrcp.f32 %v1064_v53  ;;  %vm1131_vm13 = vcmp.ge.f32.partialorder %v2466_v11, 0.0  ;;  %vm1112_vm14 = vcmp.ge.f32.partialorder %v2438_v1, 0.0  ;;  %vm1128_vm15 = vcmp.ge.f32.partialorder %v2443_v8, 0.0 }
 0x14a   : > { %v1157_v39 = vmul.f32 %v1946_v16, %v2475_v0  ;;  %v1948_v51 = vpop.eup %1947  ;;  %vm1113_vm0 = vcmp.ge.f32.partialorder %v2473_v44, 0.0  ;;  %vm1129_vm1 = vcmp.ge.f32.partialorder %v2486_v25, 0.0 }
 0x14b   : > { %v1950_v20 = vpop.eup %1949  ;;  %v1051_v17 = vadd.f32 1.0, %v1948_v51 }
 0x14c   : > { %v1189_v3 = vsel %vm1125_vm9, %v1946_v16, %v1157_v39  ;;  %v1067_v27 = vadd.f32 1.0, %v1950_v20  ;;  %v1952_v30 = vpop.eup %1951 }
 0x14d   : > { %v1221_v18 = vmul.f32 %v1189_v3, %v2393_v14  ;;  %1963 = vrcp.f32 %v1051_v17  ;;  %v1049_v0 = vadd.f32 1.0, %v1952_v30 }
 0x14e   : > { %1965 = vrcp.f32 %v1067_v27 }
 0x14f   : > { %v1691_v22 = vpack.c.bf16 %v1221_v18, %v1220_v19  ;;  %v1954_v60 = vpop.eup %1953  ;;  %1967 = vrcp.f32 %v1049_v0 }
 0x150   : > { %v1956_v36 = vpop.eup %1955  ;;  %v1146_v29 = vmul.f32 %v1954_v60, %v1936_v23 }
 0x151   : > { %1719 = vst [vmem:[%s2305_s14 + $0x60] sm:$0xff] %v1691_v22   ;;  %v1958_v42 = vpop.eup %1957  ;;  %v1065_v21 = vadd.f32 1.0, %v1956_v36 }
 0x152   : > { %v1960_v63 = vpop.eup %1959  ;;  %v1162_v50 = vmul.f32 %v1958_v42, %v1940_v61  ;;  %v1178_v31 = vsel %vm1114_vm10, %v1954_v60, %v1146_v29 }
 0x153   : > { %1969 = vrcp.f32 %v1065_v21  ;;  %v1962_v2 = vpop.eup %1961  ;;  %v1144_v4 = vmul.f32 %v1960_v63, %v1942_v32  ;;  %v1210_v49 = vmul.f32 %v1178_v31, %v2420_v43 }
 0x154   : > { %v1194_v48 = vsel %vm1130_vm11, %v1958_v42, %v1162_v50  ;;  %v1160_v23 = vmul.f32 %v1962_v2, %v1944_v57 }
 0x155   : > { %v1226_v7 = vmul.f32 %v1194_v48, %v2435_v54  ;;  %v1176_v15 = vsel %vm1112_vm14, %v1960_v63, %v1144_v4 }
 0x156   : > { %v1208_v54 = vmul.f32 %v1176_v15, %v2438_v1 }
 0x157   : > { %v1964_v5 = vpop.eup %1963 }
 0x158   : > { %v1966_v14 = vpop.eup %1965  ;;  %v1147_v47 = vmul.f32 %v1964_v5, %v1948_v51 }
 0x159   : > { %v1163_v37 = vmul.f32 %v1966_v14, %v1950_v20  ;;  %v1968_v58 = vpop.eup %1967 }
 0x15a   : > { %v1179_v24 = vsel %vm1115_vm12, %v1964_v5, %v1147_v47  ;;  %v1145_v13 = vmul.f32 %v1968_v58, %v1952_v30 }
 0x15b   : > { %v1211_v6 = vmul.f32 %v1179_v24, %v2461_v59  ;;  %v1195_v52 = vsel %vm1131_vm13, %v1966_v14, %v1163_v37  ;;  %v1192_v59 = vsel %vm1128_vm15, %v1962_v2, %v1160_v23 }
 0x15c   : > { %v1227_v55 = vmul.f32 %v1195_v52, %v2466_v11  ;;  %v1177_v40 = vsel %vm1113_vm0, %v1968_v58, %v1145_v13  ;;  %v1224_v41 = vmul.f32 %v1192_v59, %v2443_v8 }
 0x15d   : > { %v1666_v62 = vpack.c.bf16 %v1211_v6, %v1210_v49  ;;  %v1970_v61 = vpop.eup %1969  ;;  %v1209_v11 = vmul.f32 %v1177_v40, %v2473_v44 }
 0x15e   : > { %v1706_v43 = vpack.c.bf16 %v1227_v55, %v1226_v7  ;;  %v1161_v26 = vmul.f32 %v1970_v61, %v1956_v36 }
 0x15f   : > { %1714 = vst [vmem:[%s2305_s14 + $0x38] sm:$0xff] %v1666_v62   ;;  %v1661_v46 = vpack.c.bf16 %v1209_v11, %v1208_v54 }
 0x160   : > { %1722 = vst [vmem:[%s2305_s14 + $0x78] sm:$0xff] %v1706_v43   ;;  %v1193_v28 = vsel %vm1129_vm1, %v1970_v61, %v1161_v26 }
 0x161   : > { %v1225_v10 = vmul.f32 %v1193_v28, %v2486_v25  ;;  %1713 = vst [vmem:[%s2305_s14 + $0x30] sm:$0xff] %v1661_v46  }
 0x163   : > { %v1701_v35 = vpack.c.bf16 %v1225_v10, %v1224_v41 }
 0x165   : > { %1721 = vst [vmem:[%s2305_s14 + $0x70] sm:$0xff] %v1701_v35  }
 0x166 PF: > { %s14_s17 = sadd.s32 1, %s1993_s17   ;;  %s2553_s15 = smov %s1989_s16 }
 0x167   : > { %p11_p5 = scmp.ge.s32.totalorder %s14_s17, 4   ;;  %s2554_s16 = smov %s2556_s18 }
 0x169   :  { %13 = sbr.rel (!%p11_p5) target bundleno = 2 (0x2), region = 83 }

// kernel: fpn_forward.25
= control target key start
LH: loop header
LB: loop body
LE: loop exit
PB: predicated region body
PF: predicated region fallthrough
CT: control target
= control target key end

     0   :  { %s1975_s15 = smov 0   ;;  %s1977_s16 = smov 0   ;;  %s2490_s0 = inlined_call_operand.vmem [shape: bf16[512,24], index: 0, kind: input, shape index: {}]   ;;  %s2491_s1 = inlined_call_operand.vmem [shape: bf16[24,128], index: 1, kind: input, shape index: {}]   ;;  %s2492_s2 = inlined_call_operand.vmem [shape: f32[1,128], index: 2, kind: input, shape index: {}]   ;;  %s2493_s3 = inlined_call_operand.vmem [shape: f32[1,128], index: 3, kind: input, shape index: {}]   ;;  %s2494_s4 = inlined_call_operand.vmem [shape: bf16[512,128], index: 4, kind: output, shape index: {}]  }
   0x1   :  { %s1979_s17 = smov 0  }
   0x2 LB: > { %s33_s18 = sadd.s32 1, %s1944_s16  ;;  %p1494_p0 = scmp.ge.s32.totalorder %s1948_s17, 1  ;;  %s1948_s17 = sphi %s1979_s17, %s14_s17   ;;  %s1944_s16 = sphi %s1977_s16, %s2496_s16   ;;  %s1940_s15 = sphi %s1975_s15, %s2495_s15  }
   0x3   : > { %p35_p1 = scmp.ge.s32.totalorder %s33_s18, 2  ;;  %p221_p2 = scmp.lt.s32.totalorder %s1948_s17, 3 }
   0x5   : > { %s2498_s18 = smov (%p35_p1, %s33_s18), 0  ;;  %p222_p3 = pnand %p1494_p0, %p221_p2 }
   0x6   : > { %v1780_v0 = vld [vmem:[%s2491_s1] sm:$0xff] (!%p222_p3)   ;;  %v1781_v1 = vld [vmem:[%s2491_s1 + $0x8] ss:$0 sps:$4 sm:$0xff] (!%p222_p3)   ;;  %vm542_vm0 = vcmask (!%p222_p3), 1043456   ;;  %s1495_s23 = sshll.u32 (!%p222_p3), %s1940_s15, 5  ;;  %vm493_vm1 = vcmask (!%p222_p3), 195584  }
   0x7   : > { %225 = sbr.rel (%p222_p3) target bundleno = 352 (0x160), region = 36  ;;  %1714 = vmatprep.subr.bf16.mxu0 (!%p222_p3), %v1780_v0  ;;  %1750 = vmatprep.subr.bf16.mxu1 (!%p222_p3), %v1780_v0  ;;  %p268_p4 = scmp.lt.s32.totalorder (!%p222_p3), %s1495_s23, 63  ;;  %v544_v2 = vsel (!%p222_p3), %vm542_vm0, %v1781_v1, 0  ;;  %v2044_v19 = vld [vmem:[%s2492_s2] ss:$0 sm:$0xff] (!%p222_p3) }
   0x8   : > { %1715 = vmatpush3.bf16.msra.mxu0 (!%p222_p3), %v1780_v0  ;;  %1752 = vmatpush3.bf16.msra.mxu1 (!%p222_p3), %v1780_v0  ;;  %v2049_v21 = vld [vmem:[%s2493_s3] ss:$0 sm:$0xff] (!%p222_p3) }
   0x9   : > { %1754 = vmatprep.subr.msk.bf16.mxu0 (!%p222_p3), %vm542_vm0, %v1781_v1  ;;  %1755 = vmatprep.subr.msk.bf16.mxu1 (!%p222_p3), %vm542_vm0, %v1781_v1 }
   0xc   : > { %1717 = vmatpush3.bf16.msra.mxu0 (!%p222_p3), %v544_v2  ;;  %1753 = vmatpush3.bf16.msra.mxu1 (!%p222_p3), %v544_v2 }
   0xe   : > { %s2500_s23 = smov (!%p268_p4, %s1495_s23), 63 }
   0xf   : > { %s1496_s24 = sshll.u32 %s2500_s23, 2 }
  0x10   : > { %s2007_s27 = scalar_lea.vmem %s2490_s0, %s1496_s24  ;;  %s2249_s8 = scalar_lea.vmem %s2494_s4, %s1496_s24 }
  0x11   : > { %v1782_v3 = vld [vmem:[%s2007_s27] sm:$0xff]   ;;  %v1784_v5 = vld [vmem:[%s2007_s27 + $0x8] sm:$0xff]   ;;  %v1786_v7 = vld [vmem:[%s2007_s27 + $0x10] sm:$0xff]  }
  0x12   : > { %v1783_v4 = vld [vmem:[%s2007_s27 + $0x40] sm:$0xff]   ;;  %1718 = vmatprep.mubr.msk.bf16.mxu0 %vm493_vm1, %v1782_v3  ;;  %v1785_v6 = vld [vmem:[%s2007_s27 + $0x48] sm:$0xff]   ;;  %v1787_v8 = vld [vmem:[%s2007_s27 + $0x50] sm:$0xff]  }
  0x13   : > { %1734 = vmatprep.mubr.msk.bf16.mxu1 %vm493_vm1, %v1783_v4  ;;  %1719 = vmatmul.mubr.msk.bf16.vlgmr.msra.gmra.mrb[0].mxu0 %vm493_vm1, %v1784_v5  ;;  %v1788_v9 = vld [vmem:[%s2007_s27 + $0x18] sm:$0xff]   ;;  %v1790_v11 = vld [vmem:[%s2007_s27 + $0x20] sm:$0xff]   ;;  %v1792_v13 = vld [vmem:[%s2007_s27 + $0x28] sm:$0xff]  }
  0x14   : > { %1735 = vmatmul.mubr.msk.bf16.vlgmr.msra.gmra.mrb[0].mxu1 %vm493_vm1, %v1785_v6  ;;  %1722 = vmatprep.mubr.msk.bf16.mxu0 %vm493_vm1, %v1786_v7  ;;  %v1789_v10 = vld [vmem:[%s2007_s27 + $0x58] sm:$0xff]   ;;  %v1791_v12 = vld [vmem:[%s2007_s27 + $0x60] sm:$0xff]   ;;  %v1793_v14 = vld [vmem:[%s2007_s27 + $0x68] sm:$0xff]  }
  0x15   : > { %1738 = vmatprep.mubr.msk.bf16.mxu1 %vm493_vm1, %v1787_v8  ;;  %v1794_v15 = vld [vmem:[%s2007_s27 + $0x30] sm:$0xff]   ;;  %v1796_v17 = vld [vmem:[%s2007_s27 + $0x38] sm:$0xff]  }
  0x16   : > { %v1795_v16 = vld [vmem:[%s2007_s27 + $0x70] sm:$0xff]   ;;  %v1797_v18 = vld [vmem:[%s2007_s27 + $0x78] sm:$0xff]  }
  0x1b   : > { %1723 = vmatmul.mubr.msk.bf16.gmra.mrb[4].mxu0 %vm493_vm1, %v1788_v9 }
  0x1c   : > { %1739 = vmatmul.mubr.msk.bf16.gmra.mrb[4].mxu1 %vm493_vm1, %v1789_v10  ;;  %1726 = vmatprep.mubr.msk.bf16.mxu0 %vm493_vm1, %v1790_v11 }
  0x1d   : > { %1742 = vmatprep.mubr.msk.bf16.mxu1 %vm493_vm1, %v1791_v12 }
  0x23   : > { %1727 = vmatmul.mubr.msk.bf16.gmra.mrb[8].mxu0 %vm493_vm1, %v1792_v13 }
  0x24   : > { %1743 = vmatmul.mubr.msk.bf16.gmra.mrb[8].mxu1 %vm493_vm1, %v1793_v14  ;;  %1730 = vmatprep.mubr.msk.bf16.mxu0 %vm493_vm1, %v1794_v15 }
  0x25   : > { %1746 = vmatprep.mubr.msk.bf16.mxu1 %vm493_vm1, %v1795_v16 }
  0x2b   : > { %1731 = vmatmul.mubr.msk.bf16.gmra.mrb[12].mxu0 %vm493_vm1, %v1796_v17 }
  0x2c   : > { %1747 = vmatmul.mubr.msk.bf16.gmra.mrb[12].mxu1 %vm493_vm1, %v1797_v18 }
  0xe6   : > { %v1720_v20 = vpop.f32.mrb[0].mxu0 }
  0xe7   : > { %v815_v22 = vmul.f32 %v1720_v20, %v2044_v19  ;;  %v1736_v23 = vpop.f32.mrb[0].mxu1  ;;  %v580_v24 = vpop.f32.mrb[1].mxu0 }
  0xe8   : > { %v831_v25 = vmul.f32 %v1736_v23, %v2044_v19  ;;  %v813_v26 = vmul.f32 %v2044_v19, %v580_v24  ;;  %v644_v27 = vpop.f32.mrb[1].mxu1  ;;  %v1721_v28 = vpop.f32.mrb[2].mxu0 }
  0xe9   : > { %v2055_v29 = vadd.f32 %v2049_v21, %v815_v22  ;;  %v829_v30 = vmul.f32 %v2044_v19, %v644_v27  ;;  %v816_v31 = vmul.f32 %v1721_v28, %v2044_v19  ;;  %v1737_v32 = vpop.f32.mrb[2].mxu1  ;;  %v583_v33 = vpop.f32.mrb[3].mxu0 }
  0xea   : > { %v2060_v34 = vadd.f32 %v2049_v21, %v831_v25  ;;  %v2063_v35 = vadd.f32 %v2049_v21, %v813_v26  ;;  %v832_v36 = vmul.f32 %v1737_v32, %v2044_v19  ;;  %v647_v37 = vpop.f32.mrb[3].mxu1  ;;  %v814_v41 = vmul.f32 %v2044_v19, %v583_v33 }
  0xeb   : > { %v886_v38 = vand.u32 2147483647, %v2055_v29  ;;  %v2068_v39 = vadd.f32 %v2049_v21, %v829_v30  ;;  %v2071_v40 = vadd.f32 %v2049_v21, %v816_v31  ;;  %v830_v60 = vmul.f32 %v2044_v19, %v647_v37 }
  0xec   : > { %v902_v42 = vand.u32 2147483647, %v2060_v34  ;;  %v884_v43 = vand.u32 2147483647, %v2063_v35  ;;  %v2079_v49 = vadd.f32 %v2049_v21, %v832_v36  ;;  %v2082_v54 = vadd.f32 %v2049_v21, %v814_v41 }
  0xed   : > { %v918_v44 = vsub.f32 0.0, %v886_v38  ;;  %v900_v45 = vand.u32 2147483647, %v2068_v39  ;;  %v887_v46 = vand.u32 2147483647, %v2071_v40  ;;  %v2088_v4 = vadd.f32 %v2049_v21, %v830_v60 }
  0xee   : > { %v934_v47 = vsub.f32 0.0, %v902_v42  ;;  %v916_v48 = vsub.f32 0.0, %v884_v43  ;;  %v1724_v50 = vpop.f32.mrb[4].mxu0  ;;  %v903_v59 = vand.u32 2147483647, %v2079_v49  ;;  %vm1078_vm2 = vcmp.ge.f32.partialorder %v2055_v29, 0.0 }
  0xef   : > { %v952_v51 = vmul.f32 1.442695, %v918_v44  ;;  %v932_v52 = vsub.f32 0.0, %v900_v45  ;;  %v919_v53 = vsub.f32 0.0, %v887_v46  ;;  %v1740_v55 = vpop.f32.mrb[4].mxu1  ;;  %v596_v56 = vpop.f32.mrb[5].mxu0  ;;  %v819_v5 = vmul.f32 %v1724_v50, %v2044_v19 }
  0xf0   : > { %v984_v57 = vmul.f32 1.442695, %v934_v47  ;;  %v948_v58 = vmul.f32 1.442695, %v916_v48  ;;  %v660_v63 = vpop.f32.mrb[5].mxu1  ;;  %v935_v0 = vsub.f32 0.0, %v903_v59  ;;  %v835_v6 = vmul.f32 %v1740_v55, %v2044_v19 }
  0xf1   : > { %1798 = vpow2.f32 %v952_v51  ;;  %v980_v61 = vmul.f32 1.442695, %v932_v52  ;;  %v954_v62 = vmul.f32 1.442695, %v919_v53  ;;  %v885_v1 = vand.u32 2147483647, %v2082_v54 }
  0xf2   : > { %1800 = vpow2.f32 %v984_v57  ;;  %v1725_v2 = vpop.f32.mrb[6].mxu0  ;;  %v1741_v3 = vpop.f32.mrb[6].mxu1  ;;  %v986_v9 = vmul.f32 1.442695, %v935_v0  ;;  %v817_v11 = vmul.f32 %v2044_v19, %v596_v56  ;;  %v901_v12 = vand.u32 2147483647, %v2088_v4 }
  0xf3   : > { %1802 = vpow2.f32 %v948_v58  ;;  %v2092_v7 = vpop.f32.mrb[7].mxu0  ;;  %v2094_v8 = vpop.f32.mrb[7].mxu1  ;;  %v917_v10 = vsub.f32 0.0, %v885_v1  ;;  %v2099_v13 = vadd.f32 %v2049_v21, %v819_v5  ;;  %v2102_v15 = vadd.f32 %v2049_v21, %v835_v6 }
  0xf4   : > { %1804 = vpow2.f32 %v980_v61  ;;  %v2105_v16 = vadd.f32 %v2049_v21, %v817_v11  ;;  %v933_v18 = vsub.f32 0.0, %v901_v12  ;;  %v833_v22 = vmul.f32 %v2044_v19, %v660_v63 }
  0xf5   : > { %1806 = vpow2.f32 %v954_v62  ;;  %v950_v14 = vmul.f32 1.442695, %v917_v10  ;;  %v890_v20 = vand.u32 2147483647, %v2099_v13  ;;  %v906_v25 = vand.u32 2147483647, %v2102_v15 }
  0xf6   : > { %1808 = vpow2.f32 %v986_v9  ;;  %v1728_v17 = vpop.f32.mrb[8].mxu0  ;;  %v888_v26 = vand.u32 2147483647, %v2105_v16  ;;  %v982_v28 = vmul.f32 1.442695, %v933_v18  ;;  %v2118_v31 = vadd.f32 %v2049_v21, %v833_v22 }
  0xf7   : > { %v2109_v23 = vpop.f32.mrb[8].mxu1  ;;  %v2111_v24 = vpop.f32.mrb[9].mxu0  ;;  %1810 = vpow2.f32 %v950_v14  ;;  %v922_v30 = vsub.f32 0.0, %v890_v20  ;;  %v820_v36 = vmul.f32 %v1725_v2, %v2044_v19  ;;  %v836_v37 = vmul.f32 %v1741_v3, %v2044_v19 }
  0xf8   : > { %v2115_v27 = vpop.f32.mrb[9].mxu1  ;;  %v2120_v32 = vpop.f32.mrb[10].mxu0  ;;  %1812 = vpow2.f32 %v982_v28  ;;  %v938_v44 = vsub.f32 0.0, %v906_v25  ;;  %v904_v45 = vand.u32 2147483647, %v2118_v31  ;;  %v920_v48 = vsub.f32 0.0, %v888_v26 }
  0xf9   : > { %v2122_v33 = vpop.f32.mrb[10].mxu1  ;;  %v2126_v38 = vpop.f32.mrb[11].mxu0  ;;  %v960_v43 = vmul.f32 1.442695, %v922_v30  ;;  %v2137_v50 = vadd.f32 %v2049_v21, %v820_v36  ;;  %v2143_v53 = vadd.f32 %v2049_v21, %v836_v37  ;;  %v818_v11 = vmul.f32 %v2044_v19, %v2092_v7 }
  0xfa   : > { %v2128_v41 = vpop.f32.mrb[11].mxu1  ;;  %v936_v57 = vsub.f32 0.0, %v904_v45  ;;  %v992_v62 = vmul.f32 1.442695, %v938_v44  ;;  %v956_v3 = vmul.f32 1.442695, %v920_v48  ;;  %v834_v22 = vmul.f32 %v2044_v19, %v2094_v8 }
  0xfb   : > { %v2130_v42 = vpop.eup %1798  ;;  %1814 = vpow2.f32 %v960_v43  ;;  %v891_v58 = vand.u32 2147483647, %v2137_v50  ;;  %v907_v63 = vand.u32 2147483647, %v2143_v53  ;;  %v823_v25 = vmul.f32 %v1728_v17, %v2044_v19 }
  0xfc   : > { %v2133_v46 = vpop.eup %1800  ;;  %v1014_v47 = vadd.f32 1.0, %v2130_v42  ;;  %v988_v20 = vmul.f32 1.442695, %v936_v57  ;;  %vm1094_vm3 = vcmp.ge.f32.partialorder %v2060_v34, 0.0  ;;  %v2184_v36 = vadd.f32 %v2049_v21, %v818_v11 }
  0xfd   : > { %v2139_v51 = vpop.eup %1802  ;;  %v1030_v52 = vadd.f32 1.0, %v2133_v46  ;;  %v923_v10 = vsub.f32 0.0, %v891_v58  ;;  %v939_v30 = vsub.f32 0.0, %v907_v63  ;;  %v2187_v37 = vadd.f32 %v2049_v21, %v834_v22 }
  0xfe   : > { %v2145_v55 = vpop.eup %1804  ;;  %1816 = vrcp.f32 %v1014_v47  ;;  %v1012_v56 = vadd.f32 1.0, %v2139_v51  ;;  %v2149_v59 = vpop.f32.mrb[12].mxu0  ;;  %v2190_v8 = vadd.f32 %v2049_v21, %v823_v25  ;;  %v839_v17 = vmul.f32 %v2109_v23, %v2044_v19 }
  0xff   : > { %v2151_v60 = vpop.eup %1806  ;;  %1818 = vrcp.f32 %v1030_v52  ;;  %v1028_v61 = vadd.f32 1.0, %v2145_v55  ;;  %v2155_v0 = vpop.f32.mrb[12].mxu1  ;;  %vm1076_vm4 = vcmp.ge.f32.partialorder %v2063_v35, 0.0  ;;  %v962_v44 = vmul.f32 1.442695, %v923_v10 }
 0x100   : > { %v2157_v1 = vpop.eup %1808  ;;  %1820 = vrcp.f32 %v1012_v56  ;;  %v1015_v2 = vadd.f32 1.0, %v2151_v60  ;;  %v2160_v5 = vpop.f32.mrb[13].mxu0  ;;  %v889_v45 = vand.u32 2147483647, %v2184_v36  ;;  %vm1092_vm5 = vcmp.ge.f32.partialorder %v2068_v39, 0.0 }
 0x101   : > { %v2162_v6 = vpop.f32.mrb[13].mxu1  ;;  %1822 = vrcp.f32 %v1028_v61  ;;  %v1031_v9 = vadd.f32 1.0, %v2157_v1  ;;  %v2167_v12 = vpop.f32.mrb[14].mxu0  ;;  %vm1079_vm6 = vcmp.ge.f32.partialorder %v2071_v40, 0.0  ;;  %v905_v48 = vand.u32 2147483647, %v2187_v37 }
 0x102   : > { %v2169_v14 = vpop.f32.mrb[14].mxu1  ;;  %v2171_v18 = vpop.eup %1810  ;;  %1824 = vrcp.f32 %v1015_v2  ;;  %vm1095_vm7 = vcmp.ge.f32.partialorder %v2079_v49, 0.0  ;;  %v994_v23 = vmul.f32 1.442695, %v939_v30  ;;  %v921_v56 = vsub.f32 0.0, %v889_v45 }
 0x103   : > { %v2177_v26 = vpop.f32.mrb[15].mxu0  ;;  %v2179_v28 = vpop.f32.mrb[15].mxu1  ;;  %1826 = vrcp.f32 %v1031_v9  ;;  %v1013_v7 = vadd.f32 1.0, %v2171_v18  ;;  %v894_v57 = vand.u32 2147483647, %v2190_v8  ;;  %v2208_v63 = vadd.f32 %v2049_v21, %v839_v17 }
 0x104   : > { %1828 = vpow2.f32 %v992_v62  ;;  %v2194_v43 = vpop.eup %1812  ;;  %v937_v62 = vsub.f32 0.0, %v905_v48  ;;  %v958_v9 = vmul.f32 1.442695, %v921_v56  ;;  %vm1077_vm8 = vcmp.ge.f32.partialorder %v2082_v54, 0.0 }
 0x105   : > { %1830 = vrcp.f32 %v1013_v7  ;;  %v1029_v47 = vadd.f32 1.0, %v2194_v43  ;;  %v2202_v52 = vpop.eup %1814  ;;  %v926_v10 = vsub.f32 0.0, %v894_v57  ;;  %v910_v17 = vand.u32 2147483647, %v2208_v63 }
 0x106   : > { %1832 = vpow2.f32 %v956_v3  ;;  %v1018_v61 = vadd.f32 1.0, %v2202_v52  ;;  %v990_v22 = vmul.f32 1.442695, %v937_v62  ;;  %vm1093_vm9 = vcmp.ge.f32.partialorder %v2088_v4, 0.0 }
 0x107   : > { %1834 = vpow2.f32 %v988_v20  ;;  %vm1082_vm10 = vcmp.ge.f32.partialorder %v2099_v13, 0.0  ;;  %vm1098_vm11 = vcmp.ge.f32.partialorder %v2102_v15, 0.0  ;;  %vm1080_vm12 = vcmp.ge.f32.partialorder %v2105_v16, 0.0 }
 0x108   : > { %v1817_v58 = vpop.eup %1816  ;;  %1836 = vrcp.f32 %v1029_v47  ;;  %vm1096_vm13 = vcmp.ge.f32.partialorder %v2118_v31, 0.0  ;;  %vm1083_vm14 = vcmp.ge.f32.partialorder %v2137_v50, 0.0  ;;  %vm1099_vm15 = vcmp.ge.f32.partialorder %v2143_v53, 0.0 }
 0x109   : > { %v1819_v2 = vpop.eup %1818  ;;  %v1110_v3 = vmul.f32 %v1817_v58, %v2130_v42  ;;  %1838 = vpow2.f32 %v962_v44  ;;  %vm1081_vm0 = vcmp.ge.f32.partialorder %v2184_v36, 0.0  ;;  %vm1097_vm1 = vcmp.ge.f32.partialorder %v2187_v37, 0.0 }
 0x10a   : > { %v1821_v11 = vpop.eup %1820  ;;  %v1126_v20 = vmul.f32 %v1819_v2, %v2133_v46  ;;  %1840 = vrcp.f32 %v1018_v61  ;;  %v968_v46 = vmul.f32 1.442695, %v926_v10 }
 0x10b   : > { %v1823_v25 = vpop.eup %1822  ;;  %v1142_v7 = vsel %vm1078_vm2, %v1817_v58, %v1110_v3  ;;  %v1108_v30 = vmul.f32 %v1821_v11, %v2139_v51  ;;  %1842 = vpow2.f32 %v994_v23  ;;  %v821_v51 = vmul.f32 %v2044_v19, %v2111_v24 }
 0x10c   : > { %v1825_v42 = vpop.eup %1824  ;;  %v1158_v44 = vsel %vm1094_vm3, %v1819_v2, %v1126_v20  ;;  %v1124_v45 = vmul.f32 %v1823_v25, %v2145_v55  ;;  %1844 = vpow2.f32 %v958_v9  ;;  %v1174_v57 = vmul.f32 %v1142_v7, %v2055_v29 }
 0x10d   : > { %v1827_v47 = vpop.eup %1826  ;;  %v1140_v48 = vsel %vm1076_vm4, %v1821_v11, %v1108_v30  ;;  %v1111_v56 = vmul.f32 %v1825_v42, %v2151_v60  ;;  %1846 = vpow2.f32 %v990_v22  ;;  %v1190_v58 = vmul.f32 %v1158_v44, %v2060_v34 }
 0x10e   : > { %v2225_v23 = vpop.eup %1828  ;;  %v1172_v55 = vmul.f32 %v1140_v48, %v2063_v35  ;;  %v1127_v61 = vmul.f32 %v1827_v47, %v2157_v1  ;;  %v1156_v2 = vsel %vm1092_vm5, %v1823_v25, %v1124_v45  ;;  %v942_v3 = vsub.f32 0.0, %v910_v17 }
 0x10f   : > { %v1831_v62 = vpop.eup %1830  ;;  %v1143_v60 = vsel %vm1079_vm6, %v1825_v42, %v1111_v56  ;;  %v1034_v24 = vadd.f32 1.0, %v2225_v23  ;;  %1848 = vpow2.f32 %v968_v46  ;;  %v2257_v7 = vadd.f32 %v2049_v21, %v821_v51 }
 0x110   : > { %v2236_v9 = vpop.eup %1832  ;;  %v1175_v29 = vmul.f32 %v1143_v60, %v2071_v40  ;;  %v1159_v34 = vsel %vm1095_vm7, %v1827_v47, %v1127_v61  ;;  %v1109_v35 = vmul.f32 %v1831_v62, %v2171_v18  ;;  %v1000_v11 = vmul.f32 1.442695, %v942_v3 }
 0x111   : > { %v2242_v1 = vpop.eup %1834  ;;  %v1191_v10 = vmul.f32 %v1159_v34, %v2079_v49  ;;  %1850 = vrcp.f32 %v1034_v24  ;;  %v1016_v40 = vadd.f32 1.0, %v2236_v9  ;;  %v892_v46 = vand.u32 2147483647, %v2257_v7 }
 0x112   : > { %v1837_v20 = vpop.eup %1836  ;;  %v1609_v22 = vpack.c.bf16 %v1175_v29, %v1174_v57  ;;  %v1141_v18 = vsel %vm1077_vm8, %v1831_v62, %v1109_v35  ;;  %v1032_v25 = vadd.f32 1.0, %v2242_v1  ;;  %v1188_v48 = vmul.f32 %v1156_v2, %v2068_v39 }
 0x113   : > { %v2259_v30 = vpop.eup %1838  ;;  %v1649_v17 = vpack.c.bf16 %v1191_v10, %v1190_v58  ;;  %v1173_v49 = vmul.f32 %v1141_v18, %v2082_v54  ;;  %v1125_v42 = vmul.f32 %v1837_v20, %v2194_v43  ;;  %1852 = vrcp.f32 %v1016_v40 }
 0x114   : > { %v1841_v44 = vpop.eup %1840  ;;  %1681 = vst [vmem:[%s2249_s8 + $0x8] sm:$0xff] %v1609_v22   ;;  %1854 = vrcp.f32 %v1032_v25  ;;  %v1019_v45 = vadd.f32 1.0, %v2259_v30  ;;  %v924_v58 = vsub.f32 0.0, %v892_v46  ;;  %v837_v39 = vmul.f32 %v2044_v19, %v2115_v27 }
 0x115   : > { %v2267_v47 = vpop.eup %1842  ;;  %1689 = vst [vmem:[%s2249_s8 + $0x48] sm:$0xff] %v1649_v17   ;;  %v1604_v56 = vpack.c.bf16 %v1173_v49, %v1172_v55  ;;  %v1157_v54 = vsel %vm1093_vm9, %v1837_v20, %v1125_v42  ;;  %v824_v55 = vmul.f32 %v2120_v32, %v2044_v19  ;;  %v1114_v60 = vmul.f32 %v1841_v44, %v2202_v52 }
 0x116   : > { %v2271_v51 = vpop.eup %1844  ;;  %v1189_v43 = vmul.f32 %v1157_v54, %v2088_v4  ;;  %1856 = vrcp.f32 %v1019_v45  ;;  %v1035_v57 = vadd.f32 1.0, %v2267_v47  ;;  %v964_v24 = vmul.f32 1.442695, %v924_v58 }
 0x117   : > { %v2275_v61 = vpop.eup %1846  ;;  %1605 = vst [vmem:[%s2249_s8] sm:$0xff] %v1604_v56   ;;  %v1017_v62 = vadd.f32 1.0, %v2271_v51  ;;  %1858 = vpow2.f32 %v1000_v11  ;;  %v2286_v3 = vadd.f32 %v2049_v21, %v837_v39  ;;  %v2292_v27 = vadd.f32 %v2049_v21, %v824_v55 }
 0x118   : > { %v1644_v2 = vpack.c.bf16 %v1189_v43, %v1188_v48  ;;  %1860 = vrcp.f32 %v1035_v57  ;;  %v1033_v4 = vadd.f32 1.0, %v2275_v61  ;;  %v840_v32 = vmul.f32 %v2122_v33, %v2044_v19 }
 0x119   : > { %1862 = vrcp.f32 %v1017_v62  ;;  %v2288_v29 = vpop.eup %1848  ;;  %v822_v34 = vmul.f32 %v2044_v19, %v2126_v38  ;;  %v908_v52 = vand.u32 2147483647, %v2286_v3  ;;  %v895_v33 = vand.u32 2147483647, %v2292_v27 }
 0x11a   : > { %1688 = vst [vmem:[%s2249_s8 + $0x40] sm:$0xff] %v1644_v2   ;;  %1864 = vrcp.f32 %v1033_v4  ;;  %v1146_v38 = vsel %vm1082_vm10, %v1841_v44, %v1114_v60  ;;  %v2307_v20 = vadd.f32 %v2049_v21, %v840_v32  ;;  %v838_v22 = vmul.f32 %v2044_v19, %v2128_v41 }
 0x11b   : > { %v1851_v35 = vpop.eup %1850  ;;  %1866 = vpow2.f32 %v964_v24  ;;  %v940_v11 = vsub.f32 0.0, %v908_v52  ;;  %v2314_v25 = vadd.f32 %v2049_v21, %v822_v34  ;;  %v1178_v41 = vmul.f32 %v1146_v38, %v2099_v13 }
 0x11c   : > { %v1130_v10 = vmul.f32 %v1851_v35, %v2225_v23  ;;  %v927_v23 = vsub.f32 0.0, %v895_v33  ;;  %v911_v44 = vand.u32 2147483647, %v2307_v20  ;;  %v1022_v46 = vadd.f32 1.0, %v2288_v29 }
 0x11d   : > { %v1853_v40 = vpop.eup %1852  ;;  %v996_v42 = vmul.f32 1.442695, %v940_v11  ;;  %v2328_v57 = vadd.f32 %v2049_v21, %v838_v22  ;;  %v893_v39 = vand.u32 2147483647, %v2314_v25  ;;  %vm1086_vm2 = vcmp.ge.f32.partialorder %v2190_v8, 0.0 }
 0x11e   : > { %v1855_v18 = vpop.eup %1854  ;;  %v1162_v17 = vsel %vm1098_vm11, %v1851_v35, %v1130_v10  ;;  %v1112_v49 = vmul.f32 %v1853_v40, %v2236_v9  ;;  %v970_v48 = vmul.f32 1.442695, %v927_v23  ;;  %v827_v9 = vmul.f32 %v2149_v59, %v2044_v19 }
 0x11f   : > { %v1128_v54 = vmul.f32 %v1855_v18, %v2242_v1  ;;  %v1194_v13 = vmul.f32 %v1162_v17, %v2102_v15  ;;  %1868 = vpow2.f32 %v996_v42  ;;  %v943_v62 = vsub.f32 0.0, %v911_v44 }
 0x120   : > { %v1857_v45 = vpop.eup %1856  ;;  %v1144_v2 = vsel %vm1080_vm12, %v1853_v40, %v1112_v49  ;;  %1870 = vpow2.f32 %v970_v48  ;;  %v925_v24 = vsub.f32 0.0, %v893_v39  ;;  %v909_v52 = vand.u32 2147483647, %v2328_v57 }
 0x121   : > { %v2323_v56 = vpop.eup %1858  ;;  %v1115_v43 = vmul.f32 %v1857_v45, %v2259_v30  ;;  %v1002_v15 = vmul.f32 1.442695, %v943_v62  ;;  %v1160_v32 = vsel %vm1096_vm13, %v1855_v18, %v1128_v54  ;;  %v1176_v40 = vmul.f32 %v1144_v2, %v2105_v16 }
 0x122   : > { %v1861_v58 = vpop.eup %1860  ;;  %v1038_v33 = vadd.f32 1.0, %v2323_v56  ;;  %v1192_v11 = vmul.f32 %v1160_v32, %v2118_v31  ;;  %v966_v18 = vmul.f32 1.442695, %v925_v24  ;;  %v941_v16 = vsub.f32 0.0, %v909_v52 }
 0x123   : > { %v1863_v55 = vpop.eup %1862  ;;  %v1147_v1 = vsel %vm1083_vm14, %v1857_v45, %v1115_v43  ;;  %v1131_v30 = vmul.f32 %v1861_v58, %v2267_v47  ;;  %1872 = vpow2.f32 %v1002_v15  ;;  %v2363_v49 = vadd.f32 %v2049_v21, %v827_v9 }
 0x124   : > { %v1865_v4 = vpop.eup %1864  ;;  %v1179_v59 = vmul.f32 %v1147_v1, %v2137_v50  ;;  %v1113_v60 = vmul.f32 %v1863_v55, %v2271_v51  ;;  %1874 = vrcp.f32 %v1022_v46  ;;  %v843_v31 = vmul.f32 %v2155_v0, %v2044_v19 }
 0x125   : > { %v1163_v34 = vsel %vm1099_vm15, %v1861_v58, %v1131_v30  ;;  %v1129_v35 = vmul.f32 %v1865_v4, %v2275_v61  ;;  %v2347_v47 = vpop.eup %1866  ;;  %1876 = vpow2.f32 %v966_v18  ;;  %v998_v42 = vmul.f32 1.442695, %v941_v16 }
 0x126   : > { %v1619_v10 = vpack.c.bf16 %v1179_v59, %v1178_v41  ;;  %v1195_v50 = vmul.f32 %v1163_v34, %v2143_v53  ;;  %v1145_v51 = vsel %vm1081_vm0, %v1863_v55, %v1113_v60  ;;  %v1020_v17 = vadd.f32 1.0, %v2347_v47 }
 0x127   : > { %v1177_v38 = vmul.f32 %v1145_v51, %v2184_v36  ;;  %v1161_v61 = vsel %vm1097_vm1, %v1865_v4, %v1129_v35  ;;  %v841_v44 = vmul.f32 %v2044_v19, %v2162_v6  ;;  %1878 = vrcp.f32 %v1038_v33 }
 0x128   : > { %1683 = vst [vmem:[%s2249_s8 + $0x18] sm:$0xff] %v1619_v10   ;;  %v1659_v22 = vpack.c.bf16 %v1195_v50, %v1194_v13  ;;  %v1193_v53 = vmul.f32 %v1161_v61, %v2187_v37  ;;  %v825_v37 = vmul.f32 %v2044_v19, %v2160_v5  ;;  %v898_v41 = vand.u32 2147483647, %v2363_v49 }
 0x129   : > { %v1614_v23 = vpack.c.bf16 %v1177_v38, %v1176_v40  ;;  %v2372_v45 = vpop.eup %1868  ;;  %v2377_v46 = vadd.f32 %v2049_v21, %v843_v31  ;;  %1880 = vpow2.f32 %v998_v42  ;;  %v2383_v54 = vadd.f32 %v2049_v21, %v841_v44 }
 0x12a   : > { %1691 = vst [vmem:[%s2249_s8 + $0x58] sm:$0xff] %v1659_v22   ;;  %v1654_v36 = vpack.c.bf16 %v1193_v53, %v1192_v11  ;;  %v1871_v48 = vpop.eup %1870  ;;  %v2380_v0 = vadd.f32 %v2049_v21, %v825_v37  ;;  %v828_v5 = vmul.f32 %v2167_v12, %v2044_v19  ;;  %1882 = vrcp.f32 %v1020_v17 }
 0x12b   : > { %1682 = vst [vmem:[%s2249_s8 + $0x10] sm:$0xff] %v1614_v23   ;;  %v1023_v6 = vadd.f32 1.0, %v1871_v48  ;;  %v930_v43 = vsub.f32 0.0, %v898_v41  ;;  %v914_v9 = vand.u32 2147483647, %v2377_v46  ;;  %v1036_v58 = vadd.f32 1.0, %v2372_v45 }
 0x12c   : > { %1690 = vst [vmem:[%s2249_s8 + $0x50] sm:$0xff] %v1654_v36   ;;  %v896_v13 = vand.u32 2147483647, %v2380_v0  ;;  %v912_v1 = vand.u32 2147483647, %v2383_v54  ;;  %v2394_v30 = vadd.f32 %v2049_v21, %v828_v5  ;;  %v844_v59 = vmul.f32 %v2169_v14, %v2044_v19 }
 0x12d   : > { %1884 = vrcp.f32 %v1023_v6  ;;  %v976_v62 = vmul.f32 1.442695, %v930_v43  ;;  %v946_v39 = vsub.f32 0.0, %v914_v9  ;;  %v2390_v55 = vpop.eup %1872  ;;  %v826_v52 = vmul.f32 %v2044_v19, %v2177_v26 }
 0x12e   : > { %v928_v2 = vsub.f32 0.0, %v896_v13  ;;  %v1039_v12 = vadd.f32 1.0, %v2390_v55  ;;  %v1875_v60 = vpop.eup %1874  ;;  %v944_v24 = vsub.f32 0.0, %v912_v1  ;;  %v899_v32 = vand.u32 2147483647, %v2394_v30 }
 0x12f   : > { %1886 = vpow2.f32 %v976_v62  ;;  %v1008_v4 = vmul.f32 1.442695, %v946_v39  ;;  %v2400_v34 = vpop.eup %1876  ;;  %v2403_v35 = vadd.f32 %v2049_v21, %v844_v59  ;;  %v1118_v33 = vmul.f32 %v1875_v60, %v2288_v29 }
 0x130   : > { %1888 = vrcp.f32 %v1036_v58  ;;  %v972_v15 = vmul.f32 1.442695, %v928_v2  ;;  %v1021_v10 = vadd.f32 1.0, %v2400_v34  ;;  %v1004_v50 = vmul.f32 1.442695, %v944_v24 }
 0x131   : > { %1890 = vrcp.f32 %v1039_v12  ;;  %v931_v14 = vsub.f32 0.0, %v899_v32  ;;  %v1879_v51 = vpop.eup %1878  ;;  %v915_v40 = vand.u32 2147483647, %v2403_v35  ;;  %v2413_v11 = vadd.f32 %v2049_v21, %v826_v52 }
 0x132   : > { %1892 = vpow2.f32 %v1008_v4  ;;  %v842_v18 = vmul.f32 %v2044_v19, %v2179_v28  ;;  %v1150_v17 = vsel %vm1086_vm2, %v1875_v60, %v1118_v33  ;;  %v1134_v31 = vmul.f32 %v1879_v51, %v2323_v56 }
 0x133   : > { %1894 = vpow2.f32 %v972_v15  ;;  %v2410_v38 = vpop.eup %1880  ;;  %v978_v61 = vmul.f32 1.442695, %v931_v14  ;;  %v947_v53 = vsub.f32 0.0, %v915_v40  ;;  %v897_v29 = vand.u32 2147483647, %v2413_v11 }
 0x134   : > { %1896 = vrcp.f32 %v1021_v10  ;;  %v1883_v22 = vpop.eup %1882  ;;  %v1037_v26 = vadd.f32 1.0, %v2410_v38  ;;  %v2421_v36 = vadd.f32 %v2049_v21, %v842_v18  ;;  %vm1102_vm3 = vcmp.ge.f32.partialorder %v2208_v63, 0.0 }
 0x135   : > { %1898 = vpow2.f32 %v1004_v50  ;;  %v1010_v16 = vmul.f32 1.442695, %v947_v53  ;;  %v1116_v42 = vmul.f32 %v1883_v22, %v2347_v47  ;;  %v929_v44 = vsub.f32 0.0, %v897_v29 }
 0x136   : > { %1900 = vpow2.f32 %v978_v61  ;;  %vm1087_vm4 = vcmp.ge.f32.partialorder %v2292_v27, 0.0  ;;  %v913_v19 = vand.u32 2147483647, %v2421_v36  ;;  %vm1084_vm5 = vcmp.ge.f32.partialorder %v2257_v7, 0.0 }
 0x137   : > { %v1885_v23 = vpop.eup %1884  ;;  %1902 = vrcp.f32 %v1037_v26  ;;  %v974_v56 = vmul.f32 1.442695, %v929_v44  ;;  %v1182_v47 = vmul.f32 %v1150_v17, %v2190_v8  ;;  %vm1103_vm6 = vcmp.ge.f32.partialorder %v2307_v20, 0.0 }
 0x138   : > { %v1119_v37 = vmul.f32 %v1885_v23, %v1871_v48  ;;  %1904 = vpow2.f32 %v1010_v16  ;;  %v945_v43 = vsub.f32 0.0, %v913_v19  ;;  %v1166_v58 = vsel %vm1102_vm3, %v1879_v51, %v1134_v31 }
 0x139   : > { %v2425_v41 = vpop.eup %1886  ;;  %v1148_v13 = vsel %vm1084_vm5, %v1883_v22, %v1116_v42  ;;  %v1198_v15 = vmul.f32 %v1166_v58, %v2208_v63  ;;  %vm1100_vm7 = vcmp.ge.f32.partialorder %v2286_v3, 0.0  ;;  %vm1085_vm8 = vcmp.ge.f32.partialorder %v2314_v25, 0.0 }
 0x13a   : > { %v1889_v28 = vpop.eup %1888  ;;  %v1151_v21 = vsel %vm1087_vm4, %v1885_v23, %v1119_v37  ;;  %v1026_v5 = vadd.f32 1.0, %v2425_v41  ;;  %v1006_v12 = vmul.f32 1.442695, %v945_v43  ;;  %v1180_v52 = vmul.f32 %v1148_v13, %v2257_v7 }
 0x13b   : > { %v1891_v6 = vpop.eup %1890  ;;  %v1183_v48 = vmul.f32 %v1151_v21, %v2292_v27  ;;  %v1132_v8 = vmul.f32 %v1889_v28, %v2372_v45  ;;  %vm1101_vm9 = vcmp.ge.f32.partialorder %v2328_v57, 0.0  ;;  %vm1090_vm10 = vcmp.ge.f32.partialorder %v2363_v49, 0.0 }
 0x13c   : > { %v1893_v9 = vpop.eup %1892  ;;  %v1135_v62 = vmul.f32 %v1891_v6, %v2390_v55  ;;  %1906 = vrcp.f32 %v1026_v5  ;;  %vm1091_vm11 = vcmp.ge.f32.partialorder %v2394_v30, 0.0  ;;  %vm1106_vm12 = vcmp.ge.f32.partialorder %v2377_v46, 0.0 }
 0x13d   : > { %v2436_v39 = vpop.eup %1894  ;;  %v1629_v2 = vpack.c.bf16 %v1183_v48, %v1182_v47  ;;  %v1042_v1 = vadd.f32 1.0, %v1893_v9  ;;  %1908 = vpow2.f32 %v974_v56  ;;  %v1164_v63 = vsel %vm1100_vm7, %v1889_v28, %v1132_v8 }
 0x13e   : > { %v1897_v4 = vpop.eup %1896  ;;  %v1167_v27 = vsel %vm1103_vm6, %v1891_v6, %v1135_v62  ;;  %v1024_v59 = vadd.f32 1.0, %v2436_v39  ;;  %v1196_v22 = vmul.f32 %v1164_v63, %v2286_v3  ;;  %vm1107_vm13 = vcmp.ge.f32.partialorder %v2403_v35, 0.0 }
 0x13f   : > { %v2440_v60 = vpop.eup %1898  ;;  %1685 = vst [vmem:[%s2249_s8 + $0x28] sm:$0xff] %v1629_v2   ;;  %v1199_v55 = vmul.f32 %v1167_v27, %v2307_v20  ;;  %v1117_v24 = vmul.f32 %v1897_v4, %v2400_v34  ;;  %1910 = vrcp.f32 %v1042_v1  ;;  %vm1088_vm14 = vcmp.ge.f32.partialorder %v2380_v0, 0.0 }
 0x140   : > { %v1901_v32 = vpop.eup %1900  ;;  %1912 = vpow2.f32 %v1006_v12  ;;  %v1040_v40 = vadd.f32 1.0, %v2440_v60  ;;  %vm1089_vm15 = vcmp.ge.f32.partialorder %v2413_v11, 0.0  ;;  %vm1104_vm0 = vcmp.ge.f32.partialorder %v2383_v54, 0.0 }
 0x141   : > { %v1903_v45 = vpop.eup %1902  ;;  %v1669_v10 = vpack.c.bf16 %v1199_v55, %v1198_v15  ;;  %v1149_v50 = vsel %vm1085_vm8, %v1897_v4, %v1117_v24  ;;  %v1027_v14 = vadd.f32 1.0, %v1901_v32  ;;  %1914 = vrcp.f32 %v1024_v59 }
 0x142   : > { %v1181_v20 = vmul.f32 %v1149_v50, %v2314_v25  ;;  %v1133_v34 = vmul.f32 %v1903_v45, %v2410_v38  ;;  %v1905_v51 = vpop.eup %1904  ;;  %vm1105_vm1 = vcmp.ge.f32.partialorder %v2421_v36, 0.0 }
 0x143   : > { %1693 = vst [vmem:[%s2249_s8 + $0x68] sm:$0xff] %v1669_v10   ;;  %1916 = vrcp.f32 %v1027_v14  ;;  %v1043_v61 = vadd.f32 1.0, %v1905_v51 }
 0x144   : > { %v1624_v7 = vpack.c.bf16 %v1181_v20, %v1180_v52  ;;  %v1165_v33 = vsel %vm1101_vm9, %v1903_v45, %v1133_v34 }
 0x145   : > { %v1197_v26 = vmul.f32 %v1165_v33, %v2328_v57  ;;  %1918 = vrcp.f32 %v1043_v61 }
 0x146   : > { %v1907_v53 = vpop.eup %1906  ;;  %1684 = vst [vmem:[%s2249_s8 + $0x20] sm:$0xff] %v1624_v7   ;;  %1920 = vrcp.f32 %v1040_v40 }
 0x147   : > { %v1909_v25 = vpop.eup %1908  ;;  %v1664_v38 = vpack.c.bf16 %v1197_v26, %v1196_v22  ;;  %v1122_v29 = vmul.f32 %v1907_v53, %v2425_v41 }
 0x148   : > { %v1025_v18 = vadd.f32 1.0, %v1909_v25 }
 0x149   : > { %1692 = vst [vmem:[%s2249_s8 + $0x60] sm:$0xff] %v1664_v38   ;;  %v1911_v23 = vpop.eup %1910  ;;  %v1154_v42 = vsel %vm1090_vm10, %v1907_v53, %v1122_v29 }
 0x14a   : > { %1922 = vrcp.f32 %v1025_v18  ;;  %v1913_v17 = vpop.eup %1912  ;;  %v1138_v57 = vmul.f32 %v1911_v23, %v1893_v9  ;;  %v1186_v19 = vmul.f32 %v1154_v42, %v2363_v49 }
 0x14b   : > { %v1915_v16 = vpop.eup %1914  ;;  %v1041_v31 = vadd.f32 1.0, %v1913_v17 }
 0x14c   : > { %v1170_v28 = vsel %vm1106_vm12, %v1911_v23, %v1138_v57  ;;  %v1120_v21 = vmul.f32 %v1915_v16, %v2436_v39 }
 0x14d   : > { %v1917_v3 = vpop.eup %1916  ;;  %1924 = vrcp.f32 %v1041_v31  ;;  %v1202_v9 = vmul.f32 %v1170_v28, %v2377_v46 }
 0x14e   : > { %v1123_v37 = vmul.f32 %v1917_v3, %v1901_v32  ;;  %v1152_v58 = vsel %vm1088_vm14, %v1915_v16, %v1120_v21 }
 0x14f   : > { %v1919_v44 = vpop.eup %1918  ;;  %v1184_v1 = vmul.f32 %v1152_v58, %v2380_v0 }
 0x150   : > { %v1155_v41 = vsel %vm1091_vm11, %v1917_v3, %v1123_v37  ;;  %v1139_v56 = vmul.f32 %v1919_v44, %v1905_v51  ;;  %v1921_v6 = vpop.eup %1920 }
 0x151   : > { %v1187_v5 = vmul.f32 %v1155_v41, %v2394_v30  ;;  %v1136_v13 = vmul.f32 %v1921_v6, %v2440_v60 }
 0x152   : > { %v1171_v48 = vsel %vm1107_vm13, %v1919_v44, %v1139_v56 }
 0x153   : > { %v1639_v47 = vpack.c.bf16 %v1187_v5, %v1186_v19  ;;  %v1203_v49 = vmul.f32 %v1171_v48, %v2403_v35  ;;  %v1168_v35 = vsel %vm1104_vm0, %v1921_v6, %v1136_v13 }
 0x154   : > { %v1923_v43 = vpop.eup %1922  ;;  %v1200_v27 = vmul.f32 %v1168_v35, %v2383_v54 }
 0x155   : > { %1687 = vst [vmem:[%s2249_s8 + $0x38] sm:$0xff] %v1639_v47   ;;  %v1121_v30 = vmul.f32 %v1923_v43, %v1909_v25  ;;  %v1679_v62 = vpack.c.bf16 %v1203_v49, %v1202_v9 }
 0x157   : > { %v1153_v39 = vsel %vm1089_vm15, %v1923_v43, %v1121_v30  ;;  %v1925_v2 = vpop.eup %1924  ;;  %1695 = vst [vmem:[%s2249_s8 + $0x78] sm:$0xff] %v1679_v62  }
 0x158   : > { %v1185_v46 = vmul.f32 %v1153_v39, %v2413_v11  ;;  %v1137_v12 = vmul.f32 %v1925_v2, %v1913_v17 }
 0x15a   : > { %v1634_v4 = vpack.c.bf16 %v1185_v46, %v1184_v1  ;;  %v1169_v8 = vsel %vm1105_vm1, %v1925_v2, %v1137_v12 }
 0x15b   : > { %v1201_v59 = vmul.f32 %v1169_v8, %v2421_v36 }
 0x15c   : > { %1686 = vst [vmem:[%s2249_s8 + $0x30] sm:$0xff] %v1634_v4  }
 0x15d   : > { %v1674_v60 = vpack.c.bf16 %v1201_v59, %v1200_v27 }
 0x15f   : > { %1694 = vst [vmem:[%s2249_s8 + $0x70] sm:$0xff] %v1674_v60  }
 0x160 PF: > { %s14_s17 = sadd.s32 1, %s1948_s17   ;;  %s2495_s15 = smov %s1944_s16 }
 0x161   : > { %p11_p5 = scmp.ge.s32.totalorder %s14_s17, 4   ;;  %s2496_s16 = smov %s2498_s18 }
 0x163   :  { %13 = sbr.rel (!%p11_p5) target bundleno = 2 (0x2), region = 83 }

// kernel: fpn_forward.32
= control target key start
LH: loop header
LB: loop body
LE: loop exit
PB: predicated region body
PF: predicated region fallthrough
CT: control target
= control target key end

     0   :  { %vm92_vm0 = vcmask 785408   ;;  %s391_s1 = inlined_call_operand.vmem [shape: bf16[96,128], index: 1, kind: input, shape index: {}]   ;;  %s392_s0 = inlined_call_operand.vmem [shape: bf16[32,96], index: 0, kind: input, shape index: {}]   ;;  %s393_s2 = inlined_call_operand.vmem [shape: f32[1,128], index: 2, kind: input, shape index: {}]   ;;  %s394_s3 = inlined_call_operand.vmem [shape: f32[1,128], index: 3, kind: input, shape index: {}]   ;;  %s395_s4 = inlined_call_operand.vmem [shape: bf16[32,128], index: 4, kind: output, shape index: {}]  }
   0x1   :  { %v304_v0 = vld [vmem:[%s391_s1] sm:$0xff]   ;;  %v305_v1 = vld [vmem:[%s391_s1 + $0x8] sm:$0xff]   ;;  %v306_v2 = vld [vmem:[%s391_s1 + $0x10] sm:$0xff]  }
   0x2   :  { %288 = vmatprep.subr.bf16.mxu0 %v304_v0  ;;  %v310_v3 = vld [vmem:[%s392_s0] sm:$0xff]   ;;  %v307_v4 = vld [vmem:[%s391_s1 + $0x18] sm:$0xff]   ;;  %v309_v6 = vld [vmem:[%s391_s1 + $0x28] sm:$0xff]  }
   0x3   :  { %289 = vmatpush3.bf16.msra.mxu0 %v304_v0  ;;  %300 = vmatprep.mubr.msk.bf16.mxu0 %vm92_vm0, %v310_v3  ;;  %v308_v5 = vld [vmem:[%s391_s1 + $0x20] sm:$0xff]   ;;  %v311_v7 = vld [vmem:[%s392_s0 + $0x8] sm:$0xff]  }
   0x4   :  { %290 = vmatprep.subr.bf16.mxu0 %v305_v1  ;;  %v259_v8 = vld [vmem:[%s393_s2] ss:$0 sm:$0xff] }
   0x5   :  { %v260_v10 = vld [vmem:[%s394_s3] ss:$0 sm:$0xff] }
   0x7   :  { %291 = vmatpush3.bf16.msra.mxu0 %v305_v1 }
   0x8   :  { %292 = vmatprep.subr.bf16.mxu0 %v306_v2 }
   0xb   :  { %293 = vmatpush3.bf16.msra.mxu0 %v306_v2 }
   0xc   :  { %294 = vmatprep.subr.bf16.mxu0 %v307_v4 }
   0xf   :  { %295 = vmatpush3.bf16.msra.mxu0 %v307_v4 }
  0x10   :  { %296 = vmatprep.subr.bf16.mxu0 %v308_v5 }
  0x13   :  { %297 = vmatpush3.bf16.msra.mxu0 %v308_v5 }
  0x14   :  { %298 = vmatprep.subr.bf16.mxu0 %v309_v6 }
  0x17   :  { %299 = vmatpush3.bf16.msra.mxu0 %v309_v6 }
  0x1a   :  { %301 = vmatmul.mubr.msk.bf16.vlgmr.msra.gmra.mrb[0].mxu0 %vm92_vm0, %v311_v7 }
  0xed   :  { %v302_v9 = vpop.f32.mrb[0].mxu0 }
  0xee   :  { %v172_v11 = vmul.f32 %v302_v9, %v259_v8  ;;  %v133_v12 = vpop.f32.mrb[1].mxu0 }
  0xef   :  { %v170_v13 = vmul.f32 %v259_v8, %v133_v12  ;;  %v303_v14 = vpop.f32.mrb[2].mxu0 }
  0xf0   :  { %v183_v15 = vadd.f32 %v260_v10, %v172_v11  ;;  %v173_v16 = vmul.f32 %v303_v14, %v259_v8  ;;  %v136_v17 = vpop.f32.mrb[3].mxu0 }
  0xf1   :  { %v181_v18 = vadd.f32 %v260_v10, %v170_v13  ;;  %v171_v19 = vmul.f32 %v259_v8, %v136_v17 }
  0xf2   :  { %v187_v20 = vand.u32 2147483647, %v183_v15  ;;  %v184_v21 = vadd.f32 %v260_v10, %v173_v16  ;;  %vm211_vm1 = vcmp.ge.f32.partialorder %v183_v15, 0.0 }
  0xf3   :  { %v185_v22 = vand.u32 2147483647, %v181_v18  ;;  %v182_v23 = vadd.f32 %v260_v10, %v171_v19  ;;  %vm209_vm2 = vcmp.ge.f32.partialorder %v181_v18, 0.0 }
  0xf4   :  { %v191_v24 = vsub.f32 0.0, %v187_v20  ;;  %v188_v25 = vand.u32 2147483647, %v184_v21  ;;  %vm212_vm3 = vcmp.ge.f32.partialorder %v184_v21, 0.0 }
  0xf5   :  { %v189_v26 = vsub.f32 0.0, %v185_v22  ;;  %v186_v27 = vand.u32 2147483647, %v182_v23  ;;  %vm210_vm4 = vcmp.ge.f32.partialorder %v182_v23, 0.0 }
  0xf6   :  { %v197_v28 = vmul.f32 1.442695, %v191_v24  ;;  %v192_v29 = vsub.f32 0.0, %v188_v25 }
  0xf7   :  { %v193_v30 = vmul.f32 1.442695, %v189_v26  ;;  %v190_v31 = vsub.f32 0.0, %v186_v27 }
  0xf8   :  { %312 = vpow2.f32 %v197_v28  ;;  %v199_v32 = vmul.f32 1.442695, %v192_v29 }
  0xf9   :  { %314 = vpow2.f32 %v193_v30  ;;  %v195_v33 = vmul.f32 1.442695, %v190_v31 }
  0xfa   :  { %316 = vpow2.f32 %v199_v32 }
  0xfb   :  { %318 = vpow2.f32 %v195_v33 }
 0x102   :  { %v313_v34 = vpop.eup %312 }
 0x103   :  { %v315_v35 = vpop.eup %314  ;;  %v203_v36 = vadd.f32 1.0, %v313_v34 }
 0x104   :  { %v317_v37 = vpop.eup %316  ;;  %v201_v38 = vadd.f32 1.0, %v315_v35 }
 0x105   :  { %v319_v39 = vpop.eup %318  ;;  %320 = vrcp.f32 %v203_v36  ;;  %v204_v40 = vadd.f32 1.0, %v317_v37 }
 0x106   :  { %322 = vrcp.f32 %v201_v38  ;;  %v202_v41 = vadd.f32 1.0, %v319_v39 }
 0x107   :  { %324 = vrcp.f32 %v204_v40 }
 0x108   :  { %326 = vrcp.f32 %v202_v41 }
 0x10f   :  { %v321_v42 = vpop.eup %320 }
 0x110   :  { %v323_v43 = vpop.eup %322  ;;  %v215_v44 = vmul.f32 %v321_v42, %v313_v34 }
 0x111   :  { %v325_v45 = vpop.eup %324  ;;  %v213_v46 = vmul.f32 %v323_v43, %v315_v35 }
 0x112   :  { %v327_v47 = vpop.eup %326  ;;  %v219_v48 = vsel %vm211_vm1, %v321_v42, %v215_v44  ;;  %v216_v49 = vmul.f32 %v325_v45, %v317_v37 }
 0x113   :  { %v217_v50 = vsel %vm209_vm2, %v323_v43, %v213_v46  ;;  %v214_v51 = vmul.f32 %v327_v47, %v319_v39  ;;  %v223_v53 = vmul.f32 %v219_v48, %v183_v15 }
 0x114   :  { %v220_v52 = vsel %vm212_vm3, %v325_v45, %v216_v49  ;;  %v221_v56 = vmul.f32 %v217_v50, %v181_v18 }
 0x115   :  { %v224_v54 = vmul.f32 %v220_v52, %v184_v21  ;;  %v218_v55 = vsel %vm210_vm4, %v327_v47, %v214_v51 }
 0x116   :  { %v222_v57 = vmul.f32 %v218_v55, %v182_v23 }
 0x117   :  { %v277_v58 = vpack.c.bf16 %v224_v54, %v223_v53 }
 0x118   :  { %v272_v59 = vpack.c.bf16 %v222_v57, %v221_v56 }
 0x119   :  { %279 = vst [vmem:[%s395_s4 + $0x8] sm:$0xff] %v277_v58  }
 0x11a   :  { %273 = vst [vmem:[%s395_s4] sm:$0xff] %v272_v59  }

// kernel: fpn_forward.31
= control target key start
LH: loop header
LB: loop body
LE: loop exit
PB: predicated region body
PF: predicated region fallthrough
CT: control target
= control target key end

     0   :  { %vm212_vm0 = vcmask 261120   ;;  %s656_s1 = inlined_call_operand.vmem [shape: bf16[288,128], index: 1, kind: input, shape index: {}]   ;;  %s657_s0 = inlined_call_operand.vmem [shape: bf16[32,288], index: 0, kind: input, shape index: {}]   ;;  %s658_s2 = inlined_call_operand.vmem [shape: f32[1,128], index: 2, kind: input, shape index: {}]   ;;  %s659_s3 = inlined_call_operand.vmem [shape: f32[1,128], index: 3, kind: input, shape index: {}]   ;;  %s660_s4 = inlined_call_operand.vmem [shape: bf16[32,128], index: 4, kind: output, shape index: {}]  }
   0x1   :  { %v505_v0 = vld [vmem:[%s656_s1 + $0x40] sm:$0xff]   ;;  %v507_v2 = vld [vmem:[%s656_s1 + $0x48] sm:$0xff]   ;;  %v509_v4 = vld [vmem:[%s656_s1 + $0x50] sm:$0xff]  }
   0x2   :  { %v506_v1 = vld [vmem:[%s656_s1] sm:$0xff]   ;;  %465 = vmatprep.subr.bf16.mxu0 %v505_v0  ;;  %v508_v3 = vld [vmem:[%s656_s1 + $0x8] sm:$0xff]   ;;  %v510_v5 = vld [vmem:[%s656_s1 + $0x10] sm:$0xff]  }
   0x3   :  { %466 = vmatpush3.bf16.msra.mxu0 %v506_v1  ;;  %v511_v6 = vld [vmem:[%s656_s1 + $0x58] sm:$0xff]   ;;  %v513_v8 = vld [vmem:[%s656_s1 + $0x60] sm:$0xff]   ;;  %v515_v11 = vld [vmem:[%s656_s1 + $0x68] sm:$0xff]  }
   0x4   :  { %467 = vmatprep.subr.bf16.mxu0 %v507_v2  ;;  %v512_v7 = vld [vmem:[%s656_s1 + $0x18] sm:$0xff]   ;;  %v519_v9 = vld [vmem:[%s656_s1 + $0x80] sm:$0xff]   ;;  %v516_v12 = vld [vmem:[%s656_s1 + $0x28] sm:$0xff]  }
   0x5   :  { %v514_v10 = vld [vmem:[%s656_s1 + $0x20] sm:$0xff]   ;;  %497 = vmatprep.subr.bf16.mxu1 %v519_v9  ;;  %v522_v13 = vld [vmem:[%s656_s1 + $0x88] sm:$0xff]   ;;  %v517_v14 = vld [vmem:[%s656_s1 + $0x70] sm:$0xff]  }
   0x6   :  { %498 = vmatpush3.bf16.msra.mxu1 %v519_v9  ;;  %v525_v15 = vld [vmem:[%s657_s0 + $0x4] ss:$12 sps:$4 sm:$0xff]   ;;  %v526_v16 = vld [vmem:[%s657_s0 + $0x8] ss:$12 sps:$4 sm:$0xff]   ;;  %v527_v17 = vld [vmem:[%s657_s0 + $0x20] ss:$12 sps:$4 sm:$0xff]  }
   0x7   :  { %468 = vmatpush3.bf16.msra.mxu0 %v508_v3  ;;  %499 = vmatprep.subr.bf16.mxu1 %v522_v13  ;;  %v518_v18 = vld [vmem:[%s656_s1 + $0x30] sm:$0xff]   ;;  %v520_v19 = vld [vmem:[%s656_s1 + $0x78] sm:$0xff]   ;;  %v523_v21 = vld [vmem:[%s657_s0] ss:$12 sps:$4 sm:$0xff]  }
   0x8   :  { %469 = vmatprep.subr.bf16.mxu0 %v509_v4  ;;  %251 = vmatprep.mubr.bf16.mxu0 %v525_v15  ;;  %v521_v20 = vld [vmem:[%s656_s1 + $0x38] sm:$0xff]   ;;  %v444_v33 = vld [vmem:[%s658_s2] ss:$0 sm:$0xff] }
   0x9   :  { %501 = vmatprep.mubr.msk.bf16.mxu1 %vm212_vm0, %v526_v16  ;;  %v528_v22 = vld [vmem:[%s657_s0 + $0x1c] ss:$12 sps:$4 sm:$0xff]   ;;  %v530_v23 = vld [vmem:[%s657_s0 + $0x18] ss:$12 sps:$4 sm:$0xff]   ;;  %v445_v36 = vld [vmem:[%s659_s3] ss:$0 sm:$0xff] }
   0xa   :  { %500 = vmatpush3.bf16.msra.mxu1 %v522_v13 }
   0xb   :  { %470 = vmatpush3.bf16.msra.mxu0 %v510_v5 }
   0xc   :  { %471 = vmatprep.subr.bf16.mxu0 %v511_v6 }
   0xd   :  { %502 = vmatmul.mubr.msk.bf16.vlgmr.msra.gmra.mrb[0].mxu1 %vm212_vm0, %v527_v17 }
   0xf   :  { %472 = vmatpush3.bf16.msra.mxu0 %v512_v7 }
  0x10   :  { %473 = vmatprep.subr.bf16.mxu0 %v513_v8 }
  0x13   :  { %474 = vmatpush3.bf16.msra.mxu0 %v514_v10 }
  0x14   :  { %475 = vmatprep.subr.bf16.mxu0 %v515_v11 }
  0x17   :  { %476 = vmatpush3.bf16.msra.mxu0 %v516_v12 }
  0x18   :  { %477 = vmatprep.subr.bf16.mxu0 %v517_v14 }
  0x1b   :  { %478 = vmatpush3.bf16.msra.mxu0 %v518_v18 }
  0x1c   :  { %479 = vmatprep.subr.bf16.mxu0 %v520_v19 }
  0x1f   :  { %480 = vmatpush3.bf16.msra.mxu0 %v521_v20 }
  0x22   :  { %252 = vmatmul.mubr.bf16.vlgmr.msra.gmra.mrb[0].mxu0 %v523_v21 }
  0x23   :  { %259 = vmatprep.mubr.bf16.mxu0 %v528_v22 }
  0x2a   :  { %260 = vmatmul.mubr.bf16.gmra.mrb[4].mxu0 %v530_v23 }
  0xe0   :  { %v503_v24 = vpop.f32.mrb[0].mxu1 }
  0xe1   :  { %v302_v25 = vpop.f32.mrb[1].mxu1 }
  0xe2   :  { %v504_v26 = vpop.f32.mrb[2].mxu1 }
  0xe3   :  { %v305_v27 = vpop.f32.mrb[3].mxu1 }
  0xf5   :  { %v481_v28 = vpop.f32.mrb[0].mxu0 }
  0xf6   :  { %v482_v29 = vpop.f32.mrb[1].mxu0 }
  0xf7   :  { %v483_v30 = vadd.f32 %v482_v29, %v481_v28  ;;  %v484_v31 = vpop.f32.mrb[2].mxu0 }
  0xf8   :  { %v485_v32 = vpop.f32.mrb[3].mxu0 }
  0xf9   :  { %v486_v34 = vadd.f32 %v485_v32, %v484_v31  ;;  %v303_v35 = vadd.f32 %v483_v30, %v302_v25 }
  0xfb   :  { %v339_v37 = vmul.f32 %v444_v33, %v303_v35  ;;  %v306_v38 = vadd.f32 %v486_v34, %v305_v27 }
  0xfd   :  { %v350_v39 = vadd.f32 %v445_v36, %v339_v37  ;;  %v340_v40 = vmul.f32 %v444_v33, %v306_v38  ;;  %v487_v41 = vpop.f32.mrb[4].mxu0 }
  0xfe   :  { %v488_v42 = vpop.f32.mrb[5].mxu0 }
  0xff   :  { %v354_v43 = vand.u32 2147483647, %v350_v39  ;;  %v351_v44 = vadd.f32 %v445_v36, %v340_v40  ;;  %v489_v45 = vadd.f32 %v488_v42, %v487_v41  ;;  %v490_v46 = vpop.f32.mrb[6].mxu0  ;;  %vm378_vm1 = vcmp.ge.f32.partialorder %v350_v39, 0.0 }
 0x100   :  { %v491_v47 = vpop.f32.mrb[7].mxu0 }
 0x101   :  { %v358_v48 = vsub.f32 0.0, %v354_v43  ;;  %v355_v49 = vand.u32 2147483647, %v351_v44  ;;  %v311_v50 = vadd.f32 %v503_v24, %v489_v45  ;;  %v492_v51 = vadd.f32 %v491_v47, %v490_v46 }
 0x102   :  { %vm379_vm2 = vcmp.ge.f32.partialorder %v351_v44, 0.0 }
 0x103   :  { %v362_v52 = vmul.f32 1.442695, %v358_v48  ;;  %v359_v53 = vsub.f32 0.0, %v355_v49  ;;  %v341_v54 = vmul.f32 %v444_v33, %v311_v50  ;;  %v314_v55 = vadd.f32 %v504_v26, %v492_v51 }
 0x105   :  { %531 = vpow2.f32 %v362_v52  ;;  %v364_v56 = vmul.f32 1.442695, %v359_v53  ;;  %v352_v57 = vadd.f32 %v445_v36, %v341_v54  ;;  %v342_v58 = vmul.f32 %v444_v33, %v314_v55 }
 0x107   :  { %533 = vpow2.f32 %v364_v56  ;;  %v356_v59 = vand.u32 2147483647, %v352_v57  ;;  %v353_v60 = vadd.f32 %v445_v36, %v342_v58  ;;  %vm380_vm3 = vcmp.ge.f32.partialorder %v352_v57, 0.0 }
 0x109   :  { %v360_v61 = vsub.f32 0.0, %v356_v59  ;;  %v357_v62 = vand.u32 2147483647, %v353_v60  ;;  %vm381_vm4 = vcmp.ge.f32.partialorder %v353_v60, 0.0 }
 0x10b   :  { %v366_v63 = vmul.f32 1.442695, %v360_v61  ;;  %v361_v0 = vsub.f32 0.0, %v357_v62 }
 0x10d   :  { %535 = vpow2.f32 %v366_v63  ;;  %v368_v1 = vmul.f32 1.442695, %v361_v0 }
 0x10f   :  { %v532_v2 = vpop.eup %531  ;;  %537 = vpow2.f32 %v368_v1 }
 0x110   :  { %v370_v3 = vadd.f32 1.0, %v532_v2 }
 0x111   :  { %v534_v4 = vpop.eup %533 }
 0x112   :  { %539 = vrcp.f32 %v370_v3  ;;  %v371_v5 = vadd.f32 1.0, %v534_v4 }
 0x114   :  { %541 = vrcp.f32 %v371_v5 }
 0x117   :  { %v536_v6 = vpop.eup %535 }
 0x118   :  { %v372_v7 = vadd.f32 1.0, %v536_v6 }
 0x119   :  { %v538_v8 = vpop.eup %537 }
 0x11a   :  { %543 = vrcp.f32 %v372_v7  ;;  %v373_v9 = vadd.f32 1.0, %v538_v8 }
 0x11c   :  { %v540_v10 = vpop.eup %539  ;;  %545 = vrcp.f32 %v373_v9 }
 0x11d   :  { %v382_v11 = vmul.f32 %v540_v10, %v532_v2 }
 0x11e   :  { %v542_v12 = vpop.eup %541 }
 0x11f   :  { %v386_v13 = vsel %vm378_vm1, %v540_v10, %v382_v11  ;;  %v383_v14 = vmul.f32 %v542_v12, %v534_v4 }
 0x120   :  { %v390_v16 = vmul.f32 %v386_v13, %v350_v39 }
 0x121   :  { %v387_v15 = vsel %vm379_vm2, %v542_v12, %v383_v14 }
 0x122   :  { %v391_v17 = vmul.f32 %v387_v15, %v351_v44 }
 0x124   :  { %v544_v18 = vpop.eup %543  ;;  %v457_v19 = vpack.c.bf16 %v391_v17, %v390_v16 }
 0x125   :  { %v384_v20 = vmul.f32 %v544_v18, %v536_v6 }
 0x126   :  { %458 = vst [vmem:[%s660_s4] sm:$0xff] %v457_v19   ;;  %v546_v21 = vpop.eup %545 }
 0x127   :  { %v388_v22 = vsel %vm380_vm3, %v544_v18, %v384_v20  ;;  %v385_v23 = vmul.f32 %v546_v21, %v538_v8 }
 0x128   :  { %v392_v25 = vmul.f32 %v388_v22, %v352_v57 }
 0x129   :  { %v389_v24 = vsel %vm381_vm4, %v546_v21, %v385_v23 }
 0x12a   :  { %v393_v26 = vmul.f32 %v389_v24, %v353_v60 }
 0x12c   :  { %v462_v27 = vpack.c.bf16 %v393_v26, %v392_v25 }
 0x12e   :  { %464 = vst [vmem:[%s660_s4 + $0x8] sm:$0xff] %v462_v27  }

</bundles_post_ra>
